<compile_context>
chip_gen: v5e
topology: v5e:2x2
jax: 0.10.0
libtpu: 0.0.40
codegen_flags: <defaults>
</compile_context>

<pallas_src>
import functools

import jax
import jax.numpy as jnp
from jax import lax
from jax.experimental import pallas as pl
from jax.experimental.pallas import tpu as pltpu

NEG_SLOPE = 0.01
BN_EPS = 1e-5
VMEM_LIMIT = 32 * 1024 * 1024


# ------------------------------ small helpers -------------------------------

def _round_up(v, m):
    return (v + m - 1) // m * m


def _pick_tile(size, candidates):
    for c in candidates:
        if size % c == 0:
            return c
    return candidates[-1]


# ------------------------------ Pallas kernels ------------------------------

def _conv_bn_lrelu_kernel(*refs, kh, ncs, wo, slope):
    """Fused Conv2d + BatchNorm(eval) + LeakyReLU for one output row block.

    refs = (x_row_ref[0..kh-1], w_ref, shift_ref, o_ref)
      x_row_ref[dy]: (tb, 1, Wr, Cr) bf16 -- padded input row s*i + dy with the
                     W stride-phase merged into channels (Cr = s*Cin).
      w_ref:         (kh, ncs, Cr, tn) bf16 -- BN-scale-folded weight taps.
      shift_ref:     (1, tn) f32 -- conv bias + BN shift.
      o_ref:         (tb, 1, Wo, tn) bf16.
    """
    x_refs = refs[:kh]
    w_ref = refs[kh]
    shift_ref = refs[kh + 1]
    o_ref = refs[kh + 2]
    tb = o_ref.shape[0]

    acc = None
    for dy in range(kh):
        x = x_refs[dy][...]                          # (tb, 1, Wr, Cr)
        for co in range(ncs):
            xs = x[:, 0, co:co + wo, :]              # (tb, Wo, Cr)
            xs = xs.reshape(tb * wo, xs.shape[-1])
            part = jnp.dot(xs, w_ref[dy, co],
                           preferred_element_type=jnp.float32)
            acc = part if acc is None else acc + part

    y = acc + shift_ref[...]                         # f32 epilogue
    y = jnp.where(y >= 0, y, slope * y)
    o_ref[...] = y.reshape(o_ref.shape).astype(o_ref.dtype)


def _adaptive_pool_kernel(x_ref, o_ref, *, sw):
    """(1, sh, W, C) window-row band -> (1, 1, 4, C) pooled row (mean in f32)."""
    x = x_ref[...].astype(jnp.float32)               # (1, sh, W, C)
    xm = jnp.mean(x, axis=(0, 1))                    # (W, C)
    cols = [jnp.mean(xm[pw * sw:(pw + 1) * sw], axis=0, keepdims=True)
            for pw in range(4)]
    y = jnp.concatenate(cols, axis=0)                # (4, C)
    o_ref[...] = y[None, None].astype(o_ref.dtype)


def _linear_single_kernel(x_ref, w_ref, shift_ref, o_ref, *, apply_act, slope):
    """Single-K-step GEMM: dot + bias (+ LeakyReLU), no scratch accumulator."""
    y = jnp.dot(x_ref[...], w_ref[...], preferred_element_type=jnp.float32)
    y = y + shift_ref[...]
    if apply_act:
        y = jnp.where(y >= 0, y, slope * y)
    o_ref[...] = y.astype(o_ref.dtype)


def _linear_multi_kernel(x_ref, w_ref, shift_ref, o_ref, acc_ref, *,
                         apply_act, slope):
    """K-tiled GEMM; acc = dot at k==0 (no zero-init store), += otherwise."""
    k = pl.program_id(2)
    part = jnp.dot(x_ref[...], w_ref[...], preferred_element_type=jnp.float32)

    @pl.when(k == 0)
    def _():
        acc_ref[...] = part

    @pl.when(k > 0)
    def _():
        acc_ref[...] += part

    @pl.when(k == pl.num_programs(2) - 1)
    def _():
        y = acc_ref[...] + shift_ref[...]
        if apply_act:
            y = jnp.where(y >= 0, y, slope * y)
        o_ref[...] = y.astype(o_ref.dtype)


# ----------------------------- kernel wrappers ------------------------------

def conv_bn_lrelu(x, p, kh, kw, stride, pad):
    """Fused Conv2d+BN(eval)+LeakyReLU.  x: (B, H, W, Cin) bf16 NHWC (Cin may
    contain zero-padded channels).  Returns (B, Ho, Wo, Coutp) bf16 with the
    output channels zero-padded to a multiple of 128 (lane-dense stores)."""
    B, H, W, Cin = x.shape
    s = stride
    Ho = (H + 2 * pad - kh) // s + 1
    Wo = (W + 2 * pad - kw) // s + 1
    Cout, Cin_w = p['w'].shape[0], p['w'].shape[1]
    Coutp = _round_up(Cout, 128)
    assert kw % s == 0 and (W + 2 * pad) % s == 0
    ncs = kw // s                       # column taps after stride-phase merge
    Cr = s * Cin                        # per-tap contraction size

    # One cheap halo-pad copy (replaces the kh*kw im2col inflation), then merge
    # the W stride-phase into channels (pure contiguous reshape, no data move).
    xp = jnp.pad(x, ((0, 0), (pad, pad), (pad, pad), (0, 0)))
    Hp, Wp = H + 2 * pad, W + 2 * pad
    Wr = Wp // s
    xr = xp.reshape(B, Hp, Wr, Cr)

    # Fold eval-mode BN scale into the weight; build (kh, ncs, Cr, Coutp) taps.
    inv_std = 1.0 / jnp.sqrt(p['bn_var'] + BN_EPS)
    scale = p['bn_gamma'] * inv_std
    shift = p['bn_beta'] + (p['b'] - p['bn_mean']) * scale
    wt = jnp.transpose(p['w'] * scale[:, None, None, None], (2, 3, 1, 0))
    if Cin_w != Cin:                    # padded input channels -> zero rows
        wt = jnp.pad(wt, ((0, 0), (0, 0), (0, Cin - Cin_w), (0, 0)))
    # (kh, kw, Cin, Cout) -> (kh, ncs, s*Cin, Cout): dx = co*s + px, row px*Cin+c
    wk = wt.reshape(kh, ncs, Cr, Cout)
    if Coutp != Cout:
        wk = jnp.pad(wk, ((0, 0), (0, 0), (0, 0), (0, Coutp - Cout)))
    wk = wk.astype(jnp.bfloat16)
    shiftp = jnp.pad(shift, (0, Coutp - Cout)).reshape(1, Coutp).astype(jnp.float32)

    # Tiling: one output row per step, a few batch images per step, Cout tiles.
    tb = 1
    for t in (8, 4, 2):
        if B % t == 0 and t * Wo <= 256:
            tb = t
            break
    tn = _pick_tile(Coutp, (512, 256, 128))
    grid = (Coutp // tn, B // tb, Ho)   # weight block only changes with j

    in_specs = [
        pl.BlockSpec((tb, 1, Wr, Cr),
                     (lambda j, bi, i, dy=dy: (bi, s * i + dy, 0, 0)))
        for dy in range(kh)
    ]
    in_specs += [
        pl.BlockSpec((kh, ncs, Cr, tn), lambda j, bi, i: (0, 0, 0, j)),
        pl.BlockSpec((1, tn), lambda j, bi, i: (0, j)),
    ]
    out_spec = pl.BlockSpec((tb, 1, Wo, tn), lambda j, bi, i: (bi, i, 0, j))

    kern = functools.partial(_conv_bn_lrelu_kernel, kh=kh, ncs=ncs, wo=Wo,
                             slope=NEG_SLOPE)
    return pl.pallas_call(
        kern,
        out_shape=jax.ShapeDtypeStruct((B, Ho, Wo, Coutp), jnp.bfloat16),
        grid_spec=pltpu.PrefetchScalarGridSpec(
            num_scalar_prefetch=0,
            grid=grid,
            in_specs=in_specs,
            out_specs=out_spec,
        ),
        compiler_params=pltpu.CompilerParams(
            dimension_semantics=("parallel", "parallel", "parallel"),
            vmem_limit_bytes=VMEM_LIMIT),
    )(*([xr] * kh), wk, shiftp)


def adaptive_pool_4x4(x):
    """AdaptiveAvgPool2d((4,4)) on NHWC input, uniform windows, bf16 output."""
    B, H, W, C = x.shape
    # TODO(synk): only the H, W divisible-by-4 (uniform window) case is lowered.
    assert H % 4 == 0 and W % 4 == 0
    sh, sw = H // 4, W // 4
    return pl.pallas_call(
        functools.partial(_adaptive_pool_kernel, sw=sw),
        out_shape=jax.ShapeDtypeStruct((B, 4, 4, C), jnp.bfloat16),
        grid_spec=pltpu.PrefetchScalarGridSpec(
            num_scalar_prefetch=0,
            grid=(B, 4),
            in_specs=[pl.BlockSpec((1, sh, W, C), lambda b, ph: (b, ph, 0, 0))],
            out_specs=pl.BlockSpec((1, 1, 4, C), lambda b, ph: (b, ph, 0, 0)),
        ),
        compiler_params=pltpu.CompilerParams(
            dimension_semantics=("parallel", "parallel"),
            vmem_limit_bytes=VMEM_LIMIT),
    )(x)


def fused_linear(x, w, bias, *, apply_act, out_dtype):
    """out = (leaky_relu)(x @ w + bias); bf16 MXU operands, f32 accumulation.
    x: (M, K), w: (K, N), bias: (N,)."""
    M, K = x.shape
    Kw, N = w.shape
    assert Kw == K
    x = x.astype(jnp.bfloat16)
    w = w.astype(jnp.bfloat16)

    Mp = _round_up(M, 8)
    Kp = _round_up(K, 128)
    Np = _round_up(N, 128)
    if (Mp, Kp) != (M, K):
        x = jnp.pad(x, ((0, Mp - M), (0, Kp - K)))
    if (Kp, Np) != (K, N):
        w = jnp.pad(w, ((0, Kp - K), (0, Np - N)))
    shift = jnp.pad(bias.astype(jnp.float32), (0, Np - N)).reshape(1, Np)

    tm = Mp if Mp <= 512 else _pick_tile(Mp, (512, 256, 128, 64, 32, 16, 8))
    # Keep >= 2 N tiles when possible so both v7x TensorCores get work.
    tn = 256 if (Np % 256 == 0 and Np // 256 >= 2) else 128
    tk = _pick_tile(Kp, (1024, 512, 256, 128))
    nk = Kp // tk

    if nk == 1:
        kern = functools.partial(_linear_single_kernel, apply_act=apply_act,
                                 slope=NEG_SLOPE)
        out = pl.pallas_call(
            kern,
            out_shape=jax.ShapeDtypeStruct((Mp, Np), out_dtype),
            grid_spec=pltpu.PrefetchScalarGridSpec(
                num_scalar_prefetch=0,
                grid=(Mp // tm, Np // tn),
                in_specs=[
                    pl.BlockSpec((tm, tk), lambda i, j: (i, 0)),
                    pl.BlockSpec((tk, tn), lambda i, j: (0, j)),
                    pl.BlockSpec((1, tn), lambda i, j: (0, j)),
                ],
                out_specs=pl.BlockSpec((tm, tn), lambda i, j: (i, j)),
            ),
            compiler_params=pltpu.CompilerParams(
                dimension_semantics=("parallel", "parallel"),
                vmem_limit_bytes=VMEM_LIMIT),
        )(x, w, shift)
    else:
        kern = functools.partial(_linear_multi_kernel, apply_act=apply_act,
                                 slope=NEG_SLOPE)
        out = pl.pallas_call(
            kern,
            out_shape=jax.ShapeDtypeStruct((Mp, Np), out_dtype),
            grid_spec=pltpu.PrefetchScalarGridSpec(
                num_scalar_prefetch=0,
                grid=(Mp // tm, Np // tn, nk),
                in_specs=[
                    pl.BlockSpec((tm, tk), lambda i, j, k: (i, k)),
                    pl.BlockSpec((tk, tn), lambda i, j, k: (k, j)),
                    pl.BlockSpec((1, tn), lambda i, j, k: (0, j)),
                ],
                out_specs=pl.BlockSpec((tm, tn), lambda i, j, k: (i, j)),
                scratch_shapes=[pltpu.VMEM((tm, tn), jnp.float32)],
            ),
            compiler_params=pltpu.CompilerParams(
                dimension_semantics=("parallel", "parallel", "arbitrary"),
                vmem_limit_bytes=VMEM_LIMIT),
        )(x, w, shift)

    if (Mp, Np) != (M, N):
        out = out[:M, :N]
    return out


# ------------------------------- model glue ---------------------------------

def clagnosco_encoder(x_nchw, params):
    """Input (B, 3, H, W) NCHW float -> latent (B, latent_dim) float32."""
    B = x_nchw.shape[0]
    # NHWC, bf16.  Pad the 3 input channels to 4 (zero channel + zero weight
    # rows) so conv1's per-tap contraction is sublane-aligned.
    x = jnp.transpose(x_nchw, (0, 2, 3, 1)).astype(jnp.bfloat16)
    x = jnp.pad(x, ((0, 0), (0, 0), (0, 0), (0, 1)))

    x = conv_bn_lrelu(x, params['conv1'], 4, 4, 2, 1)   # (B, H/2, W/2, 128)
    x = conv_bn_lrelu(x, params['conv2'], 4, 4, 2, 1)   # (B, H/4, W/4, 128)
    x = conv_bn_lrelu(x, params['conv3'], 3, 3, 1, 1)   # (B, H/4, W/4, Cp)

    pooled = adaptive_pool_4x4(x)                       # (B, 4, 4, Cp) bf16
    Cp = pooled.shape[-1]
    flat = pooled.reshape(B, 16 * Cp)                   # contiguous, no transpose

    l1, l2 = params['lin1'], params['lin2']
    C3 = params['conv3']['w'].shape[0]
    n1 = l1['w'].shape[0]
    # PyTorch flattens pooled as (B, C, 4, 4) -> columns (c, ph, pw); our flat
    # is (ph, pw, c): permute (and zero-pad) lin1's weight columns instead of
    # transposing the activation.
    col_src = (jnp.arange(C3)[None, None, :] * 16
               + jnp.arange(4)[:, None, None] * 4
               + jnp.arange(4)[None, :, None])          # (4, 4, C3)
    w1 = l1['w'][:, col_src.reshape(-1)].reshape(n1, 4, 4, C3)
    if Cp != C3:
        w1 = jnp.pad(w1, ((0, 0), (0, 0), (0, 0), (0, Cp - C3)))
    w1 = w1.reshape(n1, 16 * Cp)

    h = fused_linear(flat, w1.T, l1['b'], apply_act=True, out_dtype=jnp.bfloat16)
    latent = fused_linear(h, l2['w'].T, l2['b'], apply_act=False,
                          out_dtype=jnp.float32)
    return latent


# ----------------------------- pure-JAX reference ---------------------------

def reference_forward(x_nchw, params):
    """Precision-matched reference (bf16 operands, f32 accumulation)."""
    def conv_ref(x, p, stride, pad):
        scale = p['bn_gamma'] / jnp.sqrt(p['bn_var'] + BN_EPS)
        shift = p['bn_beta'] + (p['b'] - p['bn_mean']) * scale
        w = (p['w'] * scale[:, None, None, None]).astype(jnp.bfloat16)
        y = lax.conv_general_dilated(
            x.astype(jnp.bfloat16), w, (stride, stride),
            [(pad, pad), (pad, pad)],
            dimension_numbers=('NCHW', 'OIHW', 'NCHW'),
            preferred_element_type=jnp.float32)
        y = y + shift[None, :, None, None]
        y = jnp.where(y >= 0, y, NEG_SLOPE * y)
        return y.astype(jnp.bfloat16)

    x = conv_ref(x_nchw, params['conv1'], 2, 1)
    x = conv_ref(x, params['conv2'], 2, 1)
    x = conv_ref(x, params['conv3'], 1, 1)
    B, C, H, W = x.shape
    pooled = x.astype(jnp.float32).reshape(B, C, 4, H // 4, 4, W // 4).mean(axis=(3, 5))
    flat = pooled.reshape(B, -1).astype(jnp.bfloat16)
    l1, l2 = params['lin1'], params['lin2']
    h = jnp.dot(flat, l1['w'].T.astype(jnp.bfloat16),
                preferred_element_type=jnp.float32) + l1['b']
    h = jnp.where(h >= 0, h, NEG_SLOPE * h).astype(jnp.bfloat16)
    lat = jnp.dot(h, l2['w'].T.astype(jnp.bfloat16),
                  preferred_element_type=jnp.float32) + l2['b']
    return lat


# ------------------------------- parameters ---------------------------------

def init_params(key, backbone_channels=128, latent_dim=256):
    def conv_p(k, cout, cin, kk):
        k1, k2, k3, k4, k5, k6 = jax.random.split(k, 6)
        return dict(
            w=0.05 * jax.random.normal(k1, (cout, cin, kk, kk), jnp.float32),
            b=0.05 * jax.random.normal(k2, (cout,), jnp.float32),
            bn_gamma=1.0 + 0.05 * jax.random.normal(k3, (cout,), jnp.float32),
            bn_beta=0.05 * jax.random.normal(k4, (cout,), jnp.float32),
            bn_mean=0.05 * jax.random.normal(k5, (cout,), jnp.float32),
            bn_var=1.0 + 0.1 * jnp.abs(jax.random.normal(k6, (cout,),
                                                         jnp.float32)),
        )

    def lin_p(k, cout, cin):
        k1, k2 = jax.random.split(k)
        return dict(w=0.02 * jax.random.normal(k1, (cout, cin), jnp.float32),
                    b=0.02 * jax.random.normal(k2, (cout,), jnp.float32))

    k1, k2, k3, k4, k5 = jax.random.split(key, 5)
    return dict(
        conv1=conv_p(k1, 64, 3, 4),
        conv2=conv_p(k2, 128, 64, 4),
        conv3=conv_p(k3, backbone_channels, 128, 3),
        lin1=lin_p(k4, backbone_channels, backbone_channels * 4 * 4),
        lin2=lin_p(k5, latent_dim, backbone_channels),
    )


if __name__ == "__main__":
    key = jax.random.PRNGKey(0)
    kp, kx = jax.random.split(key)

    # Small shapes consistent with the module (backbone_channels / latent_dim
    # are __init__ args; shrunk from 1024/4096 for a quick synthetic run).
    backbone_channels, latent_dim = 128, 256
    params = init_params(kp, backbone_channels, latent_dim)

    x = jax.random.normal(kx, (2, 3, 32, 32), jnp.float32)   # (B, 3, H, W)
    fwd = jax.jit(clagnosco_encoder)
    latent = jax.block_until_ready(fwd(x, params))
    assert latent.shape == (2, latent_dim)
    assert bool(jnp.all(jnp.isfinite(latent)))

    ref = jax.block_until_ready(reference_forward(x, params))
    assert bool(jnp.allclose(latent, ref, atol=1e-2, rtol=1e-2))
    print("KERNEL_OK")
</pallas_src>

<mosaic_0001>
module attributes {stable_mosaic.version = 11 : i64} {
  func.func @_conv_bn_lrelu_kernel(%arg0: i32, %arg1: i32, %arg2: i32, %arg3: memref<2x1x17x8xbf16, #tpu.memory_space<vmem>>, %arg4: memref<2x1x17x8xbf16, #tpu.memory_space<vmem>>, %arg5: memref<2x1x17x8xbf16, #tpu.memory_space<vmem>>, %arg6: memref<2x1x17x8xbf16, #tpu.memory_space<vmem>>, %arg7: memref<4x2x8x128xbf16, #tpu.memory_space<vmem>>, %arg8: memref<1x128xf32, #tpu.memory_space<vmem>>, %arg9: memref<2x1x16x128xbf16, #tpu.memory_space<vmem>>) attributes {dimension_semantics = [#tpu.dimension_semantics<parallel>, #tpu.dimension_semantics<parallel>, #tpu.dimension_semantics<parallel>], iteration_bounds = array<i64: 1, 1, 16>, scalar_prefetch = 0 : i64, scratch_operands = 0 : i64, tpu.core_type = #tpu.core_type<tc>, window_params = [{transform_indices = @transform_0, window_bounds = array<i64: 2, 1, 17, 8>}, {transform_indices = @transform_1, window_bounds = array<i64: 2, 1, 17, 8>}, {transform_indices = @transform_2, window_bounds = array<i64: 2, 1, 17, 8>}, {transform_indices = @transform_3, window_bounds = array<i64: 2, 1, 17, 8>}, {transform_indices = @transform_4, window_bounds = array<i64: 4, 2, 8, 128>}, {transform_indices = @transform_5, window_bounds = array<i64: 1, 128>}, {transform_indices = @transform_6, window_bounds = array<i64: 2, 1, 16, 128>}]} {
    %c0 = arith.constant 0 : index
    %c0_0 = arith.constant 0 : index
    %c0_1 = arith.constant 0 : index
    %c0_2 = arith.constant 0 : index
    %0 = vector.load %arg3[%c0, %c0_0, %c0_1, %c0_2] : memref<2x1x17x8xbf16, #tpu.memory_space<vmem>>, vector<2x1x17x8xbf16>
    %1 = vector.extract_strided_slice %0 {offsets = [0, 0, 0, 0], sizes = [2, 1, 16, 8], strides = [1, 1, 1, 1]} : vector<2x1x17x8xbf16> to vector<2x1x16x8xbf16>
    %2 = vector.shape_cast %1 : vector<2x1x16x8xbf16> to vector<2x16x8xbf16>
    %3 = vector.shape_cast %2 : vector<2x16x8xbf16> to vector<32x8xbf16>
    %c0_3 = arith.constant 0 : index
    %c0_4 = arith.constant 0 : index
    %c0_5 = arith.constant 0 : index
    %c0_6 = arith.constant 0 : index
    %4 = vector.load %arg7[%c0_3, %c0_4, %c0_5, %c0_6] : memref<4x2x8x128xbf16, #tpu.memory_space<vmem>>, vector<1x1x8x128xbf16>
    %5 = vector.shape_cast %4 : vector<1x1x8x128xbf16> to vector<8x128xbf16>
    %cst = arith.constant dense<0.000000e+00> : vector<32x128xf32>
    %6 = tpu.matmul %3, %5, %cst {dimension_numbers = #tpu.dot_dimension_numbers<[1], [0], [0], [1], [0, 0, 1, 1], [], []>} : vector<32x8xbf16>, vector<8x128xbf16>, vector<32x128xf32> -> vector<32x128xf32>
    %7 = vector.extract_strided_slice %0 {offsets = [0, 0, 1, 0], sizes = [2, 1, 16, 8], strides = [1, 1, 1, 1]} : vector<2x1x17x8xbf16> to vector<2x1x16x8xbf16>
    %8 = vector.shape_cast %7 : vector<2x1x16x8xbf16> to vector<2x16x8xbf16>
    %9 = vector.shape_cast %8 : vector<2x16x8xbf16> to vector<32x8xbf16>
    %c0_7 = arith.constant 0 : index
    %c1 = arith.constant 1 : index
    %c0_8 = arith.constant 0 : index
    %c0_9 = arith.constant 0 : index
    %10 = vector.load %arg7[%c0_7, %c1, %c0_8, %c0_9] : memref<4x2x8x128xbf16, #tpu.memory_space<vmem>>, vector<1x1x8x128xbf16>
    %11 = vector.shape_cast %10 : vector<1x1x8x128xbf16> to vector<8x128xbf16>
    %cst_10 = arith.constant dense<0.000000e+00> : vector<32x128xf32>
    %12 = tpu.matmul %9, %11, %cst_10 {dimension_numbers = #tpu.dot_dimension_numbers<[1], [0], [0], [1], [0, 0, 1, 1], [], []>} : vector<32x8xbf16>, vector<8x128xbf16>, vector<32x128xf32> -> vector<32x128xf32>
    %13 = arith.addf %6, %12 : vector<32x128xf32>
    %c0_11 = arith.constant 0 : index
    %c0_12 = arith.constant 0 : index
    %c0_13 = arith.constant 0 : index
    %c0_14 = arith.constant 0 : index
    %14 = vector.load %arg4[%c0_11, %c0_12, %c0_13, %c0_14] : memref<2x1x17x8xbf16, #tpu.memory_space<vmem>>, vector<2x1x17x8xbf16>
    %15 = vector.extract_strided_slice %14 {offsets = [0, 0, 0, 0], sizes = [2, 1, 16, 8], strides = [1, 1, 1, 1]} : vector<2x1x17x8xbf16> to vector<2x1x16x8xbf16>
    %16 = vector.shape_cast %15 : vector<2x1x16x8xbf16> to vector<2x16x8xbf16>
    %17 = vector.shape_cast %16 : vector<2x16x8xbf16> to vector<32x8xbf16>
    %c1_15 = arith.constant 1 : index
    %c0_16 = arith.constant 0 : index
    %c0_17 = arith.constant 0 : index
    %c0_18 = arith.constant 0 : index
    %18 = vector.load %arg7[%c1_15, %c0_16, %c0_17, %c0_18] : memref<4x2x8x128xbf16, #tpu.memory_space<vmem>>, vector<1x1x8x128xbf16>
    %19 = vector.shape_cast %18 : vector<1x1x8x128xbf16> to vector<8x128xbf16>
    %cst_19 = arith.constant dense<0.000000e+00> : vector<32x128xf32>
    %20 = tpu.matmul %17, %19, %cst_19 {dimension_numbers = #tpu.dot_dimension_numbers<[1], [0], [0], [1], [0, 0, 1, 1], [], []>} : vector<32x8xbf16>, vector<8x128xbf16>, vector<32x128xf32> -> vector<32x128xf32>
    %21 = arith.addf %13, %20 : vector<32x128xf32>
    %22 = vector.extract_strided_slice %14 {offsets = [0, 0, 1, 0], sizes = [2, 1, 16, 8], strides = [1, 1, 1, 1]} : vector<2x1x17x8xbf16> to vector<2x1x16x8xbf16>
    %23 = vector.shape_cast %22 : vector<2x1x16x8xbf16> to vector<2x16x8xbf16>
    %24 = vector.shape_cast %23 : vector<2x16x8xbf16> to vector<32x8xbf16>
    %c1_20 = arith.constant 1 : index
    %c1_21 = arith.constant 1 : index
    %c0_22 = arith.constant 0 : index
    %c0_23 = arith.constant 0 : index
    %25 = vector.load %arg7[%c1_20, %c1_21, %c0_22, %c0_23] : memref<4x2x8x128xbf16, #tpu.memory_space<vmem>>, vector<1x1x8x128xbf16>
    %26 = vector.shape_cast %25 : vector<1x1x8x128xbf16> to vector<8x128xbf16>
    %cst_24 = arith.constant dense<0.000000e+00> : vector<32x128xf32>
    %27 = tpu.matmul %24, %26, %cst_24 {dimension_numbers = #tpu.dot_dimension_numbers<[1], [0], [0], [1], [0, 0, 1, 1], [], []>} : vector<32x8xbf16>, vector<8x128xbf16>, vector<32x128xf32> -> vector<32x128xf32>
    %28 = arith.addf %21, %27 : vector<32x128xf32>
    %c0_25 = arith.constant 0 : index
    %c0_26 = arith.constant 0 : index
    %c0_27 = arith.constant 0 : index
    %c0_28 = arith.constant 0 : index
    %29 = vector.load %arg5[%c0_25, %c0_26, %c0_27, %c0_28] : memref<2x1x17x8xbf16, #tpu.memory_space<vmem>>, vector<2x1x17x8xbf16>
    %30 = vector.extract_strided_slice %29 {offsets = [0, 0, 0, 0], sizes = [2, 1, 16, 8], strides = [1, 1, 1, 1]} : vector<2x1x17x8xbf16> to vector<2x1x16x8xbf16>
    %31 = vector.shape_cast %30 : vector<2x1x16x8xbf16> to vector<2x16x8xbf16>
    %32 = vector.shape_cast %31 : vector<2x16x8xbf16> to vector<32x8xbf16>
    %c2 = arith.constant 2 : index
    %c0_29 = arith.constant 0 : index
    %c0_30 = arith.constant 0 : index
    %c0_31 = arith.constant 0 : index
    %33 = vector.load %arg7[%c2, %c0_29, %c0_30, %c0_31] : memref<4x2x8x128xbf16, #tpu.memory_space<vmem>>, vector<1x1x8x128xbf16>
    %34 = vector.shape_cast %33 : vector<1x1x8x128xbf16> to vector<8x128xbf16>
    %cst_32 = arith.constant dense<0.000000e+00> : vector<32x128xf32>
    %35 = tpu.matmul %32, %34, %cst_32 {dimension_numbers = #tpu.dot_dimension_numbers<[1], [0], [0], [1], [0, 0, 1, 1], [], []>} : vector<32x8xbf16>, vector<8x128xbf16>, vector<32x128xf32> -> vector<32x128xf32>
    %36 = arith.addf %28, %35 : vector<32x128xf32>
    %37 = vector.extract_strided_slice %29 {offsets = [0, 0, 1, 0], sizes = [2, 1, 16, 8], strides = [1, 1, 1, 1]} : vector<2x1x17x8xbf16> to vector<2x1x16x8xbf16>
    %38 = vector.shape_cast %37 : vector<2x1x16x8xbf16> to vector<2x16x8xbf16>
    %39 = vector.shape_cast %38 : vector<2x16x8xbf16> to vector<32x8xbf16>
    %c2_33 = arith.constant 2 : index
    %c1_34 = arith.constant 1 : index
    %c0_35 = arith.constant 0 : index
    %c0_36 = arith.constant 0 : index
    %40 = vector.load %arg7[%c2_33, %c1_34, %c0_35, %c0_36] : memref<4x2x8x128xbf16, #tpu.memory_space<vmem>>, vector<1x1x8x128xbf16>
    %41 = vector.shape_cast %40 : vector<1x1x8x128xbf16> to vector<8x128xbf16>
    %cst_37 = arith.constant dense<0.000000e+00> : vector<32x128xf32>
    %42 = tpu.matmul %39, %41, %cst_37 {dimension_numbers = #tpu.dot_dimension_numbers<[1], [0], [0], [1], [0, 0, 1, 1], [], []>} : vector<32x8xbf16>, vector<8x128xbf16>, vector<32x128xf32> -> vector<32x128xf32>
    %43 = arith.addf %36, %42 : vector<32x128xf32>
    %c0_38 = arith.constant 0 : index
    %c0_39 = arith.constant 0 : index
    %c0_40 = arith.constant 0 : index
    %c0_41 = arith.constant 0 : index
    %44 = vector.load %arg6[%c0_38, %c0_39, %c0_40, %c0_41] : memref<2x1x17x8xbf16, #tpu.memory_space<vmem>>, vector<2x1x17x8xbf16>
    %45 = vector.extract_strided_slice %44 {offsets = [0, 0, 0, 0], sizes = [2, 1, 16, 8], strides = [1, 1, 1, 1]} : vector<2x1x17x8xbf16> to vector<2x1x16x8xbf16>
    %46 = vector.shape_cast %45 : vector<2x1x16x8xbf16> to vector<2x16x8xbf16>
    %47 = vector.shape_cast %46 : vector<2x16x8xbf16> to vector<32x8xbf16>
    %c3 = arith.constant 3 : index
    %c0_42 = arith.constant 0 : index
    %c0_43 = arith.constant 0 : index
    %c0_44 = arith.constant 0 : index
    %48 = vector.load %arg7[%c3, %c0_42, %c0_43, %c0_44] : memref<4x2x8x128xbf16, #tpu.memory_space<vmem>>, vector<1x1x8x128xbf16>
    %49 = vector.shape_cast %48 : vector<1x1x8x128xbf16> to vector<8x128xbf16>
    %cst_45 = arith.constant dense<0.000000e+00> : vector<32x128xf32>
    %50 = tpu.matmul %47, %49, %cst_45 {dimension_numbers = #tpu.dot_dimension_numbers<[1], [0], [0], [1], [0, 0, 1, 1], [], []>} : vector<32x8xbf16>, vector<8x128xbf16>, vector<32x128xf32> -> vector<32x128xf32>
    %51 = arith.addf %43, %50 : vector<32x128xf32>
    %52 = vector.extract_strided_slice %44 {offsets = [0, 0, 1, 0], sizes = [2, 1, 16, 8], strides = [1, 1, 1, 1]} : vector<2x1x17x8xbf16> to vector<2x1x16x8xbf16>
    %53 = vector.shape_cast %52 : vector<2x1x16x8xbf16> to vector<2x16x8xbf16>
    %54 = vector.shape_cast %53 : vector<2x16x8xbf16> to vector<32x8xbf16>
    %c3_46 = arith.constant 3 : index
    %c1_47 = arith.constant 1 : index
    %c0_48 = arith.constant 0 : index
    %c0_49 = arith.constant 0 : index
    %55 = vector.load %arg7[%c3_46, %c1_47, %c0_48, %c0_49] : memref<4x2x8x128xbf16, #tpu.memory_space<vmem>>, vector<1x1x8x128xbf16>
    %56 = vector.shape_cast %55 : vector<1x1x8x128xbf16> to vector<8x128xbf16>
    %cst_50 = arith.constant dense<0.000000e+00> : vector<32x128xf32>
    %57 = tpu.matmul %54, %56, %cst_50 {dimension_numbers = #tpu.dot_dimension_numbers<[1], [0], [0], [1], [0, 0, 1, 1], [], []>} : vector<32x8xbf16>, vector<8x128xbf16>, vector<32x128xf32> -> vector<32x128xf32>
    %58 = arith.addf %51, %57 : vector<32x128xf32>
    %c0_51 = arith.constant 0 : index
    %c0_52 = arith.constant 0 : index
    %59 = vector.load %arg8[%c0_51, %c0_52] : memref<1x128xf32, #tpu.memory_space<vmem>>, vector<1x128xf32>
    %60 = vector.broadcast %59 : vector<1x128xf32> to vector<32x128xf32>
    %61 = arith.addf %58, %60 : vector<32x128xf32>
    %cst_53 = arith.constant 0.000000e+00 : f32
    %62 = vector.broadcast %cst_53 : f32 to vector<32x128xf32>
    %63 = arith.cmpf oge, %61, %62 : vector<32x128xf32>
    %cst_54 = arith.constant 0.00999999977 : f32
    %64 = vector.broadcast %cst_54 : f32 to vector<32x128xf32>
    %65 = arith.mulf %64, %61 : vector<32x128xf32>
    %66 = arith.select %63, %61, %65 : vector<32x128xi1>, vector<32x128xf32>
    %67 = vector.shape_cast %66 : vector<32x128xf32> to vector<2x1x16x128xf32>
    %68 = arith.truncf %67 : vector<2x1x16x128xf32> to vector<2x1x16x128xbf16>
    %c0_55 = arith.constant 0 : index
    %c0_56 = arith.constant 0 : index
    %c0_57 = arith.constant 0 : index
    %c0_58 = arith.constant 0 : index
    %69 = vector.load %arg9[%c0_55, %c0_56, %c0_57, %c0_58] : memref<2x1x16x128xbf16, #tpu.memory_space<vmem>>, vector<2x1x16x128xbf16>
    tpu.vector_store %arg9[%c0_55, %c0_56, %c0_57, %c0_58], %68 {strides = array<i32>} : memref<2x1x16x128xbf16, #tpu.memory_space<vmem>>, vector<2x1x16x128xbf16>,
    return
  }
  func.func @transform_0(%arg0: i32, %arg1: i32, %arg2: i32) -> (i32, i32, i32, i32) {
    %c2_i32 = arith.constant 2 : i32
    %0 = arith.muli %c2_i32, %arg2 : i32
    %c0_i32 = arith.constant 0 : i32
    %1 = arith.addi %0, %c0_i32 : i32
    %c0_i32_0 = arith.constant 0 : i32
    %c0_i32_1 = arith.constant 0 : i32
    %c0_i32_2 = arith.constant 0 : i32
    return %arg1, %1, %c0_i32_0, %c0_i32_1 : i32, i32, i32, i32
  }
  func.func @transform_1(%arg0: i32, %arg1: i32, %arg2: i32) -> (i32, i32, i32, i32) {
    %c2_i32 = arith.constant 2 : i32
    %0 = arith.muli %c2_i32, %arg2 : i32
    %c1_i32 = arith.constant 1 : i32
    %1 = arith.addi %0, %c1_i32 : i32
    %c0_i32 = arith.constant 0 : i32
    %c0_i32_0 = arith.constant 0 : i32
    %c0_i32_1 = arith.constant 0 : i32
    return %arg1, %1, %c0_i32, %c0_i32_0 : i32, i32, i32, i32
  }
  func.func @transform_2(%arg0: i32, %arg1: i32, %arg2: i32) -> (i32, i32, i32, i32) {
    %c2_i32 = arith.constant 2 : i32
    %0 = arith.muli %c2_i32, %arg2 : i32
    %c2_i32_0 = arith.constant 2 : i32
    %1 = arith.addi %0, %c2_i32_0 : i32
    %c0_i32 = arith.constant 0 : i32
    %c0_i32_1 = arith.constant 0 : i32
    %c0_i32_2 = arith.constant 0 : i32
    return %arg1, %1, %c0_i32, %c0_i32_1 : i32, i32, i32, i32
  }
  func.func @transform_3(%arg0: i32, %arg1: i32, %arg2: i32) -> (i32, i32, i32, i32) {
    %c2_i32 = arith.constant 2 : i32
    %0 = arith.muli %c2_i32, %arg2 : i32
    %c3_i32 = arith.constant 3 : i32
    %1 = arith.addi %0, %c3_i32 : i32
    %c0_i32 = arith.constant 0 : i32
    %c0_i32_0 = arith.constant 0 : i32
    %c0_i32_1 = arith.constant 0 : i32
    return %arg1, %1, %c0_i32, %c0_i32_0 : i32, i32, i32, i32
  }
  func.func @transform_4(%arg0: i32, %arg1: i32, %arg2: i32) -> (i32, i32, i32, i32) {
    %c0_i32 = arith.constant 0 : i32
    %c0_i32_0 = arith.constant 0 : i32
    %c0_i32_1 = arith.constant 0 : i32
    %c0_i32_2 = arith.constant 0 : i32
    return %c0_i32, %c0_i32_0, %c0_i32_1, %arg0 : i32, i32, i32, i32
  }
  func.func @transform_5(%arg0: i32, %arg1: i32, %arg2: i32) -> (i32, i32) {
    %c0_i32 = arith.constant 0 : i32
    %c0_i32_0 = arith.constant 0 : i32
    return %c0_i32, %arg0 : i32, i32
  }
  func.func @transform_6(%arg0: i32, %arg1: i32, %arg2: i32) -> (i32, i32, i32, i32) {
    %c0_i32 = arith.constant 0 : i32
    %c0_i32_0 = arith.constant 0 : i32
    return %arg1, %arg2, %c0_i32, %arg0 : i32, i32, i32, i32
  }
}

module attributes {stable_mosaic.version = 11 : i64} {
  func.func @_conv_bn_lrelu_kernel(%arg0: i32, %arg1: i32, %arg2: i32, %arg3: memref<2x1x9x256xbf16, #tpu.memory_space<vmem>>, %arg4: memref<2x1x9x256xbf16, #tpu.memory_space<vmem>>, %arg5: memref<2x1x9x256xbf16, #tpu.memory_space<vmem>>, %arg6: memref<2x1x9x256xbf16, #tpu.memory_space<vmem>>, %arg7: memref<4x2x256x128xbf16, #tpu.memory_space<vmem>>, %arg8: memref<1x128xf32, #tpu.memory_space<vmem>>, %arg9: memref<2x1x8x128xbf16, #tpu.memory_space<vmem>>) attributes {dimension_semantics = [#tpu.dimension_semantics<parallel>, #tpu.dimension_semantics<parallel>, #tpu.dimension_semantics<parallel>], iteration_bounds = array<i64: 1, 1, 8>, scalar_prefetch = 0 : i64, scratch_operands = 0 : i64, tpu.core_type = #tpu.core_type<tc>, window_params = [{transform_indices = @transform_0, window_bounds = array<i64: 2, 1, 9, 256>}, {transform_indices = @transform_1, window_bounds = array<i64: 2, 1, 9, 256>}, {transform_indices = @transform_2, window_bounds = array<i64: 2, 1, 9, 256>}, {transform_indices = @transform_3, window_bounds = array<i64: 2, 1, 9, 256>}, {transform_indices = @transform_4, window_bounds = array<i64: 4, 2, 256, 128>}, {transform_indices = @transform_5, window_bounds = array<i64: 1, 128>}, {transform_indices = @transform_6, window_bounds = array<i64: 2, 1, 8, 128>}]} {
    %c0 = arith.constant 0 : index
    %c0_0 = arith.constant 0 : index
    %c0_1 = arith.constant 0 : index
    %c0_2 = arith.constant 0 : index
    %0 = vector.load %arg3[%c0, %c0_0, %c0_1, %c0_2] : memref<2x1x9x256xbf16, #tpu.memory_space<vmem>>, vector<2x1x9x256xbf16>
    %1 = vector.extract_strided_slice %0 {offsets = [0, 0, 0, 0], sizes = [2, 1, 8, 256], strides = [1, 1, 1, 1]} : vector<2x1x9x256xbf16> to vector<2x1x8x256xbf16>
    %2 = vector.shape_cast %1 : vector<2x1x8x256xbf16> to vector<2x8x256xbf16>
    %3 = vector.shape_cast %2 : vector<2x8x256xbf16> to vector<16x256xbf16>
    %c0_3 = arith.constant 0 : index
    %c0_4 = arith.constant 0 : index
    %c0_5 = arith.constant 0 : index
    %c0_6 = arith.constant 0 : index
    %4 = vector.load %arg7[%c0_3, %c0_4, %c0_5, %c0_6] : memref<4x2x256x128xbf16, #tpu.memory_space<vmem>>, vector<1x1x256x128xbf16>
    %5 = vector.shape_cast %4 : vector<1x1x256x128xbf16> to vector<256x128xbf16>
    %cst = arith.constant dense<0.000000e+00> : vector<16x128xf32>
    %6 = tpu.matmul %3, %5, %cst {dimension_numbers = #tpu.dot_dimension_numbers<[1], [0], [0], [1], [0, 0, 1, 1], [], []>} : vector<16x256xbf16>, vector<256x128xbf16>, vector<16x128xf32> -> vector<16x128xf32>
    %7 = vector.extract_strided_slice %0 {offsets = [0, 0, 1, 0], sizes = [2, 1, 8, 256], strides = [1, 1, 1, 1]} : vector<2x1x9x256xbf16> to vector<2x1x8x256xbf16>
    %8 = vector.shape_cast %7 : vector<2x1x8x256xbf16> to vector<2x8x256xbf16>
    %9 = vector.shape_cast %8 : vector<2x8x256xbf16> to vector<16x256xbf16>
    %c0_7 = arith.constant 0 : index
    %c1 = arith.constant 1 : index
    %c0_8 = arith.constant 0 : index
    %c0_9 = arith.constant 0 : index
    %10 = vector.load %arg7[%c0_7, %c1, %c0_8, %c0_9] : memref<4x2x256x128xbf16, #tpu.memory_space<vmem>>, vector<1x1x256x128xbf16>
    %11 = vector.shape_cast %10 : vector<1x1x256x128xbf16> to vector<256x128xbf16>
    %cst_10 = arith.constant dense<0.000000e+00> : vector<16x128xf32>
    %12 = tpu.matmul %9, %11, %cst_10 {dimension_numbers = #tpu.dot_dimension_numbers<[1], [0], [0], [1], [0, 0, 1, 1], [], []>} : vector<16x256xbf16>, vector<256x128xbf16>, vector<16x128xf32> -> vector<16x128xf32>
    %13 = arith.addf %6, %12 : vector<16x128xf32>
    %c0_11 = arith.constant 0 : index
    %c0_12 = arith.constant 0 : index
    %c0_13 = arith.constant 0 : index
    %c0_14 = arith.constant 0 : index
    %14 = vector.load %arg4[%c0_11, %c0_12, %c0_13, %c0_14] : memref<2x1x9x256xbf16, #tpu.memory_space<vmem>>, vector<2x1x9x256xbf16>
    %15 = vector.extract_strided_slice %14 {offsets = [0, 0, 0, 0], sizes = [2, 1, 8, 256], strides = [1, 1, 1, 1]} : vector<2x1x9x256xbf16> to vector<2x1x8x256xbf16>
    %16 = vector.shape_cast %15 : vector<2x1x8x256xbf16> to vector<2x8x256xbf16>
    %17 = vector.shape_cast %16 : vector<2x8x256xbf16> to vector<16x256xbf16>
    %c1_15 = arith.constant 1 : index
    %c0_16 = arith.constant 0 : index
    %c0_17 = arith.constant 0 : index
    %c0_18 = arith.constant 0 : index
    %18 = vector.load %arg7[%c1_15, %c0_16, %c0_17, %c0_18] : memref<4x2x256x128xbf16, #tpu.memory_space<vmem>>, vector<1x1x256x128xbf16>
    %19 = vector.shape_cast %18 : vector<1x1x256x128xbf16> to vector<256x128xbf16>
    %cst_19 = arith.constant dense<0.000000e+00> : vector<16x128xf32>
    %20 = tpu.matmul %17, %19, %cst_19 {dimension_numbers = #tpu.dot_dimension_numbers<[1], [0], [0], [1], [0, 0, 1, 1], [], []>} : vector<16x256xbf16>, vector<256x128xbf16>, vector<16x128xf32> -> vector<16x128xf32>
    %21 = arith.addf %13, %20 : vector<16x128xf32>
    %22 = vector.extract_strided_slice %14 {offsets = [0, 0, 1, 0], sizes = [2, 1, 8, 256], strides = [1, 1, 1, 1]} : vector<2x1x9x256xbf16> to vector<2x1x8x256xbf16>
    %23 = vector.shape_cast %22 : vector<2x1x8x256xbf16> to vector<2x8x256xbf16>
    %24 = vector.shape_cast %23 : vector<2x8x256xbf16> to vector<16x256xbf16>
    %c1_20 = arith.constant 1 : index
    %c1_21 = arith.constant 1 : index
    %c0_22 = arith.constant 0 : index
    %c0_23 = arith.constant 0 : index
    %25 = vector.load %arg7[%c1_20, %c1_21, %c0_22, %c0_23] : memref<4x2x256x128xbf16, #tpu.memory_space<vmem>>, vector<1x1x256x128xbf16>
    %26 = vector.shape_cast %25 : vector<1x1x256x128xbf16> to vector<256x128xbf16>
    %cst_24 = arith.constant dense<0.000000e+00> : vector<16x128xf32>
    %27 = tpu.matmul %24, %26, %cst_24 {dimension_numbers = #tpu.dot_dimension_numbers<[1], [0], [0], [1], [0, 0, 1, 1], [], []>} : vector<16x256xbf16>, vector<256x128xbf16>, vector<16x128xf32> -> vector<16x128xf32>
    %28 = arith.addf %21, %27 : vector<16x128xf32>
    %c0_25 = arith.constant 0 : index
    %c0_26 = arith.constant 0 : index
    %c0_27 = arith.constant 0 : index
    %c0_28 = arith.constant 0 : index
    %29 = vector.load %arg5[%c0_25, %c0_26, %c0_27, %c0_28] : memref<2x1x9x256xbf16, #tpu.memory_space<vmem>>, vector<2x1x9x256xbf16>
    %30 = vector.extract_strided_slice %29 {offsets = [0, 0, 0, 0], sizes = [2, 1, 8, 256], strides = [1, 1, 1, 1]} : vector<2x1x9x256xbf16> to vector<2x1x8x256xbf16>
    %31 = vector.shape_cast %30 : vector<2x1x8x256xbf16> to vector<2x8x256xbf16>
    %32 = vector.shape_cast %31 : vector<2x8x256xbf16> to vector<16x256xbf16>
    %c2 = arith.constant 2 : index
    %c0_29 = arith.constant 0 : index
    %c0_30 = arith.constant 0 : index
    %c0_31 = arith.constant 0 : index
    %33 = vector.load %arg7[%c2, %c0_29, %c0_30, %c0_31] : memref<4x2x256x128xbf16, #tpu.memory_space<vmem>>, vector<1x1x256x128xbf16>
    %34 = vector.shape_cast %33 : vector<1x1x256x128xbf16> to vector<256x128xbf16>
    %cst_32 = arith.constant dense<0.000000e+00> : vector<16x128xf32>
    %35 = tpu.matmul %32, %34, %cst_32 {dimension_numbers = #tpu.dot_dimension_numbers<[1], [0], [0], [1], [0, 0, 1, 1], [], []>} : vector<16x256xbf16>, vector<256x128xbf16>, vector<16x128xf32> -> vector<16x128xf32>
    %36 = arith.addf %28, %35 : vector<16x128xf32>
    %37 = vector.extract_strided_slice %29 {offsets = [0, 0, 1, 0], sizes = [2, 1, 8, 256], strides = [1, 1, 1, 1]} : vector<2x1x9x256xbf16> to vector<2x1x8x256xbf16>
    %38 = vector.shape_cast %37 : vector<2x1x8x256xbf16> to vector<2x8x256xbf16>
    %39 = vector.shape_cast %38 : vector<2x8x256xbf16> to vector<16x256xbf16>
    %c2_33 = arith.constant 2 : index
    %c1_34 = arith.constant 1 : index
    %c0_35 = arith.constant 0 : index
    %c0_36 = arith.constant 0 : index
    %40 = vector.load %arg7[%c2_33, %c1_34, %c0_35, %c0_36] : memref<4x2x256x128xbf16, #tpu.memory_space<vmem>>, vector<1x1x256x128xbf16>
    %41 = vector.shape_cast %40 : vector<1x1x256x128xbf16> to vector<256x128xbf16>
    %cst_37 = arith.constant dense<0.000000e+00> : vector<16x128xf32>
    %42 = tpu.matmul %39, %41, %cst_37 {dimension_numbers = #tpu.dot_dimension_numbers<[1], [0], [0], [1], [0, 0, 1, 1], [], []>} : vector<16x256xbf16>, vector<256x128xbf16>, vector<16x128xf32> -> vector<16x128xf32>
    %43 = arith.addf %36, %42 : vector<16x128xf32>
    %c0_38 = arith.constant 0 : index
    %c0_39 = arith.constant 0 : index
    %c0_40 = arith.constant 0 : index
    %c0_41 = arith.constant 0 : index
    %44 = vector.load %arg6[%c0_38, %c0_39, %c0_40, %c0_41] : memref<2x1x9x256xbf16, #tpu.memory_space<vmem>>, vector<2x1x9x256xbf16>
    %45 = vector.extract_strided_slice %44 {offsets = [0, 0, 0, 0], sizes = [2, 1, 8, 256], strides = [1, 1, 1, 1]} : vector<2x1x9x256xbf16> to vector<2x1x8x256xbf16>
    %46 = vector.shape_cast %45 : vector<2x1x8x256xbf16> to vector<2x8x256xbf16>
    %47 = vector.shape_cast %46 : vector<2x8x256xbf16> to vector<16x256xbf16>
    %c3 = arith.constant 3 : index
    %c0_42 = arith.constant 0 : index
    %c0_43 = arith.constant 0 : index
    %c0_44 = arith.constant 0 : index
    %48 = vector.load %arg7[%c3, %c0_42, %c0_43, %c0_44] : memref<4x2x256x128xbf16, #tpu.memory_space<vmem>>, vector<1x1x256x128xbf16>
    %49 = vector.shape_cast %48 : vector<1x1x256x128xbf16> to vector<256x128xbf16>
    %cst_45 = arith.constant dense<0.000000e+00> : vector<16x128xf32>
    %50 = tpu.matmul %47, %49, %cst_45 {dimension_numbers = #tpu.dot_dimension_numbers<[1], [0], [0], [1], [0, 0, 1, 1], [], []>} : vector<16x256xbf16>, vector<256x128xbf16>, vector<16x128xf32> -> vector<16x128xf32>
    %51 = arith.addf %43, %50 : vector<16x128xf32>
    %52 = vector.extract_strided_slice %44 {offsets = [0, 0, 1, 0], sizes = [2, 1, 8, 256], strides = [1, 1, 1, 1]} : vector<2x1x9x256xbf16> to vector<2x1x8x256xbf16>
    %53 = vector.shape_cast %52 : vector<2x1x8x256xbf16> to vector<2x8x256xbf16>
    %54 = vector.shape_cast %53 : vector<2x8x256xbf16> to vector<16x256xbf16>
    %c3_46 = arith.constant 3 : index
    %c1_47 = arith.constant 1 : index
    %c0_48 = arith.constant 0 : index
    %c0_49 = arith.constant 0 : index
    %55 = vector.load %arg7[%c3_46, %c1_47, %c0_48, %c0_49] : memref<4x2x256x128xbf16, #tpu.memory_space<vmem>>, vector<1x1x256x128xbf16>
    %56 = vector.shape_cast %55 : vector<1x1x256x128xbf16> to vector<256x128xbf16>
    %cst_50 = arith.constant dense<0.000000e+00> : vector<16x128xf32>
    %57 = tpu.matmul %54, %56, %cst_50 {dimension_numbers = #tpu.dot_dimension_numbers<[1], [0], [0], [1], [0, 0, 1, 1], [], []>} : vector<16x256xbf16>, vector<256x128xbf16>, vector<16x128xf32> -> vector<16x128xf32>
    %58 = arith.addf %51, %57 : vector<16x128xf32>
    %c0_51 = arith.constant 0 : index
    %c0_52 = arith.constant 0 : index
    %59 = vector.load %arg8[%c0_51, %c0_52] : memref<1x128xf32, #tpu.memory_space<vmem>>, vector<1x128xf32>
    %60 = vector.broadcast %59 : vector<1x128xf32> to vector<16x128xf32>
    %61 = arith.addf %58, %60 : vector<16x128xf32>
    %cst_53 = arith.constant 0.000000e+00 : f32
    %62 = vector.broadcast %cst_53 : f32 to vector<16x128xf32>
    %63 = arith.cmpf oge, %61, %62 : vector<16x128xf32>
    %cst_54 = arith.constant 0.00999999977 : f32
    %64 = vector.broadcast %cst_54 : f32 to vector<16x128xf32>
    %65 = arith.mulf %64, %61 : vector<16x128xf32>
    %66 = arith.select %63, %61, %65 : vector<16x128xi1>, vector<16x128xf32>
    %67 = vector.shape_cast %66 : vector<16x128xf32> to vector<2x1x8x128xf32>
    %68 = arith.truncf %67 : vector<2x1x8x128xf32> to vector<2x1x8x128xbf16>
    %c0_55 = arith.constant 0 : index
    %c0_56 = arith.constant 0 : index
    %c0_57 = arith.constant 0 : index
    %c0_58 = arith.constant 0 : index
    %69 = vector.load %arg9[%c0_55, %c0_56, %c0_57, %c0_58] : memref<2x1x8x128xbf16, #tpu.memory_space<vmem>>, vector<2x1x8x128xbf16>
    tpu.vector_store %arg9[%c0_55, %c0_56, %c0_57, %c0_58], %68 {strides = array<i32>} : memref<2x1x8x128xbf16, #tpu.memory_space<vmem>>, vector<2x1x8x128xbf16>,
    return
  }
  func.func @transform_0(%arg0: i32, %arg1: i32, %arg2: i32) -> (i32, i32, i32, i32) {
    %c2_i32 = arith.constant 2 : i32
    %0 = arith.muli %c2_i32, %arg2 : i32
    %c0_i32 = arith.constant 0 : i32
    %1 = arith.addi %0, %c0_i32 : i32
    %c0_i32_0 = arith.constant 0 : i32
    %c0_i32_1 = arith.constant 0 : i32
    %c0_i32_2 = arith.constant 0 : i32
    return %arg1, %1, %c0_i32_0, %c0_i32_1 : i32, i32, i32, i32
  }
  func.func @transform_1(%arg0: i32, %arg1: i32, %arg2: i32) -> (i32, i32, i32, i32) {
    %c2_i32 = arith.constant 2 : i32
    %0 = arith.muli %c2_i32, %arg2 : i32
    %c1_i32 = arith.constant 1 : i32
    %1 = arith.addi %0, %c1_i32 : i32
    %c0_i32 = arith.constant 0 : i32
    %c0_i32_0 = arith.constant 0 : i32
    %c0_i32_1 = arith.constant 0 : i32
    return %arg1, %1, %c0_i32, %c0_i32_0 : i32, i32, i32, i32
  }
  func.func @transform_2(%arg0: i32, %arg1: i32, %arg2: i32) -> (i32, i32, i32, i32) {
    %c2_i32 = arith.constant 2 : i32
    %0 = arith.muli %c2_i32, %arg2 : i32
    %c2_i32_0 = arith.constant 2 : i32
    %1 = arith.addi %0, %c2_i32_0 : i32
    %c0_i32 = arith.constant 0 : i32
    %c0_i32_1 = arith.constant 0 : i32
    %c0_i32_2 = arith.constant 0 : i32
    return %arg1, %1, %c0_i32, %c0_i32_1 : i32, i32, i32, i32
  }
  func.func @transform_3(%arg0: i32, %arg1: i32, %arg2: i32) -> (i32, i32, i32, i32) {
    %c2_i32 = arith.constant 2 : i32
    %0 = arith.muli %c2_i32, %arg2 : i32
    %c3_i32 = arith.constant 3 : i32
    %1 = arith.addi %0, %c3_i32 : i32
    %c0_i32 = arith.constant 0 : i32
    %c0_i32_0 = arith.constant 0 : i32
    %c0_i32_1 = arith.constant 0 : i32
    return %arg1, %1, %c0_i32, %c0_i32_0 : i32, i32, i32, i32
  }
  func.func @transform_4(%arg0: i32, %arg1: i32, %arg2: i32) -> (i32, i32, i32, i32) {
    %c0_i32 = arith.constant 0 : i32
    %c0_i32_0 = arith.constant 0 : i32
    %c0_i32_1 = arith.constant 0 : i32
    %c0_i32_2 = arith.constant 0 : i32
    return %c0_i32, %c0_i32_0, %c0_i32_1, %arg0 : i32, i32, i32, i32
  }
  func.func @transform_5(%arg0: i32, %arg1: i32, %arg2: i32) -> (i32, i32) {
    %c0_i32 = arith.constant 0 : i32
    %c0_i32_0 = arith.constant 0 : i32
    return %c0_i32, %arg0 : i32, i32
  }
  func.func @transform_6(%arg0: i32, %arg1: i32, %arg2: i32) -> (i32, i32, i32, i32) {
    %c0_i32 = arith.constant 0 : i32
    %c0_i32_0 = arith.constant 0 : i32
    return %arg1, %arg2, %c0_i32, %arg0 : i32, i32, i32, i32
  }
}

module attributes {stable_mosaic.version = 11 : i64} {
  func.func @_conv_bn_lrelu_kernel(%arg0: i32, %arg1: i32, %arg2: i32, %arg3: memref<2x1x10x128xbf16, #tpu.memory_space<vmem>>, %arg4: memref<2x1x10x128xbf16, #tpu.memory_space<vmem>>, %arg5: memref<2x1x10x128xbf16, #tpu.memory_space<vmem>>, %arg6: memref<3x3x128x128xbf16, #tpu.memory_space<vmem>>, %arg7: memref<1x128xf32, #tpu.memory_space<vmem>>, %arg8: memref<2x1x8x128xbf16, #tpu.memory_space<vmem>>) attributes {dimension_semantics = [#tpu.dimension_semantics<parallel>, #tpu.dimension_semantics<parallel>, #tpu.dimension_semantics<parallel>], iteration_bounds = array<i64: 1, 1, 8>, scalar_prefetch = 0 : i64, scratch_operands = 0 : i64, tpu.core_type = #tpu.core_type<tc>, window_params = [{transform_indices = @transform_0, window_bounds = array<i64: 2, 1, 10, 128>}, {transform_indices = @transform_1, window_bounds = array<i64: 2, 1, 10, 128>}, {transform_indices = @transform_2, window_bounds = array<i64: 2, 1, 10, 128>}, {transform_indices = @transform_3, window_bounds = array<i64: 3, 3, 128, 128>}, {transform_indices = @transform_4, window_bounds = array<i64: 1, 128>}, {transform_indices = @transform_5, window_bounds = array<i64: 2, 1, 8, 128>}]} {
    %c0 = arith.constant 0 : index
    %c0_0 = arith.constant 0 : index
    %c0_1 = arith.constant 0 : index
    %c0_2 = arith.constant 0 : index
    %0 = vector.load %arg3[%c0, %c0_0, %c0_1, %c0_2] : memref<2x1x10x128xbf16, #tpu.memory_space<vmem>>, vector<2x1x10x128xbf16>
    %1 = vector.extract_strided_slice %0 {offsets = [0, 0, 0, 0], sizes = [2, 1, 8, 128], strides = [1, 1, 1, 1]} : vector<2x1x10x128xbf16> to vector<2x1x8x128xbf16>
    %2 = vector.shape_cast %1 : vector<2x1x8x128xbf16> to vector<2x8x128xbf16>
    %3 = vector.shape_cast %2 : vector<2x8x128xbf16> to vector<16x128xbf16>
    %c0_3 = arith.constant 0 : index
    %c0_4 = arith.constant 0 : index
    %c0_5 = arith.constant 0 : index
    %c0_6 = arith.constant 0 : index
    %4 = vector.load %arg6[%c0_3, %c0_4, %c0_5, %c0_6] : memref<3x3x128x128xbf16, #tpu.memory_space<vmem>>, vector<1x1x128x128xbf16>
    %5 = vector.shape_cast %4 : vector<1x1x128x128xbf16> to vector<128x128xbf16>
    %cst = arith.constant dense<0.000000e+00> : vector<16x128xf32>
    %6 = tpu.matmul %3, %5, %cst {dimension_numbers = #tpu.dot_dimension_numbers<[1], [0], [0], [1], [0, 0, 1, 1], [], []>} : vector<16x128xbf16>, vector<128x128xbf16>, vector<16x128xf32> -> vector<16x128xf32>
    %7 = vector.extract_strided_slice %0 {offsets = [0, 0, 1, 0], sizes = [2, 1, 8, 128], strides = [1, 1, 1, 1]} : vector<2x1x10x128xbf16> to vector<2x1x8x128xbf16>
    %8 = vector.shape_cast %7 : vector<2x1x8x128xbf16> to vector<2x8x128xbf16>
    %9 = vector.shape_cast %8 : vector<2x8x128xbf16> to vector<16x128xbf16>
    %c0_7 = arith.constant 0 : index
    %c1 = arith.constant 1 : index
    %c0_8 = arith.constant 0 : index
    %c0_9 = arith.constant 0 : index
    %10 = vector.load %arg6[%c0_7, %c1, %c0_8, %c0_9] : memref<3x3x128x128xbf16, #tpu.memory_space<vmem>>, vector<1x1x128x128xbf16>
    %11 = vector.shape_cast %10 : vector<1x1x128x128xbf16> to vector<128x128xbf16>
    %cst_10 = arith.constant dense<0.000000e+00> : vector<16x128xf32>
    %12 = tpu.matmul %9, %11, %cst_10 {dimension_numbers = #tpu.dot_dimension_numbers<[1], [0], [0], [1], [0, 0, 1, 1], [], []>} : vector<16x128xbf16>, vector<128x128xbf16>, vector<16x128xf32> -> vector<16x128xf32>
    %13 = arith.addf %6, %12 : vector<16x128xf32>
    %14 = vector.extract_strided_slice %0 {offsets = [0, 0, 2, 0], sizes = [2, 1, 8, 128], strides = [1, 1, 1, 1]} : vector<2x1x10x128xbf16> to vector<2x1x8x128xbf16>
    %15 = vector.shape_cast %14 : vector<2x1x8x128xbf16> to vector<2x8x128xbf16>
    %16 = vector.shape_cast %15 : vector<2x8x128xbf16> to vector<16x128xbf16>
    %c0_11 = arith.constant 0 : index
    %c2 = arith.constant 2 : index
    %c0_12 = arith.constant 0 : index
    %c0_13 = arith.constant 0 : index
    %17 = vector.load %arg6[%c0_11, %c2, %c0_12, %c0_13] : memref<3x3x128x128xbf16, #tpu.memory_space<vmem>>, vector<1x1x128x128xbf16>
    %18 = vector.shape_cast %17 : vector<1x1x128x128xbf16> to vector<128x128xbf16>
    %cst_14 = arith.constant dense<0.000000e+00> : vector<16x128xf32>
    %19 = tpu.matmul %16, %18, %cst_14 {dimension_numbers = #tpu.dot_dimension_numbers<[1], [0], [0], [1], [0, 0, 1, 1], [], []>} : vector<16x128xbf16>, vector<128x128xbf16>, vector<16x128xf32> -> vector<16x128xf32>
    %20 = arith.addf %13, %19 : vector<16x128xf32>
    %c0_15 = arith.constant 0 : index
    %c0_16 = arith.constant 0 : index
    %c0_17 = arith.constant 0 : index
    %c0_18 = arith.constant 0 : index
    %21 = vector.load %arg4[%c0_15, %c0_16, %c0_17, %c0_18] : memref<2x1x10x128xbf16, #tpu.memory_space<vmem>>, vector<2x1x10x128xbf16>
    %22 = vector.extract_strided_slice %21 {offsets = [0, 0, 0, 0], sizes = [2, 1, 8, 128], strides = [1, 1, 1, 1]} : vector<2x1x10x128xbf16> to vector<2x1x8x128xbf16>
    %23 = vector.shape_cast %22 : vector<2x1x8x128xbf16> to vector<2x8x128xbf16>
    %24 = vector.shape_cast %23 : vector<2x8x128xbf16> to vector<16x128xbf16>
    %c1_19 = arith.constant 1 : index
    %c0_20 = arith.constant 0 : index
    %c0_21 = arith.constant 0 : index
    %c0_22 = arith.constant 0 : index
    %25 = vector.load %arg6[%c1_19, %c0_20, %c0_21, %c0_22] : memref<3x3x128x128xbf16, #tpu.memory_space<vmem>>, vector<1x1x128x128xbf16>
    %26 = vector.shape_cast %25 : vector<1x1x128x128xbf16> to vector<128x128xbf16>
    %cst_23 = arith.constant dense<0.000000e+00> : vector<16x128xf32>
    %27 = tpu.matmul %24, %26, %cst_23 {dimension_numbers = #tpu.dot_dimension_numbers<[1], [0], [0], [1], [0, 0, 1, 1], [], []>} : vector<16x128xbf16>, vector<128x128xbf16>, vector<16x128xf32> -> vector<16x128xf32>
    %28 = arith.addf %20, %27 : vector<16x128xf32>
    %29 = vector.extract_strided_slice %21 {offsets = [0, 0, 1, 0], sizes = [2, 1, 8, 128], strides = [1, 1, 1, 1]} : vector<2x1x10x128xbf16> to vector<2x1x8x128xbf16>
    %30 = vector.shape_cast %29 : vector<2x1x8x128xbf16> to vector<2x8x128xbf16>
    %31 = vector.shape_cast %30 : vector<2x8x128xbf16> to vector<16x128xbf16>
    %c1_24 = arith.constant 1 : index
    %c1_25 = arith.constant 1 : index
    %c0_26 = arith.constant 0 : index
    %c0_27 = arith.constant 0 : index
    %32 = vector.load %arg6[%c1_24, %c1_25, %c0_26, %c0_27] : memref<3x3x128x128xbf16, #tpu.memory_space<vmem>>, vector<1x1x128x128xbf16>
    %33 = vector.shape_cast %32 : vector<1x1x128x128xbf16> to vector<128x128xbf16>
    %cst_28 = arith.constant dense<0.000000e+00> : vector<16x128xf32>
    %34 = tpu.matmul %31, %33, %cst_28 {dimension_numbers = #tpu.dot_dimension_numbers<[1], [0], [0], [1], [0, 0, 1, 1], [], []>} : vector<16x128xbf16>, vector<128x128xbf16>, vector<16x128xf32> -> vector<16x128xf32>
    %35 = arith.addf %28, %34 : vector<16x128xf32>
    %36 = vector.extract_strided_slice %21 {offsets = [0, 0, 2, 0], sizes = [2, 1, 8, 128], strides = [1, 1, 1, 1]} : vector<2x1x10x128xbf16> to vector<2x1x8x128xbf16>
    %37 = vector.shape_cast %36 : vector<2x1x8x128xbf16> to vector<2x8x128xbf16>
    %38 = vector.shape_cast %37 : vector<2x8x128xbf16> to vector<16x128xbf16>
    %c1_29 = arith.constant 1 : index
    %c2_30 = arith.constant 2 : index
    %c0_31 = arith.constant 0 : index
    %c0_32 = arith.constant 0 : index
    %39 = vector.load %arg6[%c1_29, %c2_30, %c0_31, %c0_32] : memref<3x3x128x128xbf16, #tpu.memory_space<vmem>>, vector<1x1x128x128xbf16>
    %40 = vector.shape_cast %39 : vector<1x1x128x128xbf16> to vector<128x128xbf16>
    %cst_33 = arith.constant dense<0.000000e+00> : vector<16x128xf32>
    %41 = tpu.matmul %38, %40, %cst_33 {dimension_numbers = #tpu.dot_dimension_numbers<[1], [0], [0], [1], [0, 0, 1, 1], [], []>} : vector<16x128xbf16>, vector<128x128xbf16>, vector<16x128xf32> -> vector<16x128xf32>
    %42 = arith.addf %35, %41 : vector<16x128xf32>
    %c0_34 = arith.constant 0 : index
    %c0_35 = arith.constant 0 : index
    %c0_36 = arith.constant 0 : index
    %c0_37 = arith.constant 0 : index
    %43 = vector.load %arg5[%c0_34, %c0_35, %c0_36, %c0_37] : memref<2x1x10x128xbf16, #tpu.memory_space<vmem>>, vector<2x1x10x128xbf16>
    %44 = vector.extract_strided_slice %43 {offsets = [0, 0, 0, 0], sizes = [2, 1, 8, 128], strides = [1, 1, 1, 1]} : vector<2x1x10x128xbf16> to vector<2x1x8x128xbf16>
    %45 = vector.shape_cast %44 : vector<2x1x8x128xbf16> to vector<2x8x128xbf16>
    %46 = vector.shape_cast %45 : vector<2x8x128xbf16> to vector<16x128xbf16>
    %c2_38 = arith.constant 2 : index
    %c0_39 = arith.constant 0 : index
    %c0_40 = arith.constant 0 : index
    %c0_41 = arith.constant 0 : index
    %47 = vector.load %arg6[%c2_38, %c0_39, %c0_40, %c0_41] : memref<3x3x128x128xbf16, #tpu.memory_space<vmem>>, vector<1x1x128x128xbf16>
    %48 = vector.shape_cast %47 : vector<1x1x128x128xbf16> to vector<128x128xbf16>
    %cst_42 = arith.constant dense<0.000000e+00> : vector<16x128xf32>
    %49 = tpu.matmul %46, %48, %cst_42 {dimension_numbers = #tpu.dot_dimension_numbers<[1], [0], [0], [1], [0, 0, 1, 1], [], []>} : vector<16x128xbf16>, vector<128x128xbf16>, vector<16x128xf32> -> vector<16x128xf32>
    %50 = arith.addf %42, %49 : vector<16x128xf32>
    %51 = vector.extract_strided_slice %43 {offsets = [0, 0, 1, 0], sizes = [2, 1, 8, 128], strides = [1, 1, 1, 1]} : vector<2x1x10x128xbf16> to vector<2x1x8x128xbf16>
    %52 = vector.shape_cast %51 : vector<2x1x8x128xbf16> to vector<2x8x128xbf16>
    %53 = vector.shape_cast %52 : vector<2x8x128xbf16> to vector<16x128xbf16>
    %c2_43 = arith.constant 2 : index
    %c1_44 = arith.constant 1 : index
    %c0_45 = arith.constant 0 : index
    %c0_46 = arith.constant 0 : index
    %54 = vector.load %arg6[%c2_43, %c1_44, %c0_45, %c0_46] : memref<3x3x128x128xbf16, #tpu.memory_space<vmem>>, vector<1x1x128x128xbf16>
    %55 = vector.shape_cast %54 : vector<1x1x128x128xbf16> to vector<128x128xbf16>
    %cst_47 = arith.constant dense<0.000000e+00> : vector<16x128xf32>
    %56 = tpu.matmul %53, %55, %cst_47 {dimension_numbers = #tpu.dot_dimension_numbers<[1], [0], [0], [1], [0, 0, 1, 1], [], []>} : vector<16x128xbf16>, vector<128x128xbf16>, vector<16x128xf32> -> vector<16x128xf32>
    %57 = arith.addf %50, %56 : vector<16x128xf32>
    %58 = vector.extract_strided_slice %43 {offsets = [0, 0, 2, 0], sizes = [2, 1, 8, 128], strides = [1, 1, 1, 1]} : vector<2x1x10x128xbf16> to vector<2x1x8x128xbf16>
    %59 = vector.shape_cast %58 : vector<2x1x8x128xbf16> to vector<2x8x128xbf16>
    %60 = vector.shape_cast %59 : vector<2x8x128xbf16> to vector<16x128xbf16>
    %c2_48 = arith.constant 2 : index
    %c2_49 = arith.constant 2 : index
    %c0_50 = arith.constant 0 : index
    %c0_51 = arith.constant 0 : index
    %61 = vector.load %arg6[%c2_48, %c2_49, %c0_50, %c0_51] : memref<3x3x128x128xbf16, #tpu.memory_space<vmem>>, vector<1x1x128x128xbf16>
    %62 = vector.shape_cast %61 : vector<1x1x128x128xbf16> to vector<128x128xbf16>
    %cst_52 = arith.constant dense<0.000000e+00> : vector<16x128xf32>
    %63 = tpu.matmul %60, %62, %cst_52 {dimension_numbers = #tpu.dot_dimension_numbers<[1], [0], [0], [1], [0, 0, 1, 1], [], []>} : vector<16x128xbf16>, vector<128x128xbf16>, vector<16x128xf32> -> vector<16x128xf32>
    %64 = arith.addf %57, %63 : vector<16x128xf32>
    %c0_53 = arith.constant 0 : index
    %c0_54 = arith.constant 0 : index
    %65 = vector.load %arg7[%c0_53, %c0_54] : memref<1x128xf32, #tpu.memory_space<vmem>>, vector<1x128xf32>
    %66 = vector.broadcast %65 : vector<1x128xf32> to vector<16x128xf32>
    %67 = arith.addf %64, %66 : vector<16x128xf32>
    %cst_55 = arith.constant 0.000000e+00 : f32
    %68 = vector.broadcast %cst_55 : f32 to vector<16x128xf32>
    %69 = arith.cmpf oge, %67, %68 : vector<16x128xf32>
    %cst_56 = arith.constant 0.00999999977 : f32
    %70 = vector.broadcast %cst_56 : f32 to vector<16x128xf32>
    %71 = arith.mulf %70, %67 : vector<16x128xf32>
    %72 = arith.select %69, %67, %71 : vector<16x128xi1>, vector<16x128xf32>
    %73 = vector.shape_cast %72 : vector<16x128xf32> to vector<2x1x8x128xf32>
    %74 = arith.truncf %73 : vector<2x1x8x128xf32> to vector<2x1x8x128xbf16>
    %c0_57 = arith.constant 0 : index
    %c0_58 = arith.constant 0 : index
    %c0_59 = arith.constant 0 : index
    %c0_60 = arith.constant 0 : index
    %75 = vector.load %arg8[%c0_57, %c0_58, %c0_59, %c0_60] : memref<2x1x8x128xbf16, #tpu.memory_space<vmem>>, vector<2x1x8x128xbf16>
    tpu.vector_store %arg8[%c0_57, %c0_58, %c0_59, %c0_60], %74 {strides = array<i32>} : memref<2x1x8x128xbf16, #tpu.memory_space<vmem>>, vector<2x1x8x128xbf16>,
    return
  }
  func.func @transform_0(%arg0: i32, %arg1: i32, %arg2: i32) -> (i32, i32, i32, i32) {
    %c1_i32 = arith.constant 1 : i32
    %0 = arith.muli %c1_i32, %arg2 : i32
    %c0_i32 = arith.constant 0 : i32
    %1 = arith.addi %0, %c0_i32 : i32
    %c0_i32_0 = arith.constant 0 : i32
    %c0_i32_1 = arith.constant 0 : i32
    %c0_i32_2 = arith.constant 0 : i32
    return %arg1, %1, %c0_i32_0, %c0_i32_1 : i32, i32, i32, i32
  }
  func.func @transform_1(%arg0: i32, %arg1: i32, %arg2: i32) -> (i32, i32, i32, i32) {
    %c1_i32 = arith.constant 1 : i32
    %0 = arith.muli %c1_i32, %arg2 : i32
    %c1_i32_0 = arith.constant 1 : i32
    %1 = arith.addi %0, %c1_i32_0 : i32
    %c0_i32 = arith.constant 0 : i32
    %c0_i32_1 = arith.constant 0 : i32
    %c0_i32_2 = arith.constant 0 : i32
    return %arg1, %1, %c0_i32, %c0_i32_1 : i32, i32, i32, i32
  }
  func.func @transform_2(%arg0: i32, %arg1: i32, %arg2: i32) -> (i32, i32, i32, i32) {
    %c1_i32 = arith.constant 1 : i32
    %0 = arith.muli %c1_i32, %arg2 : i32
    %c2_i32 = arith.constant 2 : i32
    %1 = arith.addi %0, %c2_i32 : i32
    %c0_i32 = arith.constant 0 : i32
    %c0_i32_0 = arith.constant 0 : i32
    %c0_i32_1 = arith.constant 0 : i32
    return %arg1, %1, %c0_i32, %c0_i32_0 : i32, i32, i32, i32
  }
  func.func @transform_3(%arg0: i32, %arg1: i32, %arg2: i32) -> (i32, i32, i32, i32) {
    %c0_i32 = arith.constant 0 : i32
    %c0_i32_0 = arith.constant 0 : i32
    %c0_i32_1 = arith.constant 0 : i32
    %c0_i32_2 = arith.constant 0 : i32
    return %c0_i32, %c0_i32_0, %c0_i32_1, %arg0 : i32, i32, i32, i32
  }
  func.func @transform_4(%arg0: i32, %arg1: i32, %arg2: i32) -> (i32, i32) {
    %c0_i32 = arith.constant 0 : i32
    %c0_i32_0 = arith.constant 0 : i32
    return %c0_i32, %arg0 : i32, i32
  }
  func.func @transform_5(%arg0: i32, %arg1: i32, %arg2: i32) -> (i32, i32, i32, i32) {
    %c0_i32 = arith.constant 0 : i32
    %c0_i32_0 = arith.constant 0 : i32
    return %arg1, %arg2, %c0_i32, %arg0 : i32, i32, i32, i32
  }
}

module attributes {stable_mosaic.version = 11 : i64} {
  func.func @_adaptive_pool_kernel(%arg0: i32, %arg1: i32, %arg2: memref<1x2x8x128xbf16, #tpu.memory_space<vmem>>, %arg3: memref<1x1x4x128xbf16, #tpu.memory_space<vmem>>) attributes {dimension_semantics = [#tpu.dimension_semantics<parallel>, #tpu.dimension_semantics<parallel>], iteration_bounds = array<i64: 2, 4>, scalar_prefetch = 0 : i64, scratch_operands = 0 : i64, tpu.core_type = #tpu.core_type<tc>, window_params = [{transform_indices = @transform_0, window_bounds = array<i64: 1, 2, 8, 128>}, {transform_indices = @transform_1, window_bounds = array<i64: 1, 1, 4, 128>}]} {
    %c0 = arith.constant 0 : index
    %c0_0 = arith.constant 0 : index
    %c0_1 = arith.constant 0 : index
    %c0_2 = arith.constant 0 : index
    %0 = vector.load %arg2[%c0, %c0_0, %c0_1, %c0_2] : memref<1x2x8x128xbf16, #tpu.memory_space<vmem>>, vector<1x2x8x128xbf16>
    %1 = arith.extf %0 : vector<1x2x8x128xbf16> to vector<1x2x8x128xf32>
    %cst = arith.constant dense<0.000000e+00> : vector<8x128xf32>
    %2 = vector.multi_reduction <add>, %1, %cst [0, 1] : vector<1x2x8x128xf32> to vector<8x128xf32>
    %cst_3 = arith.constant 2.000000e+00 : f32
    %3 = vector.broadcast %cst_3 : f32 to vector<8x128xf32>
    %4 = arith.divf %2, %3 : vector<8x128xf32>
    %5 = vector.extract_strided_slice %4 {offsets = [0, 0], sizes = [2, 128], strides = [1, 1]} : vector<8x128xf32> to vector<2x128xf32>
    %cst_4 = arith.constant dense<0.000000e+00> : vector<128xf32>
    %6 = vector.multi_reduction <add>, %5, %cst_4 [0] : vector<2x128xf32> to vector<128xf32>
    %7 = vector.shape_cast %6 : vector<128xf32> to vector<1x128xf32>
    %cst_5 = arith.constant 2.000000e+00 : f32
    %8 = vector.broadcast %cst_5 : f32 to vector<1x128xf32>
    %9 = arith.divf %7, %8 : vector<1x128xf32>
    %10 = vector.extract_strided_slice %4 {offsets = [2, 0], sizes = [2, 128], strides = [1, 1]} : vector<8x128xf32> to vector<2x128xf32>
    %cst_6 = arith.constant dense<0.000000e+00> : vector<128xf32>
    %11 = vector.multi_reduction <add>, %10, %cst_6 [0] : vector<2x128xf32> to vector<128xf32>
    %12 = vector.shape_cast %11 : vector<128xf32> to vector<1x128xf32>
    %cst_7 = arith.constant 2.000000e+00 : f32
    %13 = vector.broadcast %cst_7 : f32 to vector<1x128xf32>
    %14 = arith.divf %12, %13 : vector<1x128xf32>
    %15 = vector.extract_strided_slice %4 {offsets = [4, 0], sizes = [2, 128], strides = [1, 1]} : vector<8x128xf32> to vector<2x128xf32>
    %cst_8 = arith.constant dense<0.000000e+00> : vector<128xf32>
    %16 = vector.multi_reduction <add>, %15, %cst_8 [0] : vector<2x128xf32> to vector<128xf32>
    %17 = vector.shape_cast %16 : vector<128xf32> to vector<1x128xf32>
    %cst_9 = arith.constant 2.000000e+00 : f32
    %18 = vector.broadcast %cst_9 : f32 to vector<1x128xf32>
    %19 = arith.divf %17, %18 : vector<1x128xf32>
    %20 = vector.extract_strided_slice %4 {offsets = [6, 0], sizes = [2, 128], strides = [1, 1]} : vector<8x128xf32> to vector<2x128xf32>
    %cst_10 = arith.constant dense<0.000000e+00> : vector<128xf32>
    %21 = vector.multi_reduction <add>, %20, %cst_10 [0] : vector<2x128xf32> to vector<128xf32>
    %22 = vector.shape_cast %21 : vector<128xf32> to vector<1x128xf32>
    %cst_11 = arith.constant 2.000000e+00 : f32
    %23 = vector.broadcast %cst_11 : f32 to vector<1x128xf32>
    %24 = arith.divf %22, %23 : vector<1x128xf32>
    %25 = tpu.concatenate %9, %14, %19, %24 in 0 : vector<1x128xf32>, vector<1x128xf32>, vector<1x128xf32>, vector<1x128xf32> -> vector<4x128xf32>
    %26 = vector.shape_cast %25 : vector<4x128xf32> to vector<1x1x4x128xf32>
    %27 = arith.truncf %26 : vector<1x1x4x128xf32> to vector<1x1x4x128xbf16>
    %c0_12 = arith.constant 0 : index
    %c0_13 = arith.constant 0 : index
    %c0_14 = arith.constant 0 : index
    %c0_15 = arith.constant 0 : index
    %28 = vector.load %arg3[%c0_12, %c0_13, %c0_14, %c0_15] : memref<1x1x4x128xbf16, #tpu.memory_space<vmem>>, vector<1x1x4x128xbf16>
    tpu.vector_store %arg3[%c0_12, %c0_13, %c0_14, %c0_15], %27 {strides = array<i32>} : memref<1x1x4x128xbf16, #tpu.memory_space<vmem>>, vector<1x1x4x128xbf16>,
    return
  }
  func.func @transform_0(%arg0: i32, %arg1: i32) -> (i32, i32, i32, i32) {
    %c0_i32 = arith.constant 0 : i32
    %c0_i32_0 = arith.constant 0 : i32
    %c0_i32_1 = arith.constant 0 : i32
    return %arg0, %arg1, %c0_i32, %c0_i32_0 : i32, i32, i32, i32
  }
  func.func @transform_1(%arg0: i32, %arg1: i32) -> (i32, i32, i32, i32) {
    %c0_i32 = arith.constant 0 : i32
    %c0_i32_0 = arith.constant 0 : i32
    %c0_i32_1 = arith.constant 0 : i32
    return %arg0, %arg1, %c0_i32, %c0_i32_0 : i32, i32, i32, i32
  }
}

module attributes {stable_mosaic.version = 11 : i64} {
  func.func @_linear_multi_kernel(%arg0: i32, %arg1: i32, %arg2: i32, %arg3: memref<8x1024xbf16, #tpu.memory_space<vmem>>, %arg4: memref<1024x128xbf16, #tpu.memory_space<vmem>>, %arg5: memref<1x128xf32, #tpu.memory_space<vmem>>, %arg6: memref<8x128xbf16, #tpu.memory_space<vmem>>, %arg7: memref<8x128xf32, #tpu.memory_space<vmem>>) attributes {dimension_semantics = [#tpu.dimension_semantics<parallel>, #tpu.dimension_semantics<parallel>, #tpu.dimension_semantics<arbitrary>], iteration_bounds = array<i64: 1, 1, 2>, scalar_prefetch = 0 : i64, scratch_operands = 1 : i64, tpu.core_type = #tpu.core_type<tc>, window_params = [{transform_indices = @transform_0, window_bounds = array<i64: 8, 1024>}, {transform_indices = @transform_1, window_bounds = array<i64: 1024, 128>}, {transform_indices = @transform_2, window_bounds = array<i64: 1, 128>}, {transform_indices = @transform_3, window_bounds = array<i64: 8, 128>}]} {
    %c0 = arith.constant 0 : index
    %c0_0 = arith.constant 0 : index
    %0 = vector.load %arg3[%c0, %c0_0] : memref<8x1024xbf16, #tpu.memory_space<vmem>>, vector<8x1024xbf16>
    %c0_1 = arith.constant 0 : index
    %c0_2 = arith.constant 0 : index
    %1 = vector.load %arg4[%c0_1, %c0_2] : memref<1024x128xbf16, #tpu.memory_space<vmem>>, vector<1024x128xbf16>
    %cst = arith.constant dense<0.000000e+00> : vector<8x128xf32>
    %2 = tpu.matmul %0, %1, %cst {dimension_numbers = #tpu.dot_dimension_numbers<[1], [0], [0], [1], [0, 0, 1, 1], [], []>} : vector<8x1024xbf16>, vector<1024x128xbf16>, vector<8x128xf32> -> vector<8x128xf32>
    %c0_i32 = arith.constant 0 : i32
    %3 = arith.cmpi eq, %arg2, %c0_i32 : i32
    %4 = arith.extui %3 : i1 to i32
    %c0_i32_3 = arith.constant 0 : i32
    %5 = arith.cmpi ne, %4, %c0_i32_3 : i32
    scf.if %5 {
      %c0_7 = arith.constant 0 : index
      %c0_8 = arith.constant 0 : index
      %12 = vector.load %arg7[%c0_7, %c0_8] : memref<8x128xf32, #tpu.memory_space<vmem>>, vector<8x128xf32>
      tpu.vector_store %arg7[%c0_7, %c0_8], %2 {strides = array<i32>} : memref<8x128xf32, #tpu.memory_space<vmem>>, vector<8x128xf32>,
    } else {
    }
    %c0_i32_4 = arith.constant 0 : i32
    %6 = arith.cmpi sgt, %arg2, %c0_i32_4 : i32
    %7 = arith.extui %6 : i1 to i32
    %c0_i32_5 = arith.constant 0 : i32
    %8 = arith.cmpi ne, %7, %c0_i32_5 : i32
    scf.if %8 {
      %c0_7 = arith.constant 0 : index
      %c0_8 = arith.constant 0 : index
      %12 = vector.load %arg7[%c0_7, %c0_8] : memref<8x128xf32, #tpu.memory_space<vmem>>, vector<8x128xf32>
      %13 = arith.addf %12, %2 : vector<8x128xf32>
      %c0_9 = arith.constant 0 : index
      %c0_10 = arith.constant 0 : index
      %14 = vector.load %arg7[%c0_9, %c0_10] : memref<8x128xf32, #tpu.memory_space<vmem>>, vector<8x128xf32>
      tpu.vector_store %arg7[%c0_9, %c0_10], %13 {strides = array<i32>} : memref<8x128xf32, #tpu.memory_space<vmem>>, vector<8x128xf32>,
    } else {
    }
    %c1_i32 = arith.constant 1 : i32
    %9 = arith.cmpi eq, %arg2, %c1_i32 : i32
    %10 = arith.extui %9 : i1 to i32
    %c0_i32_6 = arith.constant 0 : i32
    %11 = arith.cmpi ne, %10, %c0_i32_6 : i32
    scf.if %11 {
      %c0_7 = arith.constant 0 : index
      %c0_8 = arith.constant 0 : index
      %12 = vector.load %arg7[%c0_7, %c0_8] : memref<8x128xf32, #tpu.memory_space<vmem>>, vector<8x128xf32>
      %c0_9 = arith.constant 0 : index
      %c0_10 = arith.constant 0 : index
      %13 = vector.load %arg5[%c0_9, %c0_10] : memref<1x128xf32, #tpu.memory_space<vmem>>, vector<1x128xf32>
      %14 = vector.broadcast %13 : vector<1x128xf32> to vector<8x128xf32>
      %15 = arith.addf %12, %14 : vector<8x128xf32>
      %cst_11 = arith.constant 0.000000e+00 : f32
      %16 = vector.broadcast %cst_11 : f32 to vector<8x128xf32>
      %17 = arith.cmpf oge, %15, %16 : vector<8x128xf32>
      %cst_12 = arith.constant 0.00999999977 : f32
      %18 = vector.broadcast %cst_12 : f32 to vector<8x128xf32>
      %19 = arith.mulf %18, %15 : vector<8x128xf32>
      %20 = arith.select %17, %15, %19 : vector<8x128xi1>, vector<8x128xf32>
      %21 = arith.truncf %20 : vector<8x128xf32> to vector<8x128xbf16>
      %c0_13 = arith.constant 0 : index
      %c0_14 = arith.constant 0 : index
      %22 = vector.load %arg6[%c0_13, %c0_14] : memref<8x128xbf16, #tpu.memory_space<vmem>>, vector<8x128xbf16>
      tpu.vector_store %arg6[%c0_13, %c0_14], %21 {strides = array<i32>} : memref<8x128xbf16, #tpu.memory_space<vmem>>, vector<8x128xbf16>,
    } else {
    }
    return
  }
  func.func @transform_0(%arg0: i32, %arg1: i32, %arg2: i32) -> (i32, i32) {
    %c0_i32 = arith.constant 0 : i32
    return %arg0, %arg2 : i32, i32
  }
  func.func @transform_1(%arg0: i32, %arg1: i32, %arg2: i32) -> (i32, i32) {
    %c0_i32 = arith.constant 0 : i32
    return %arg2, %arg1 : i32, i32
  }
  func.func @transform_2(%arg0: i32, %arg1: i32, %arg2: i32) -> (i32, i32) {
    %c0_i32 = arith.constant 0 : i32
    %c0_i32_0 = arith.constant 0 : i32
    return %c0_i32, %arg1 : i32, i32
  }
  func.func @transform_3(%arg0: i32, %arg1: i32, %arg2: i32) -> (i32, i32) {
    %c0_i32 = arith.constant 0 : i32
    return %arg0, %arg1 : i32, i32
  }
}

module attributes {stable_mosaic.version = 11 : i64} {
  func.func @_linear_single_kernel(%arg0: i32, %arg1: i32, %arg2: memref<8x128xbf16, #tpu.memory_space<vmem>>, %arg3: memref<128x128xbf16, #tpu.memory_space<vmem>>, %arg4: memref<1x128xf32, #tpu.memory_space<vmem>>, %arg5: memref<8x128xf32, #tpu.memory_space<vmem>>) attributes {dimension_semantics = [#tpu.dimension_semantics<parallel>, #tpu.dimension_semantics<parallel>], iteration_bounds = array<i64: 1, 2>, scalar_prefetch = 0 : i64, scratch_operands = 0 : i64, tpu.core_type = #tpu.core_type<tc>, window_params = [{transform_indices = @transform_0, window_bounds = array<i64: 8, 128>}, {transform_indices = @transform_1, window_bounds = array<i64: 128, 128>}, {transform_indices = @transform_2, window_bounds = array<i64: 1, 128>}, {transform_indices = @transform_3, window_bounds = array<i64: 8, 128>}]} {
    %c0 = arith.constant 0 : index
    %c0_0 = arith.constant 0 : index
    %0 = vector.load %arg2[%c0, %c0_0] : memref<8x128xbf16, #tpu.memory_space<vmem>>, vector<8x128xbf16>
    %c0_1 = arith.constant 0 : index
    %c0_2 = arith.constant 0 : index
    %1 = vector.load %arg3[%c0_1, %c0_2] : memref<128x128xbf16, #tpu.memory_space<vmem>>, vector<128x128xbf16>
    %cst = arith.constant dense<0.000000e+00> : vector<8x128xf32>
    %2 = tpu.matmul %0, %1, %cst {dimension_numbers = #tpu.dot_dimension_numbers<[1], [0], [0], [1], [0, 0, 1, 1], [], []>} : vector<8x128xbf16>, vector<128x128xbf16>, vector<8x128xf32> -> vector<8x128xf32>
    %c0_3 = arith.constant 0 : index
    %c0_4 = arith.constant 0 : index
    %3 = vector.load %arg4[%c0_3, %c0_4] : memref<1x128xf32, #tpu.memory_space<vmem>>, vector<1x128xf32>
    %4 = vector.broadcast %3 : vector<1x128xf32> to vector<8x128xf32>
    %5 = arith.addf %2, %4 : vector<8x128xf32>
    %c0_5 = arith.constant 0 : index
    %c0_6 = arith.constant 0 : index
    %6 = vector.load %arg5[%c0_5, %c0_6] : memref<8x128xf32, #tpu.memory_space<vmem>>, vector<8x128xf32>
    tpu.vector_store %arg5[%c0_5, %c0_6], %5 {strides = array<i32>} : memref<8x128xf32, #tpu.memory_space<vmem>>, vector<8x128xf32>,
    return
  }
  func.func @transform_0(%arg0: i32, %arg1: i32) -> (i32, i32) {
    %c0_i32 = arith.constant 0 : i32
    %c0_i32_0 = arith.constant 0 : i32
    return %arg0, %c0_i32 : i32, i32
  }
  func.func @transform_1(%arg0: i32, %arg1: i32) -> (i32, i32) {
    %c0_i32 = arith.constant 0 : i32
    %c0_i32_0 = arith.constant 0 : i32
    return %c0_i32, %arg1 : i32, i32
  }
  func.func @transform_2(%arg0: i32, %arg1: i32) -> (i32, i32) {
    %c0_i32 = arith.constant 0 : i32
    %c0_i32_0 = arith.constant 0 : i32
    return %c0_i32, %arg1 : i32, i32
  }
  func.func @transform_3(%arg0: i32, %arg1: i32) -> (i32, i32) {
    %c0_i32 = arith.constant 0 : i32
    return %arg0, %arg1 : i32, i32
  }
}

</mosaic_0001>

<bundles_post_ra>
// kernel: clagnosco_encoder.6
= control target key start
LH: loop header
LB: loop body
LE: loop exit
PB: predicated region body
PF: predicated region fallthrough
CT: control target
= control target key end

     0   :  { %s2224_s0 = inlined_call_operand.vmem [shape: bf16[2,34,17,8], index: 0, kind: input, shape index: {}, may-alias: {0,1,2,3}]   ;;  %s2225_s1 = inlined_call_operand.vmem [shape: bf16[2,34,17,8], index: 1, kind: input, shape index: {}, may-alias: {0,1,2,3}]   ;;  %s2226_s2 = inlined_call_operand.vmem [shape: bf16[2,34,17,8], index: 2, kind: input, shape index: {}, may-alias: {0,1,2,3}]   ;;  %s2227_s3 = inlined_call_operand.vmem [shape: bf16[2,34,17,8], index: 3, kind: input, shape index: {}, may-alias: {0,1,2,3}]   ;;  %s2228_s4 = inlined_call_operand.vmem [shape: bf16[4,2,8,128], index: 4, kind: input, shape index: {}]   ;;  %s2229_s5 = inlined_call_operand.vmem [shape: f32[1,128], index: 5, kind: input, shape index: {}]   ;;  %s2230_s6 = inlined_call_operand.vmem [shape: bf16[2,16,16,128], index: 6, kind: output, shape index: {}]  }
   0x1   :  { %2234 = sst [smem:[#allocation13_spill]] %s2229_s5 }
   0x2   :  { %2235 = sst [smem:[#allocation14_spill]] %s2230_s6 }
   0x3   :  { %s1863_s21 = smov 0   ;;  %s1865_s22 = smov 0  }
   0x4   :  { %s1867_s23 = smov 0   ;;  %s1869_s24 = smov 0  }
   0x5   :  { %s1871_s25 = smov 0   ;;  %s1873_s26 = smov 0  }
   0x6   :  { %s1875_s27 = smov 0   ;;  %s1877_s28 = smov 0  }
   0x7   :  { %s1879_s29 = smov 0   ;;  %s1881_s30 = smov 0  }
   0x8   :  { %s1883_s7 = smov 0   ;;  %s1885_s8 = smov 0  }
   0x9   :  { %s1887_s9 = smov 0  }
   0xa LB: > { %2236 = sst [smem:[#allocation7_spill]] %s1810_s29  ;;  %s28_s11 = sadd.s32 1, %s1822_s8  ;;  %s1826_s9 = sphi %s1887_s9, %s16_s9   ;;  %s1822_s8 = sphi %s1885_s8, %s2269_s8   ;;  %s1818_s7 = sphi %s1883_s7, %s2268_s7   ;;  %s1814_s30 = sphi %s1881_s30, %s2257_s30   ;;  %s1810_s29 = sphi %s1879_s29, %s2256_s29   ;;  %s1806_s28 = sphi %s1877_s28, %s2267_s28   ;;  %s1802_s27 = sphi %s1875_s27, %s2266_s27   ;;  %s1798_s26 = sphi %s1873_s26, %s2265_s26   ;;  %s1794_s25 = sphi %s1871_s25, %s2264_s25   ;;  %s1790_s24 = sphi %s1869_s24, %s2263_s24   ;;  %s1786_s23 = sphi %s1867_s23, %s2262_s23   ;;  %s1782_s22 = sphi %s1865_s22, %s2261_s22   ;;  %s1778_s21 = sphi %s1863_s21, %s2260_s21  }
   0xb   : > { %2237 = sst [smem:[#allocation8_spill]] %s1814_s30  ;;  %p29_p0 = scmp.ge.s32.totalorder %s28_s11, 16 }
   0xc   : > { %2238 = sst [smem:[#allocation9_spill]] %s1818_s7  ;;  %s1931_s12 = sshll.u32 %s1822_s8, 1 }
   0xd   : > { %s46_s13 = sadd.s32 1, %s1814_s30  ;;  %p53_p1 = scmp.ne.s32.totalorder %s1814_s30, %s1810_s29 }
   0xe   : > { %s2271_s11 = smov (%p29_p0, %s28_s11), 0  ;;  %p54_p2 = scmp.eq.s32.totalorder %s1826_s9, 0 }
   0xf   : > { %2239 = sst [smem:[#allocation10_spill]] %s2271_s11  ;;  %s70_s14 = sadd.s32 1, %s1931_s12 }
  0x10   : > { %s1487_s15 = sshll.u32 %s2271_s11, 1  ;;  %s78_s16 = sadd.s32 1, %s1806_s28 }
  0x11   : > { %s42_s17 = ssub.s32 %s1931_s12, %s1487_s15  ;;  %p1945_p3 = por %p54_p2, %p53_p1 }
  0x12   : > { %p44_p4 = scmp.eq.s32.totalorder %s42_s17, 0  ;;  %s72_s19 = sadd.s32 1, %s1487_s15 }
  0x13   : > { %s74_s20 = ssub.s32 %s70_s14, %s72_s19  ;;  %p85_p5 = scmp.ne.s32.totalorder %s1806_s28, %s1802_s27 }
  0x14   : > { %s1952_s10 = scalar_select %p44_p4, %s1814_s30, %s46_s13  }
  0x15   : > { %p76_p6 = scmp.eq.s32.totalorder %s74_s20, 0  ;;  %p1956_p7 = por %p85_p5, %p54_p2 }
  0x16   : > { %2241 = sst [smem:[#allocation11_spill]] %s1952_s10  ;;  %s102_s7 = sadd.s32 2, %s1931_s12 }
  0x17   : > { %s104_s17 = sadd.s32 2, %s1487_s15  ;;  %s110_s13 = sadd.s32 1, %s1798_s26 }
  0x18   : > { %s1962_s5 = scalar_select %p76_p6, %s1806_s28, %s78_s16  }
  0x19   : > { %s106_s14 = ssub.s32 %s102_s7, %s104_s17  ;;  %p117_p9 = scmp.ne.s32.totalorder %s1798_s26, %s1794_s25 }
  0x1a   : > { %2243 = sst [smem:[#allocation12_spill]] %s1962_s5  ;;  %p108_p8 = scmp.eq.s32.totalorder %s106_s14, 0 }
  0x1b   : > { %s134_s19 = sadd.s32 3, %s1931_s12  ;;  %s136_s20 = sadd.s32 3, %s1487_s15 }
  0x1c   : > { %s1969_s10 = scalar_select %p108_p8, %s1798_s26, %s110_s13  }
  0x1d   : > { %p1973_p10 = por %p117_p9, %p54_p2  ;;  %s138_s16 = ssub.s32 %s134_s19, %s136_s20 }
  0x1e   : > { %p140_p11 = scmp.eq.s32.totalorder %s138_s16, 0  ;;  %s142_s7 = sadd.s32 1, %s1790_s24 }
  0x1f   : > { %p149_p12 = scmp.ne.s32.totalorder %s1790_s24, %s1786_s23  ;;  %s218_s17 = ssub.s32 %s1822_s8, %s2271_s11 }
  0x20   : > { %s1983_s5 = scalar_select %p140_p11, %s1790_s24, %s142_s7  }
  0x21   : > { %p1987_p13 = por %p149_p12, %p54_p2  ;;  %p222_p0 = scmp.eq.s32.totalorder %s218_s17, 0 }
  0x22   : > { %s224_s12 = sadd.s32 1, %s1782_s22  ;;  %p234_p1 = scmp.ne.s32.totalorder %s1782_s22, %s1778_s21 }
  0x23   : > { %s1995_s15 = scalar_select %p222_p0, %s1782_s22, %s224_s12  }
  0x24   : > { %s2246_s13 = sadd.s32 4294967295, %s1826_s9   ;;  %p1497_p6 = scmp.ge.s32.totalorder %s1826_s9, 16 }
  0x25   : > { %p235_p4 = scmp.eq.s32.totalorder %s2246_s13, 15 }
  0x26   : > { %270 = sbr.rel (%p1497_p6) target bundleno = 79 (0x4f), region = 24 }
  0x27   : > { %p1999_p5 = por %p235_p4, %p234_p1 }
  0x2b   : > { %273 = sbr.rel (!%p1945_p3) target bundleno = 52 (0x34), region = 28  ;;  %s275_s20 = sand.u32 (%p1945_p3), 1, %s1814_s30  }
  0x2c   : > { %s1611_s16 = smul.u32 (%p1945_p3), 24, %s1822_s8 }
  0x2d   : > { %s1610_s7 = smul.u32 (%p1945_p3), 24, %s275_s20 }
  0x2e   : > { %s284_s11 = scalar_lea.vmem (%p1945_p3), %s2224_s0, %s1611_s16 }
  0x2f   : > { %v301_v0 = vld [vmem:[%s284_s11] sm:$0xff] (%p1945_p3)   ;;  %v305_v1 = vld [vmem:[%s284_s11 + $0x8] sm:$0xf] (%p1945_p3)  ;;  %v307_v2 = vld [vmem:[%s284_s11 + $0x198] sm:$0xff] (%p1945_p3)   ;;  %s277_s13 = scalar_lea.vmem (%p1945_p3), [#allocation2], %s1610_s7 }
  0x30   : > { %302 = vst [vmem:[%s277_s13] sm:$0xff] %v301_v0   ;;  %v311_v3 = vld [vmem:[%s284_s11 + $0x1a0] sm:$0xf] }
  0x31   : > { %306 = vst [vmem:[%s277_s13 + $0x8] sm:$0xf] %v305_v1 }
  0x32   : > { %308 = vst [vmem:[%s277_s13 + $0xc] sm:$0xff] %v307_v2  }
  0x33   : > { %312 = vst [vmem:[%s277_s13 + $0x14] sm:$0xf] %v311_v3 }
  0x34 PF: > { %348 = sbr.rel (!%p1956_p7) target bundleno = 61 (0x3d), region = 69  ;;  %s350_s18 = sand.u32 (%p1956_p7), 1, %s1806_s28  }
  0x35   : > { %s1503_s20 = smul.u32 (%p1956_p7), 24, %s1822_s8 }
  0x36   : > { %s1612_s30 = smul.u32 (%p1956_p7), 24, %s350_s18 }
  0x37   : > { %s1342_s12 = scalar_lea.vmem (%p1956_p7), %s2225_s1, %s1503_s20 }
  0x38   : > { %v1504_v4 = vld [vmem:[%s1342_s12 + $0xc] sm:$0xff] (%p1956_p7)   ;;  %v1506_v5 = vld [vmem:[%s1342_s12 + $0x14] sm:$0xf] (%p1956_p7)  ;;  %v1507_v6 = vld [vmem:[%s1342_s12 + $0x1a4] sm:$0xff] (%p1956_p7)   ;;  %s352_s11 = scalar_lea.vmem (%p1956_p7), [#allocation3], %s1612_s30 }
  0x39   : > { %378 = vst [vmem:[%s352_s11] sm:$0xff] %v1504_v4   ;;  %v1509_v7 = vld [vmem:[%s1342_s12 + $0x1ac] sm:$0xf] }
  0x3a   : > { %382 = vst [vmem:[%s352_s11 + $0x8] sm:$0xf] %v1506_v5 }
  0x3b   : > { %384 = vst [vmem:[%s352_s11 + $0xc] sm:$0xff] %v1507_v6  }
  0x3c   : > { %388 = vst [vmem:[%s352_s11 + $0x14] sm:$0xf] %v1509_v7 }
  0x3d PF: > { %424 = sbr.rel (!%p1973_p10) target bundleno = 70 (0x46), region = 110  ;;  %s426_s6 = sand.u32 (%p1973_p10), 1, %s1798_s26  }
  0x3e   : > { %s1512_s7 = smul.u32 (%p1973_p10), 24, %s1822_s8 }
  0x3f   : > { %s1613_s13 = smul.u32 (%p1973_p10), 24, %s426_s6 }
  0x40   : > { %s1351_s17 = scalar_lea.vmem (%p1973_p10), %s2226_s2, %s1512_s7 }
  0x41   : > { %v1513_v8 = vld [vmem:[%s1351_s17 + $0x18] sm:$0xff] (%p1973_p10)   ;;  %v1515_v9 = vld [vmem:[%s1351_s17 + $0x20] sm:$0xf] (%p1973_p10)  ;;  %v1516_v10 = vld [vmem:[%s1351_s17 + $0x1b0] sm:$0xff] (%p1973_p10)   ;;  %s428_s30 = scalar_lea.vmem (%p1973_p10), [#allocation4], %s1613_s13 }
  0x42   : > { %454 = vst [vmem:[%s428_s30] sm:$0xff] %v1513_v8   ;;  %v1518_v11 = vld [vmem:[%s1351_s17 + $0x1b8] sm:$0xf] }
  0x43   : > { %458 = vst [vmem:[%s428_s30 + $0x8] sm:$0xf] %v1515_v9 }
  0x44   : > { %460 = vst [vmem:[%s428_s30 + $0xc] sm:$0xff] %v1516_v10  }
  0x45   : > { %464 = vst [vmem:[%s428_s30 + $0x14] sm:$0xf] %v1518_v11 }
  0x46 PF: > { %500 = sbr.rel (!%p1987_p13) target bundleno = 79 (0x4f), region = 151  ;;  %s502_s29 = sand.u32 (%p1987_p13), 1, %s1790_s24  }
  0x47   : > { %s1521_s16 = smul.u32 (%p1987_p13), 24, %s1822_s8 }
  0x48   : > { %s1614_s12 = smul.u32 (%p1987_p13), 24, %s502_s29 }
  0x49   : > { %s1360_s7 = scalar_lea.vmem (%p1987_p13), %s2227_s3, %s1521_s16 }
  0x4a   : > { %v1522_v12 = vld [vmem:[%s1360_s7 + $0x24] sm:$0xff] (%p1987_p13)   ;;  %v1524_v13 = vld [vmem:[%s1360_s7 + $0x2c] sm:$0xf] (%p1987_p13)  ;;  %v1525_v14 = vld [vmem:[%s1360_s7 + $0x1bc] sm:$0xff] (%p1987_p13)   ;;  %s504_s13 = scalar_lea.vmem (%p1987_p13), [#allocation5], %s1614_s12 }
  0x4b   : > { %530 = vst [vmem:[%s504_s13] sm:$0xff] %v1522_v12   ;;  %v1527_v15 = vld [vmem:[%s1360_s7 + $0x1c4] sm:$0xf] }
  0x4c   : > { %534 = vst [vmem:[%s504_s13 + $0x8] sm:$0xf] %v1524_v13 }
  0x4d   : > { %536 = vst [vmem:[%s504_s13 + $0xc] sm:$0xff] %v1525_v14  }
  0x4e   : > { %540 = vst [vmem:[%s504_s13 + $0x14] sm:$0xf] %v1527_v15 }
  0x4f PF: > { %p1528_p2 = scmp.ge.s32.totalorder %s1826_s9, 1  ;;  %p575_p3 = scmp.lt.s32.totalorder %s1826_s9, 17 }
  0x51   : > { %p576_p7 = pnand %p1528_p2, %p575_p3 }
  0x52   : > { %s2248_s20 = sld [smem:[#allocation7_spill]] (!%p576_p7)  ;;  %s589_s17 = sand.u32 (!%p576_p7), 1, %s1802_s27  }
  0x53   : > { %579 = sbr.rel (%p576_p7) target bundleno = 317 (0x13d), region = 192 }
  0x54   : > { %s1616_s29 = smul.u32 (!%p576_p7), 24, %s589_s17 }
  0x58   : > { %vm743_vm0 = vcmask 1043456   ;;  %v1543_v16 = vld [vmem:[%s2228_s4 + $0x8] sm:$0xf]  ;;  %s582_s30 = sand.u32 1, %s2248_s20   ;;  %v676_v18 = vld [vmem:[%s2228_s4] sm:$0xf] }
  0x59   : > { %v829_v17 = vsel %vm743_vm0, %v1543_v16, 0  ;;  %v1530_v19 = vld [vmem:[%s2228_s4 + $0x4] sm:$0xf]  ;;  %vm736_vm1 = vcmask 64512   ;;  %v783_v20 = vsel %vm743_vm0, %v676_v18, 0  ;;  %s1615_s7 = smul.u32 24, %s582_s30 }
  0x5a   : > { %838 = vmatpush.bf16.msra.mxu2 %v829_v17  ;;  %v745_v21 = vsel %vm743_vm0, %v1530_v19, 0  ;;  %v1554_v22 = vld [vmem:[%s2228_s4 + $0xc] sm:$0xf]  ;;  %792 = vmatpush.bf16.msra.mxu1 %v783_v20  ;;  %v1571_v24 = vld [vmem:[%s2228_s4 + $0x18] sm:$0xf]  ;;  %s2055_s20 = scalar_lea.vmem [#allocation3], %s1616_s29 }
  0x5b   : > { %754 = vmatpush.bf16.msra.mxu0 %v745_v21  ;;  %v917_v23 = vsel %vm743_vm0, %v1554_v22, 0  ;;  %vm677_vm2 = vsmask.f32 3328  ;;  %v1592_v25 = vld [vmem:[%s2055_s20] sm:$0xff]  ;;  %v1105_v26 = vsel %vm743_vm0, %v1571_v24, 0  ;;  %s2059_s17 = scalar_lea.vmem [#allocation2], %s1615_s7 }
  0x5c   : > { %926 = vmatpush.bf16.msra.mxu3 %v917_v23  ;;  %vm678_vm3 = vsmask.f32 7440  ;;  %v1590_v27 = vld [vmem:[%s2059_s17] sm:$0xff]  ;;  %v672_v30 = vld [vmem:[%s2059_s17 + $0x8] sm:$0x1]  ;;  %s603_s30 = sand.u32 1, %s1786_s23  }
  0x5d   : > { %v670_v28 = vld [vmem:[%s2059_s17] sm:$0xf]  ;;  %v671_v29 = vld [vmem:[%s2059_s17 + $0x4] sm:$0xf]  ;;  %1552 = vmatmul.msk.bf16.vlgmr.msra.gmra.mxu2 %vm736_vm1, %v1592_v25  ;;  %1541 = vmatmul.msk.bf16.vlgmr.msra.gmra.mxu1 %vm736_vm1, %v1590_v27  ;;  %v700_v35 = vshll.u32 %v672_v30, 16  ;;  %vm2082_vm4 = vmor %vm677_vm2, %vm678_vm3  ;;  %s2093_s27 = smul.u32 24, %s603_s30 }
  0x5e   : > { %1114 = vmatpush.bf16.msrb.mxu2 %v1105_v26  ;;  %v681_v31 = vshrl.u32 %v670_v28, 16  ;;  %v684_v32 = vshll.u32 %v670_v28, 16  ;;  %v690_v33 = vshll.u32 %v671_v29, 16  ;;  %v694_v34 = vshrl.u32 %v671_v29, 16  ;;  %v804_v36 = vld [vmem:[%s2055_s20] sm:$0xf] }
  0x5f   : > { %v805_v37 = vld [vmem:[%s2055_s20 + $0x4] sm:$0xf]  ;;  %v806_v42 = vld [vmem:[%s2055_s20 + $0x8] sm:$0x1]  ;;  %v702_v43 = vrot.slane %v700_v35, 5  ;;  %v855_v44 = vshrl.u32 %v804_v36, 16 }
  0x60   : > { %v683_v38 = vrot.slane %v681_v31, 4  ;;  %v686_v39 = vrot.slane %v684_v32, 5  ;;  %v692_v40 = vrot.slane %v690_v33, 5  ;;  %v696_v41 = vrot.slane %v694_v34, 4  ;;  %v1557_v47 = vld [vmem:[%s2228_s4 + $0x10] sm:$0xf] }
  0x61   : > { %v858_v45 = vshll.u32 %v804_v36, 16  ;;  %v864_v46 = vshll.u32 %v805_v37, 16  ;;  %v868_v50 = vshrl.u32 %v805_v37, 16  ;;  %v874_v51 = vshll.u32 %v806_v42, 16  ;;  %v1582_v52 = vld [vmem:[%s2228_s4 + $0x1c] sm:$0xf] }
  0x62   : > { %v687_v48 = vor.u32 %v686_v39, %v683_v38  ;;  %v697_v49 = vor.u32 %v696_v41, %v692_v40  ;;  %v1568_v53 = vld [vmem:[%s2228_s4 + $0x14] sm:$0xf]  ;;  %v857_v55 = vrot.slane %v855_v44, 4  ;;  %v967_v58 = vsel %vm743_vm0, %v1557_v47, 0  ;;  %v673_v59 = vld [vmem:[%s2059_s17 + $0xc] sm:$0xf] }
  0x63   : > { %v860_v56 = vrot.slane %v858_v45, 5  ;;  %v866_v57 = vrot.slane %v864_v46, 5  ;;  %v870_v62 = vrot.slane %v868_v50, 4  ;;  %v876_v63 = vrot.slane %v874_v51, 5  ;;  %976 = vmatpush.bf16.msrb.mxu0 %v967_v58  ;;  %v674_v3 = vld [vmem:[%s2059_s17 + $0x10] sm:$0xf] }
  0x64   : > { %v688_v60 = vrot.slane %v687_v48, 4  ;;  %v698_v61 = vrot.slane %v697_v49, 4  ;;  %v1193_v1 = vsel %vm743_vm0, %v1582_v52, 0  ;;  %v1055_v2 = vsel %vm743_vm0, %v1568_v53, 0  ;;  %v675_v8 = vld [vmem:[%s2059_s17 + $0x14] sm:$0x1] }
  0x65   : > { %v861_v0 = vor.u32 %v860_v56, %v857_v55  ;;  %v705_v4 = vshrl.u32 %v673_v59, 16  ;;  %v871_v7 = vor.u32 %v870_v62, %v866_v57  ;;  %1202 = vmatpush.bf16.msrb.mxu3 %v1193_v1  ;;  %1064 = vmatpush.bf16.msrb.mxu1 %v1055_v2  ;;  %v708_v9 = vshll.u32 %v673_v59, 16  ;;  %v807_v10 = vld [vmem:[%s2055_s20 + $0xc] sm:$0xf]  ;;  %s596_s23 = sand.u32 1, %s1794_s25   ;;  %v1591_v31 = vld [vmem:[%s2059_s17 + $0xc] sm:$0xff] }
  0x66   : > { %v693_v5 = vsel %vm2082_vm4, %v688_v60, %v692_v40  ;;  %v703_v6 = vsel %vm2082_vm4, %v698_v61, %v702_v43  ;;  %v714_v17 = vshll.u32 %v674_v3, 16  ;;  %v718_v18 = vshrl.u32 %v674_v3, 16  ;;  %s1617_s13 = smul.u32 24, %s596_s23  ;;  %v1593_v21 = vld [vmem:[%s2055_s20 + $0xc] sm:$0xff]  ;;  %v809_v29 = vld [vmem:[%s2055_s20 + $0x14] sm:$0x1] }
  0x67   : > { %v730_v11 = vunpack.c.l.b16 %v693_v5  ;;  %v731_v12 = vunpack.c.l.b16 %v703_v6  ;;  %v862_v13 = vrot.slane %v861_v0, 4  ;;  %v707_v14 = vrot.slane %v705_v4, 4  ;;  %v808_v23 = vld [vmem:[%s2055_s20 + $0x10] sm:$0xf]  ;;  %s2116_s14 = scalar_lea.vmem [#allocation5], %s2093_s27  ;;  %s2251_s17 = sld [smem:[#allocation13_spill]] }
  0x68   : > { %v872_v15 = vrot.slane %v871_v7, 4  ;;  %v710_v16 = vrot.slane %v708_v9, 5  ;;  %v724_v22 = vshll.u32 %v675_v8, 16  ;;  %v879_v24 = vshrl.u32 %v807_v10, 16  ;;  %s2111_s25 = scalar_lea.vmem [#allocation4], %s1617_s13  ;;  %s647_s30 = sand.u32 1, %s1778_s21  }
  0x69   : > { %v734_v19 = vpack.c.b16 %v731_v12, %v730_v11  ;;  %v867_v20 = vsel %vm2082_vm4, %v862_v13, %v866_v57  ;;  %v716_v28 = vrot.slane %v714_v17, 5  ;;  %v720_v32 = vrot.slane %v718_v18, 4  ;;  %v942_v35 = vld [vmem:[%s2111_s25] sm:$0xf]  ;;  %v943_v43 = vld [vmem:[%s2111_s25 + $0x4] sm:$0xf] }
  0x6a   : > { %v877_v25 = vsel %vm2082_vm4, %v872_v15, %v876_v63  ;;  %v904_v26 = vunpack.c.l.b16 %v867_v20  ;;  %v711_v27 = vor.u32 %v710_v16, %v707_v14  ;;  %v726_v33 = vrot.slane %v724_v22, 5  ;;  %v1080_v45 = vld [vmem:[%s2116_s14] sm:$0xf]  ;;  %v944_v50 = vld [vmem:[%s2111_s25 + $0x8] sm:$0x1]  ;;  %s1529_s29 = sshll.u32 %s647_s30, 4 }
  0x6b   : > { %1531 = vmatmul.msk.bf16.vlgmr.msra.gmra.mxu0 %vm736_vm1, %v734_v19  ;;  %v905_v30 = vunpack.c.l.b16 %v877_v25  ;;  %v881_v34 = vrot.slane %v879_v24, 4  ;;  %v882_v37 = vshll.u32 %v807_v10, 16  ;;  %v888_v38 = vshll.u32 %v808_v23, 16  ;;  %v1081_v6 = vld [vmem:[%s2116_s14 + $0x4] sm:$0xf]  ;;  %s649_s21 = scalar_lea.vmem [#allocation6], %s1529_s29 }
  0x6c   : > { %v712_v36 = vrot.slane %v711_v27, 4  ;;  %v892_v39 = vshrl.u32 %v808_v23, 16  ;;  %v721_v41 = vor.u32 %v720_v32, %v716_v28  ;;  %v898_v42 = vshll.u32 %v809_v29, 16  ;;  %v945_v11 = vld [vmem:[%s2111_s25 + $0xc] sm:$0xf]  ;;  %s2252_s16 = sld [smem:[#allocation9_spill]] (%p1999_p5) }
  0x6d   : > { %v908_v40 = vpack.c.b16 %v905_v30, %v904_v26  ;;  %v993_v44 = vshrl.u32 %v942_v35, 16  ;;  %1553 = vmatmul.msk.bf16.gmra.mxu2 %vm736_vm1, %v1593_v21  ;;  %v884_v47 = vrot.slane %v882_v37, 5  ;;  %v890_v48 = vrot.slane %v888_v38, 5  ;;  %1542 = vmatmul.msk.bf16.gmra.mxu1 %vm736_vm1, %v1591_v31  ;;  %v1082_v18 = vld [vmem:[%s2116_s14 + $0x8] sm:$0x1]  ;;  %s2253_s7 = sld [smem:[#allocation14_spill]] (%p1999_p5) }
  0x6e   : > { %v717_v46 = vsel %vm2082_vm4, %v712_v36, %v716_v28  ;;  %v894_v49 = vrot.slane %v892_v39, 4  ;;  %v722_v51 = vrot.slane %v721_v41, 4  ;;  %v900_v53 = vrot.slane %v898_v42, 5  ;;  %v946_v24 = vld [vmem:[%s2111_s25 + $0x10] sm:$0xf] }
  0x6f   : > { %1555 = vmatmul.msk.bf16.vlgmr.msra.gmra.mxu3 %vm736_vm1, %v908_v40  ;;  %v732_v52 = vunpack.c.l.b16 %v717_v46  ;;  %v995_v55 = vrot.slane %v993_v44, 4  ;;  %v885_v56 = vor.u32 %v884_v47, %v881_v34  ;;  %v996_v58 = vshll.u32 %v942_v35, 16  ;;  %v947_v32 = vld [vmem:[%s2111_s25 + $0x14] sm:$0x1] }
  0x70   : > { %v895_v57 = vor.u32 %v894_v49, %v890_v48  ;;  %v1002_v59 = vshll.u32 %v943_v43, 16  ;;  %v727_v60 = vsel %vm2082_vm4, %v722_v51, %v726_v33  ;;  %v1006_v61 = vshrl.u32 %v943_v43, 16  ;;  %v1596_v33 = vld [vmem:[%s2116_s14] sm:$0xff] }
  0x71   : > { %v1012_v62 = vshll.u32 %v944_v50, 16  ;;  %v1131_v63 = vshrl.u32 %v1080_v45, 16  ;;  %v733_v0 = vunpack.c.l.b16 %v727_v60  ;;  %v886_v1 = vrot.slane %v885_v56, 4 }
  0x72   : > { %v896_v2 = vrot.slane %v895_v57, 4  ;;  %v998_v3 = vrot.slane %v996_v58, 5  ;;  %v1004_v4 = vrot.slane %v1002_v59, 5  ;;  %v1008_v5 = vrot.slane %v1006_v61, 4  ;;  %v1084_v57 = vld [vmem:[%s2116_s14 + $0x10] sm:$0xf] }
  0x73   : > { %v891_v7 = vsel %vm2082_vm4, %v886_v1, %v890_v48  ;;  %v1014_v10 = vrot.slane %v1012_v62, 5  ;;  %v735_v12 = vpack.c.b16 %v733_v0, %v732_v52  ;;  %v1133_v14 = vrot.slane %v1131_v63, 4  ;;  %s1598_s12 = sshll.u32 (%p1999_p5), %s2252_s16, 3 }
  0x74   : > { %v901_v8 = vsel %vm2082_vm4, %v896_v2, %v900_v53  ;;  %v999_v9 = vor.u32 %v998_v3, %v995_v55  ;;  %v1009_v13 = vor.u32 %v1008_v5, %v1004_v4  ;;  %v1134_v15 = vshll.u32 %v1080_v45, 16  ;;  %v1083_v55 = vld [vmem:[%s2116_s14 + $0xc] sm:$0xf]  ;;  %v1594_v2 = vld [vmem:[%s2111_s25] sm:$0xff]  ;;  %s1259_s27 = scalar_lea.vmem (%p1999_p5), %s2253_s7, %s1598_s12 }
  0x75   : > { %v906_v16 = vunpack.c.l.b16 %v891_v7  ;;  %v1140_v19 = vshll.u32 %v1081_v6, 16  ;;  %v1144_v20 = vshrl.u32 %v1081_v6, 16  ;;  %v907_v21 = vunpack.c.l.b16 %v901_v8 }
  0x76   : > { %v1000_v17 = vrot.slane %v999_v9, 4  ;;  %v1010_v22 = vrot.slane %v1009_v13, 4  ;;  %v1136_v23 = vrot.slane %v1134_v15, 5  ;;  %v1017_v25 = vshrl.u32 %v945_v11, 16 }
  0x77   : > { %v1142_v27 = vrot.slane %v1140_v19, 5  ;;  %v1146_v28 = vrot.slane %v1144_v20, 4  ;;  %v1150_v31 = vshll.u32 %v1082_v18, 16  ;;  %v1020_v36 = vshll.u32 %v945_v11, 16  ;;  %v1085_v11 = vld [vmem:[%s2116_s14 + $0x14] sm:$0x1] }
  0x78   : > { %v1005_v26 = vsel %vm2082_vm4, %v1000_v17, %v1004_v4  ;;  %v1015_v29 = vsel %vm2082_vm4, %v1010_v22, %v1014_v10  ;;  %v1019_v35 = vrot.slane %v1017_v25, 4  ;;  %v1026_v37 = vshll.u32 %v946_v24, 16 }
  0x79   : > { %v1042_v30 = vunpack.c.l.b16 %v1005_v26  ;;  %v1043_v34 = vunpack.c.l.b16 %v1015_v29  ;;  %v909_v38 = vpack.c.b16 %v907_v21, %v906_v16  ;;  %v1137_v39 = vor.u32 %v1136_v23, %v1133_v14  ;;  %v1595_v23 = vld [vmem:[%s2111_s25 + $0xc] sm:$0xff] }
  0x7a   : > { %v1147_v40 = vor.u32 %v1146_v28, %v1142_v27  ;;  %v1030_v41 = vshrl.u32 %v946_v24, 16  ;;  %v1022_v43 = vrot.slane %v1020_v36, 5  ;;  %v1028_v44 = vrot.slane %v1026_v37, 5 }
  0x7b   : > { %1532 = vmatmul.msk.bf16.gmra.mxu0 %vm736_vm1, %v735_v12  ;;  %v1046_v42 = vpack.c.b16 %v1043_v34, %v1042_v30  ;;  %v1036_v45 = vshll.u32 %v947_v32, 16  ;;  %v1138_v48 = vrot.slane %v1137_v39, 4  ;;  %v1152_v50 = vrot.slane %v1150_v31, 5  ;;  %v1597_v12 = vld [vmem:[%s2116_s14 + $0xc] sm:$0xff] }
  0x7c   : > { %v1032_v46 = vrot.slane %v1030_v41, 4  ;;  %v1023_v47 = vor.u32 %v1022_v43, %v1019_v35  ;;  %v1148_v49 = vrot.slane %v1147_v40, 4  ;;  %v1155_v60 = vshrl.u32 %v1083_v55, 16 }
  0x7d   : > { %1580 = vmatmul.msk.bf16.vlgmr.msrb.gmra.mxu2 %vm736_vm1, %v1596_v33  ;;  %1569 = vmatmul.msk.bf16.vlgmr.msrb.gmra.mxu1 %vm736_vm1, %v1046_v42  ;;  %v1038_v53 = vrot.slane %v1036_v45, 5  ;;  %v1143_v58 = vsel %vm2082_vm4, %v1138_v48, %v1142_v27  ;;  %v1158_v61 = vshll.u32 %v1083_v55, 16  ;;  %v1164_v0 = vshll.u32 %v1084_v57, 16 }
  0x7e   : > { %v1033_v51 = vor.u32 %v1032_v46, %v1028_v44  ;;  %v1024_v52 = vrot.slane %v1023_v47, 4  ;;  %v1153_v59 = vsel %vm2082_vm4, %v1148_v49, %v1152_v50  ;;  %v1168_v1 = vshrl.u32 %v1084_v57, 16 }
  0x7f   : > { %1556 = vmatmul.msk.bf16.gmra.mxu3 %vm736_vm1, %v909_v38  ;;  %v1180_v3 = vunpack.c.l.b16 %v1143_v58  ;;  %v1181_v4 = vunpack.c.l.b16 %v1153_v59  ;;  %v1157_v7 = vrot.slane %v1155_v60, 4  ;;  %v1160_v8 = vrot.slane %v1158_v61, 5 }
  0x80   : > { %v1034_v56 = vrot.slane %v1033_v51, 4  ;;  %v1029_v62 = vsel %vm2082_vm4, %v1024_v52, %v1028_v44  ;;  %v1166_v9 = vrot.slane %v1164_v0, 5  ;;  %v1170_v10 = vrot.slane %v1168_v1, 4  ;;  %v1723_v0 = vld [vmem:[%s2251_s17] ss:$0 sm:$0xff] }
  0x81   : > { %v1044_v5 = vunpack.c.l.b16 %v1029_v62  ;;  %v1184_v13 = vpack.c.b16 %v1181_v4, %v1180_v3  ;;  %v1161_v15 = vor.u32 %v1160_v8, %v1157_v7  ;;  %v1174_v17 = vshll.u32 %v1085_v11, 16 }
  0x82   : > { %v1039_v63 = vsel %vm2082_vm4, %v1034_v56, %v1038_v53  ;;  %v1171_v16 = vor.u32 %v1170_v10, %v1166_v9 }
  0x83   : > { %v1045_v6 = vunpack.c.l.b16 %v1039_v63  ;;  %v1162_v18 = vrot.slane %v1161_v15, 4  ;;  %v1176_v20 = vrot.slane %v1174_v17, 5 }
  0x84   : > { %v1172_v19 = vrot.slane %v1171_v16, 4 }
  0x85   : > { %v1047_v14 = vpack.c.b16 %v1045_v6, %v1044_v5  ;;  %v1167_v21 = vsel %vm2082_vm4, %v1162_v18, %v1166_v9 }
  0x86   : > { %v1177_v22 = vsel %vm2082_vm4, %v1172_v19, %v1176_v20  ;;  %v1182_v24 = vunpack.c.l.b16 %v1167_v21 }
  0x87   : > { %v1183_v25 = vunpack.c.l.b16 %v1177_v22 }
  0x89   : > { %v1185_v26 = vpack.c.b16 %v1183_v25, %v1182_v24 }
  0x8b   : > { %1566 = vmatmul.msk.bf16.vlgmr.msrb.gmra.mxu0 %vm736_vm1, %v1594_v2 }
  0x8d   : > { %1581 = vmatmul.msk.bf16.gmra.mxu2 %vm736_vm1, %v1597_v12  ;;  %1570 = vmatmul.msk.bf16.gmra.mxu1 %vm736_vm1, %v1047_v14 }
  0x8f   : > { %1583 = vmatmul.msk.bf16.vlgmr.msrb.gmra.mxu3 %vm736_vm1, %v1184_v13 }
  0x9b   : > { %1567 = vmatmul.msk.bf16.gmra.mxu0 %vm736_vm1, %v1595_v23 }
  0x9f   : > { %1584 = vmatmul.msk.bf16.gmra.mxu3 %vm736_vm1, %v1185_v26 }
  0xda   : > { %v794_v27 = vpop.f32.mrf.mxu1 }
  0xe0   : > { %v840_v28 = vpop.f32.mrf.mxu2 }
  0xe2   : > { %v796_v29 = vpop.f32.mrf.mxu1 }
  0xe8   : > { %v756_v30 = vpop.f32.mrf.mxu0  ;;  %v842_v31 = vpop.f32.mrf.mxu2 }
  0xe9   : > { %v795_v40 = vadd.f32 %v794_v27, %v756_v30 }
  0xea   : > { %v799_v33 = vpop.f32.mrf.mxu1 }
  0xeb   : > { %v850_v43 = vadd.f32 %v840_v28, %v795_v40 }
  0xf0   : > { %v758_v32 = vpop.f32.mrf.mxu0  ;;  %v845_v35 = vpop.f32.mrf.mxu2 }
  0xf1   : > { %v797_v47 = vadd.f32 %v796_v29, %v758_v32 }
  0xf2   : > { %v928_v34 = vpop.f32.mrf.mxu3  ;;  %v801_v37 = vpop.f32.mrf.mxu1 }
  0xf3   : > { %v938_v44 = vadd.f32 %v928_v34, %v850_v43  ;;  %v851_v50 = vadd.f32 %v842_v31, %v797_v47 }
  0xf8   : > { %v761_v36 = vpop.f32.mrf.mxu0  ;;  %v847_v38 = vpop.f32.mrf.mxu2 }
  0xf9   : > { %v800_v56 = vadd.f32 %v799_v33, %v761_v36 }
  0xfa   : > { %v930_v54 = vpop.f32.mrf.mxu3  ;;  %v1066_v42 = vpop.f32.mrf.mxu1 }
  0xfb   : > { %v939_v53 = vadd.f32 %v930_v54, %v851_v50  ;;  %v852_v62 = vadd.f32 %v845_v35, %v800_v56 }
 0x100   : > { %v763_v39 = vpop.f32.mrf.mxu0  ;;  %v1116_v45 = vpop.f32.mrf.mxu2 }
 0x101   : > { %v802_v5 = vadd.f32 %v801_v37, %v763_v39 }
 0x102   : > { %v933_v41 = vpop.f32.mrf.mxu3  ;;  %v1068_v52 = vpop.f32.mrf.mxu1 }
 0x103   : > { %v940_v1 = vadd.f32 %v933_v41, %v852_v62  ;;  %v853_v11 = vadd.f32 %v847_v38, %v802_v5 }
 0x108   : > { %v978_v46 = vpop.f32.mrf.mxu0  ;;  %v1118_v59 = vpop.f32.mrf.mxu2 }
 0x109   : > { %v988_v48 = vadd.f32 %v978_v46, %v938_v44 }
 0x10a   : > { %v935_v49 = vpop.f32.mrf.mxu3  ;;  %v1071_v3 = vpop.f32.mrf.mxu1 }
 0x10b   : > { %v1076_v51 = vadd.f32 %v1066_v42, %v988_v48  ;;  %v941_v15 = vadd.f32 %v935_v49, %v853_v11 }
 0x10d   : > { %v1126_v57 = vadd.f32 %v1116_v45, %v1076_v51 }
 0x110   : > { %v980_v55 = vpop.f32.mrf.mxu0  ;;  %v1121_v10 = vpop.f32.mrf.mxu2 }
 0x111   : > { %v989_v58 = vadd.f32 %v980_v55, %v939_v53 }
 0x112   : > { %v1204_v60 = vpop.f32.mrf.mxu3  ;;  %v1073_v23 = vpop.f32.mrf.mxu1 }
 0x113   : > { %v1077_v61 = vadd.f32 %v1068_v52, %v989_v58  ;;  %v1214_v63 = vadd.f32 %v1204_v60, %v1126_v57 }
 0x115   : > { %v1127_v2 = vadd.f32 %v1118_v59, %v1077_v61  ;;  %v1222_v6 = vadd.f32 %v1723_v0, %v1214_v63 }
 0x117   : > { %v1230_v12 = vmul.f32 0.01, %v1222_v6  ;;  %vm1226_vm5 = vcmp.ge.f32.partialorder %v1222_v6, 0.0 }
 0x118   : > { %v983_v4 = vpop.f32.mrf.mxu0  ;;  %v1123_v27 = vpop.f32.mrf.mxu2 }
 0x119   : > { %v990_v7 = vadd.f32 %v983_v4, %v940_v1  ;;  %v1234_v18 = vsel %vm1226_vm5, %v1222_v6, %v1230_v12 }
 0x11a   : > { %v1206_v8 = vpop.f32.mrf.mxu3 }
 0x11b   : > { %v1215_v9 = vadd.f32 %v1206_v8, %v1127_v2  ;;  %v1078_v14 = vadd.f32 %v1071_v3, %v990_v7 }
 0x11d   : > { %v1223_v13 = vadd.f32 %v1723_v0, %v1215_v9  ;;  %v1128_v20 = vadd.f32 %v1121_v10, %v1078_v14 }
 0x11f   : > { %vm1227_vm6 = vcmp.ge.f32.partialorder %v1223_v13, 0.0  ;;  %v1231_v16 = vmul.f32 0.01, %v1223_v13 }
 0x120   : > { %v985_v17 = vpop.f32.mrf.mxu0 }
 0x121   : > { %v1235_v19 = vsel %vm1227_vm6, %v1223_v13, %v1231_v16  ;;  %v991_v21 = vadd.f32 %v985_v17, %v941_v15 }
 0x122   : > { %v1602_v22 = vpack.c.bf16 %v1235_v19, %v1234_v18  ;;  %v1209_v24 = vpop.f32.mrf.mxu3 }
 0x123   : > { %v1079_v25 = vadd.f32 %v1073_v23, %v991_v21  ;;  %v1216_v26 = vadd.f32 %v1209_v24, %v1128_v20 }
 0x124   : > { %1603 = vst [vmem:[%s649_s21] sm:$0xff] %v1602_v22  }
 0x125   : > { %v1129_v28 = vadd.f32 %v1123_v27, %v1079_v25  ;;  %v1224_v29 = vadd.f32 %v1723_v0, %v1216_v26 }
 0x127   : > { %v1232_v32 = vmul.f32 0.01, %v1224_v29  ;;  %vm1228_vm7 = vcmp.ge.f32.partialorder %v1224_v29, 0.0 }
 0x129   : > { %v1236_v35 = vsel %vm1228_vm7, %v1224_v29, %v1232_v32 }
 0x12a   : > { %v1211_v30 = vpop.f32.mrf.mxu3 }
 0x12b   : > { %v1217_v31 = vadd.f32 %v1211_v30, %v1129_v28  ;;  %v1276_v37 = vld [vmem:[%s649_s21] sm:$0xff] (%p1999_p5)  }
 0x12c   : > { %1277 = vst [vmem:[%s1259_s27] sm:$0xff] (%p1999_p5), %v1276_v37  }
 0x12d   : > { %v1225_v33 = vadd.f32 %v1723_v0, %v1217_v31 }
 0x12f   : > { %vm1229_vm8 = vcmp.ge.f32.partialorder %v1225_v33, 0.0  ;;  %v1233_v34 = vmul.f32 0.01, %v1225_v33 }
 0x130   : > { %1252 = sbr.rel (!%p1999_p5) target bundleno = 317 (0x13d), region = 212 }
 0x131   : > { %v1237_v36 = vsel %vm1229_vm8, %v1225_v33, %v1233_v34 }
 0x132   : > { %v1607_v54 = vpack.c.bf16 %v1237_v36, %v1236_v35 }
 0x134   : > { %1609 = vst [vmem:[%s649_s21 + $0x8] sm:$0xff] %v1607_v54  }
 0x13b   : > { %v1280_v38 = vld [vmem:[%s649_s21 + $0x8] sm:$0xff]  }
 0x13c   : > { %1281 = vst [vmem:[%s1259_s27 + $0x80] sm:$0xff] %v1280_v38  }
 0x13d PF: > { %s16_s9 = sadd.s32 1, %s1826_s9   ;;  %s2255_s19 = sld [smem:[#allocation12_spill]] }
 0x13e   : > { %p2180_p8 = scmp.ge.s32.totalorder %s16_s9, 18   ;;  %s2256_s29 = sld [smem:[#allocation8_spill]] }
 0x13f   : > { %s2257_s30 = sld [smem:[#allocation11_spill]]  ;;  %s2260_s21 = smov %s1782_s22 }
 0x140   : > { %s2258_s13 = sld [smem:[#allocation10_spill]]  ;;  %s2261_s22 = smov %s1995_s15 }
 0x141   : > { %s2262_s23 = smov %s1790_s24  ;;  %s2263_s24 = smov %s1983_s5 }
 0x142   : > { %s2264_s25 = smov %s1798_s26  ;;  %s2265_s26 = smov %s1969_s10 }
 0x143   : > { %s2266_s27 = smov %s1806_s28  ;;  %s2267_s28 = smov %s2255_s19 }
 0x144   : > { %s2268_s7 = smov %s1822_s8  ;;  %15 = sbr.rel (!%p2180_p8) target bundleno = 10 (0xa), region = 321 }
 0x146   : > { %s2269_s8 = smov %s2258_s13 }

// kernel: clagnosco_encoder.9
= control target key start
LH: loop header
LB: loop body
LE: loop exit
PB: predicated region body
PF: predicated region fallthrough
CT: control target
= control target key end

     0   :  { %s409_s6 = smov 0   ;;  %s411_s7 = smov 0   ;;  %s474_s0 = inlined_call_operand.vmem [shape: bf16[2,8,8,128], index: 0, kind: input, shape index: {}]   ;;  %s475_s1 = inlined_call_operand.vmem [shape: bf16[2,4,4,128], index: 1, kind: output, shape index: {}]  }
   0x1   :  { %s413_s8 = smov 0   ;;  %s415_s9 = smov 0  }
   0x2   :  { %s417_s10 = smov 0  }
   0x3 LB: > { %s20_s11 = sadd.s32 1, %s388_s8  ;;  %s23_s12 = sadd.s32 1, %s392_s9  ;;  %s396_s10 = sphi %s417_s10, %s11_s10   ;;  %s392_s9 = sphi %s415_s9, %s479_s9   ;;  %s388_s8 = sphi %s413_s8, %s478_s8   ;;  %s384_s7 = sphi %s411_s7, %s477_s7   ;;  %s380_s6 = sphi %s409_s6, %s476_s6  }
   0x4   : > { %p21_p0 = scmp.ge.s32.totalorder %s20_s11, 4  ;;  %p303_p1 = scmp.ge.s32.totalorder %s396_s10, 1 }
   0x5   : > { %p108_p2 = scmp.lt.s32.totalorder %s396_s10, 9 }
   0x6   : > { %s481_s11 = smov (%p21_p0, %s20_s11), 0  ;;  %s483_s12 = smov (!%p21_p0, %s23_s12), %s392_s9 }
   0x7   : > { %p109_p3 = pnand %p303_p1, %p108_p2  ;;  %p25_p4 = scmp.ge.s32.totalorder %s483_s12, 2 }
   0x8   : > { %s304_s13 = sshll.u32 (!%p109_p3), %s380_s6, 1  ;;  %p136_p5 = scmp.lt.s32.totalorder (!%p109_p3), %s384_s7, 1 }
   0x9   : > { %s485_s12 = smov (%p25_p4, %s483_s12), 0  ;;  %112 = sbr.rel (%p109_p3) target bundleno = 56 (0x38), region = 24 }
   0xa   : > { %p138_p6 = scmp.lt.s32.totalorder (!%p109_p3), %s304_s13, 7  ;;  %p147_p7 = scmp.lt.s32.totalorder (!%p109_p3), %s380_s6, 3 }
   0xe   : > { %v398_v0 = vmov 2.0   ;;  %s487_s7 = smov (!%p136_p5, %s384_s7), 1  ;;  %s489_s13 = smov (!%p138_p6, %s304_s13), 7  ;;  %vm166_vm1 = vcmask 1041408   ;;  %vm206_vm2 = vcmask 1040384   ;;  %vm209_vm3 = vcmask 1042432  }
   0xf   : > { %356 = vrcp.f32 %v398_v0  ;;  %s305_s14 = sshll.u32 %s487_s7, 3  ;;  %s491_s6 = smov (!%p147_p7, %s380_s6), 3 }
  0x10   : > { %s141_s15 = sadd.s32 %s305_s14, %s489_s13  ;;  %s307_s20 = sshll.u32 %s487_s7, 2 }
  0x11   : > { %s306_s16 = sshll.u32 %s141_s15, 2  ;;  %s150_s21 = sadd.s32 %s307_s20, %s491_s6 }
  0x12   : > { %s143_s19 = scalar_lea.vmem %s474_s0, %s306_s16  ;;  %s308_s22 = sshll.u32 %s150_s21, 1 }
  0x13   : > { %v312_v2 = vld [vmem:[%s143_s19] sm:$0xff]   ;;  %s152_s25 = scalar_lea.vmem %s475_s1, %s308_s22 }
  0x14   : > { %v313_v4 = vunpack.c.l.bf16 %v312_v2  ;;  %v314_v5 = vunpack.c.h.bf16 %v312_v2 }
  0x15   : > { %v357_v1 = vpop.eup %356 }
  0x16   : > { %v159_v3 = vmul.f32 2.0, %v357_v1  ;;  %v157_v8 = vadd.f32 %v314_v5, %v313_v4  ;;  %vm163_vm0 = vweird.f32 %v357_v1 }
  0x18   : > { %v160_v6 = vsub.f32 1.0, %v159_v3 }
  0x1a   : > { %v161_v7 = vmul.f32 %v357_v1, %v160_v6 }
  0x1c   : > { %v162_v9 = vadd.f32 %v357_v1, %v161_v7 }
  0x1e   : > { %v164_v10 = vsel %vm163_vm0, %v357_v1, %v162_v9 }
  0x1f   : > { %v165_v11 = vmul.f32 %v164_v10, %v157_v8 }
  0x21   : > { %v167_v12 = vsel %vm166_vm1, %v165_v11, 0.0  ;;  %v176_v13 = vrot.slane %v165_v11, 2  ;;  %v186_v14 = vrot.slane %v165_v11, 4  ;;  %v196_v15 = vrot.slane %v165_v11, 6 }
  0x22   : > { %v168_v16 = vrot.slane %v167_v12, 4 }
  0x23   : > { %v178_v17 = vsel %vm166_vm1, %v176_v13, 0.0  ;;  %v188_v18 = vsel %vm166_vm1, %v186_v14, 0.0  ;;  %v198_v19 = vsel %vm166_vm1, %v196_v15, 0.0 }
  0x24   : > { %v169_v20 = vadd.f32 %v168_v16, %v167_v12  ;;  %v179_v21 = vrot.slane %v178_v17, 4  ;;  %v189_v22 = vrot.slane %v188_v18, 4  ;;  %v199_v23 = vrot.slane %v198_v19, 4 }
  0x26   : > { %v170_v24 = vrot.slane %v169_v20, 2  ;;  %v180_v25 = vadd.f32 %v179_v21, %v178_v17  ;;  %v190_v26 = vadd.f32 %v189_v22, %v188_v18  ;;  %v200_v27 = vadd.f32 %v199_v23, %v198_v19 }
  0x28   : > { %v171_v28 = vadd.f32 %v170_v24, %v169_v20  ;;  %v181_v29 = vrot.slane %v180_v25, 2  ;;  %v191_v30 = vrot.slane %v190_v26, 2  ;;  %v201_v31 = vrot.slane %v200_v27, 2 }
  0x2a   : > { %v172_v32 = vrot.slane %v171_v28, 1  ;;  %v182_v33 = vadd.f32 %v181_v29, %v180_v25  ;;  %v192_v34 = vadd.f32 %v191_v30, %v190_v26  ;;  %v202_v35 = vadd.f32 %v201_v31, %v200_v27 }
  0x2c   : > { %v173_v36 = vadd.f32 %v172_v32, %v171_v28  ;;  %v183_v37 = vrot.slane %v182_v33, 1  ;;  %v193_v38 = vrot.slane %v192_v34, 1  ;;  %v203_v39 = vrot.slane %v202_v35, 1 }
  0x2e   : > { %v174_v40 = vmul.f32 %v173_v36, %v164_v10  ;;  %v184_v41 = vadd.f32 %v183_v37, %v182_v33  ;;  %v194_v42 = vadd.f32 %v193_v38, %v192_v34  ;;  %v204_v43 = vadd.f32 %v203_v39, %v202_v35 }
  0x30   : > { %v185_v44 = vmul.f32 %v184_v41, %v164_v10  ;;  %v195_v45 = vmul.f32 %v194_v42, %v164_v10  ;;  %v205_v46 = vmul.f32 %v204_v43, %v164_v10 }
  0x32   : > { %v207_v47 = vsel %vm206_vm2, %v174_v40, %v185_v44 }
  0x33   : > { %v208_v48 = vsel %vm166_vm1, %v207_v47, %v195_v45 }
  0x34   : > { %v210_v49 = vsel %vm209_vm3, %v208_v48, %v205_v46 }
  0x35   : > { %v211_v50 = vpack.c.bf16 %v210_v49, %v210_v49 }
  0x37   : > { %212 = vst [vmem:[%s152_s25] sm:$0x3] %v211_v50 }
  0x38 PF: > { %s11_s10 = sadd.s32 1, %s396_s10   ;;  %s476_s6 = smov %s388_s8 }
  0x39   : > { %p8_p8 = scmp.ge.s32.totalorder %s11_s10, 10   ;;  %s477_s7 = smov %s392_s9 }
  0x3a   : > { %s478_s8 = smov %s481_s11  ;;  %s479_s9 = smov %s485_s12 }
  0x3b   :  { %10 = sbr.rel (!%p8_p8) target bundleno = 3 (0x3), region = 54 }

// kernel: clagnosco_encoder.8
= control target key start
LH: loop header
LB: loop body
LE: loop exit
PB: predicated region body
PF: predicated region fallthrough
CT: control target
= control target key end

     0   :  { %s2349_s18 = smov 0   ;;  %s2351_s19 = smov 0   ;;  %s2821_s0 = inlined_call_operand.vmem [shape: bf16[2,10,10,128], index: 0, kind: input, shape index: {}, may-alias: {0,1,2}]   ;;  %s2822_s1 = inlined_call_operand.vmem [shape: bf16[2,10,10,128], index: 1, kind: input, shape index: {}, may-alias: {0,1,2}]   ;;  %s2823_s2 = inlined_call_operand.vmem [shape: bf16[2,10,10,128], index: 2, kind: input, shape index: {}, may-alias: {0,1,2}]   ;;  %s2824_s3 = inlined_call_operand.vmem [shape: bf16[3,3,128,128], index: 3, kind: input, shape index: {}]   ;;  %s2825_s4 = inlined_call_operand.vmem [shape: f32[1,128], index: 4, kind: input, shape index: {}]   ;;  %s2826_s5 = inlined_call_operand.vmem [shape: bf16[2,8,8,128], index: 5, kind: output, shape index: {}]  }
   0x1   :  { %s2353_s20 = smov 0   ;;  %s2355_s21 = smov 0  }
   0x2   :  { %s2357_s22 = smov 0   ;;  %s2359_s23 = smov 0  }
   0x3   :  { %s2361_s24 = smov 0   ;;  %s2363_s25 = smov 0  }
   0x4   :  { %s2365_s26 = smov 0  }
   0x5 LB: > { %2829 = sst [smem:[#allocation6_spill]] %s2305_s23  ;;  %s1625_s27 = sadd.s32 4294967295, %s2317_s26   ;;  %s2317_s26 = sphi %s2365_s26, %s15_s26   ;;  %s2313_s25 = sphi %s2363_s25, %s2848_s25   ;;  %s2309_s24 = sphi %s2361_s24, %s2847_s24   ;;  %s2305_s23 = sphi %s2359_s23, %s2841_s23   ;;  %s2301_s22 = sphi %s2357_s22, %s2840_s22   ;;  %s2297_s21 = sphi %s2355_s21, %s2846_s21   ;;  %s2293_s20 = sphi %s2353_s20, %s2845_s20   ;;  %s2289_s19 = sphi %s2351_s19, %s2844_s19   ;;  %s2285_s18 = sphi %s2349_s18, %s2843_s18  }
   0x6   : > { %s27_s28 = sadd.s32 1, %s2313_s25  ;;  %s43_s29 = sadd.s32 1, %s2305_s23 }
   0x7   : > { %p28_p0 = scmp.ge.s32.totalorder %s27_s28, 8  ;;  %p50_p1 = scmp.ne.s32.totalorder %s2305_s23, %s2301_s22 }
   0x8   : > { %p51_p2 = scmp.eq.s32.totalorder %s2317_s26, 0  ;;  %s73_s7 = sadd.s32 1, %s2297_s21 }
   0x9   : > { %s2400_s30 = scalar_select %p28_p0, 0, %s27_s28  }
   0xa   : > { %p2407_p3 = por %p51_p2, %p50_p1  ;;  %p80_p6 = scmp.ne.s32.totalorder %s2297_s21, %s2293_s20 }
   0xb   : > { %2830 = sst [smem:[#allocation7_spill]] %s2400_s30  ;;  %s39_s8 = ssub.s32 %s2313_s25, %s2400_s30 }
   0xc   : > { %s67_s9 = sadd.s32 1, %s2400_s30  ;;  %p41_p4 = scmp.eq.s32.totalorder %s39_s8, 0 }
   0xd   : > { %s69_s10 = ssub.s32 %s27_s28, %s67_s9  ;;  %p2425_p7 = por %p80_p6, %p51_p2 }
   0xe   : > { %p71_p5 = scmp.eq.s32.totalorder %s69_s10, 0  ;;  %s96_s14 = sadd.s32 2, %s2313_s25 }
   0xf   : > { %s2418_s11 = scalar_select %p41_p4, %s2305_s23, %s43_s29  }
  0x10   : > { %s2421_s12 = scalar_select %p71_p5, %s2297_s21, %s73_s7  }
  0x11   : > { %2832 = sst [smem:[#allocation8_spill]] %s2418_s11  ;;  %s97_s15 = sadd.s32 2, %s2400_s30 }
  0x12   : > { %s103_s16 = sadd.s32 1, %s2289_s19  ;;  %s99_s17 = ssub.s32 %s96_s14, %s97_s15 }
  0x13   : > { %p110_p8 = scmp.ne.s32.totalorder %s2289_s19, %s2285_s18  ;;  %p101_p9 = scmp.eq.s32.totalorder %s99_s17, 0 }
  0x14   : > { %p196_p10 = scmp.eq.s32.totalorder %s1625_s27, 7  ;;  %p1630_p13 = scmp.ge.s32.totalorder %s2317_s26, 8 }
  0x15   : > { %p2436_p11 = por %p110_p8, %p51_p2 }
  0x16   : > { %s2441_s29 = scalar_select %p101_p9, %s2289_s19, %s103_s16  }
  0x17   : > { %p2446_p12 = por %p196_p10, %p50_p1  ;;  %231 = sbr.rel (%p1630_p13) target bundleno = 46 (0x2e), region = 24 }
  0x1c   : > { %234 = sbr.rel (!%p2407_p3) target bundleno = 34 (0x22), region = 28  ;;  %s236_s27 = sand.u32 (%p2407_p3), 1, %s2305_s23  }
  0x1d   : > { %s2091_s8 = sshll.u32 (%p2407_p3), %s2313_s25, 3  ;;  %s1631_s9 = sshll.u32 (%p2407_p3), %s236_s27, 4 }
  0x1e   : > { %s244_s15 = scalar_lea.vmem (%p2407_p3), %s2821_s0, %s2091_s8  ;;  %s238_s16 = scalar_lea.vmem (%p2407_p3), [#allocation2], %s1631_s9 }
  0x1f   : > { %v261_v0 = vld [vmem:[%s244_s15] sm:$0xff] (%p2407_p3)   ;;  %v265_v1 = vld [vmem:[%s244_s15 + $0x50] sm:$0xff] (%p2407_p3)  }
  0x20   : > { %262 = vst [vmem:[%s238_s16] sm:$0xff] (%p2407_p3), %v261_v0  }
  0x21   : > { %266 = vst [vmem:[%s238_s16 + $0x8] sm:$0xff] %v265_v1  }
  0x22 PF: > { %300 = sbr.rel (!%p2425_p7) target bundleno = 40 (0x28), region = 69  ;;  %s302_s6 = sand.u32 (%p2425_p7), 1, %s2297_s21  }
  0x23   : > { %s2092_s17 = sshll.u32 (%p2425_p7), %s2313_s25, 3  ;;  %s1634_s30 = sshll.u32 (%p2425_p7), %s302_s6, 4 }
  0x24   : > { %s1508_s23 = scalar_lea.vmem (%p2425_p7), %s2822_s1, %s2092_s17  ;;  %s304_s8 = scalar_lea.vmem (%p2425_p7), [#allocation3], %s1634_s30 }
  0x25   : > { %v1637_v2 = vld [vmem:[%s1508_s23 + $0x8] sm:$0xff] (%p2425_p7)   ;;  %v1639_v3 = vld [vmem:[%s1508_s23 + $0x58] sm:$0xff] (%p2425_p7)  }
  0x26   : > { %329 = vst [vmem:[%s304_s8] sm:$0xff] (%p2425_p7), %v1637_v2  }
  0x27   : > { %333 = vst [vmem:[%s304_s8 + $0x8] sm:$0xff] %v1639_v3  }
  0x28 PF: > { %367 = sbr.rel (!%p2436_p11) target bundleno = 46 (0x2e), region = 110  ;;  %s369_s13 = sand.u32 (%p2436_p11), 1, %s2289_s19  }
  0x29   : > { %s2093_s9 = sshll.u32 (%p2436_p11), %s2313_s25, 3  ;;  %s1641_s10 = sshll.u32 (%p2436_p11), %s369_s13, 4 }
  0x2a   : > { %s1516_s16 = scalar_lea.vmem (%p2436_p11), %s2823_s2, %s2093_s9  ;;  %s371_s11 = scalar_lea.vmem (%p2436_p11), [#allocation4], %s1641_s10 }
  0x2b   : > { %v1644_v4 = vld [vmem:[%s1516_s16 + $0x10] sm:$0xff] (%p2436_p11)   ;;  %v1646_v5 = vld [vmem:[%s1516_s16 + $0x60] sm:$0xff] (%p2436_p11)  }
  0x2c   : > { %396 = vst [vmem:[%s371_s11] sm:$0xff] (%p2436_p11), %v1644_v4  }
  0x2d   : > { %400 = vst [vmem:[%s371_s11 + $0x8] sm:$0xff] %v1646_v5  }
  0x2e PF: > { %p1648_p0 = scmp.ge.s32.totalorder %s2317_s26, 1  ;;  %p433_p1 = scmp.lt.s32.totalorder %s2317_s26, 9 }
  0x30   : > { %p434_p2 = pnand %p1648_p0, %p433_p1 }
  0x31   : > { %s440_s14 = sand.u32 (!%p434_p2), 1, %s2301_s22   ;;  %s447_s15 = sand.u32 (!%p434_p2), 1, %s2293_s20  }
  0x32   : > { %437 = sbr.rel (%p434_p2) target bundleno = 304 (0x130), region = 151  ;;  %s1649_s30 = sshll.u32 (!%p434_p2), %s440_s14, 4 }
  0x33   : > { %s2540_s17 = scalar_lea.vmem (!%p434_p2), [#allocation2], %s1649_s30  ;;  %s1650_s30 = sshll.u32 (!%p434_p2), %s447_s15, 4 }
  0x34   : > { %s454_s13 = sand.u32 (!%p434_p2), 1, %s2285_s18   ;;  %s2615_s28 = scalar_lea.vmem (!%p434_p2), [#allocation3], %s1650_s30 }
  0x35   : > { %s1651_s23 = sshll.u32 (!%p434_p2), %s454_s13, 4 }
  0x36   : > { %s2637_s8 = scalar_lea.vmem (!%p434_p2), [#allocation4], %s1651_s23 }
  0x37   : > { %v2110_v6 = vld [vmem:[%s2824_s3 + $0x78] sm:$0xff]  ;;  %v2109_v10 = vld [vmem:[%s2824_s3 + $0x70] sm:$0xff]  ;;  %v2108_v14 = vld [vmem:[%s2824_s3 + $0x68] sm:$0xff]  ;;  %vm528_vm0 = vsmask.f32 3328  ;;  %vm712_vm1 = vcmask 1042432  }
  0x38   : > { %v2118_v7 = vld [vmem:[%s2824_s3 + $0xb8] sm:$0xff]  ;;  %628 = vmatpush.bf16.msra.mxu0 %v2110_v6  ;;  %v2117_v11 = vld [vmem:[%s2824_s3 + $0xb0] sm:$0xff]  ;;  %v2116_v15 = vld [vmem:[%s2824_s3 + $0xa8] sm:$0xff]  ;;  %vm713_vm2 = vcmask 1046532   ;;  %vm529_vm3 = vsmask.f32 7440 }
  0x39   : > { %v2102_v8 = vld [vmem:[%s2824_s3 + $0x38] sm:$0xff]  ;;  %792 = vmatpush.bf16.msra.mxu2 %v2118_v7  ;;  %v2101_v12 = vld [vmem:[%s2824_s3 + $0x30] sm:$0xff]  ;;  %v2100_v16 = vld [vmem:[%s2824_s3 + $0x28] sm:$0xff]  ;;  %s2088_s20 = sshll.u32 (%p2446_p12), %s2309_s24, 2 }
  0x3a   : > { %v2127_v9 = vld [vmem:[%s2824_s3 + $0xf8] sm:$0xff]  ;;  %696 = vmatpush.bf16.msra.mxu1 %v2102_v8  ;;  %v2126_v13 = vld [vmem:[%s2824_s3 + $0xf0] sm:$0xff]  ;;  %v2125_v17 = vld [vmem:[%s2824_s3 + $0xe8] sm:$0xff]  ;;  %s1434_s9 = scalar_lea.vmem (%p2446_p12), %s2826_s5, %s2088_s20 }
  0x3b   : > { %883 = vmatpush.bf16.msra.mxu3 %v2127_v9  ;;  %v2107_v18 = vld [vmem:[%s2824_s3 + $0x60] sm:$0xff]  ;;  %v2106_v22 = vld [vmem:[%s2824_s3 + $0x58] sm:$0xff]  ;;  %v2105_v26 = vld [vmem:[%s2824_s3 + $0x50] sm:$0xff] }
  0x3c   : > { %629 = vmatpush.bf16.msra.mxu0 %v2109_v10  ;;  %v2115_v19 = vld [vmem:[%s2824_s3 + $0xa0] sm:$0xff]  ;;  %v2114_v23 = vld [vmem:[%s2824_s3 + $0x98] sm:$0xff]  ;;  %v2113_v35 = vld [vmem:[%s2824_s3 + $0x90] sm:$0xff] }
  0x3d   : > { %793 = vmatpush.bf16.msra.mxu2 %v2117_v11  ;;  %v2099_v20 = vld [vmem:[%s2824_s3 + $0x20] sm:$0xff]  ;;  %v2098_v24 = vld [vmem:[%s2824_s3 + $0x18] sm:$0xff]  ;;  %v2097_v39 = vld [vmem:[%s2824_s3 + $0x10] sm:$0xff] }
  0x3e   : > { %697 = vmatpush.bf16.msra.mxu1 %v2101_v12  ;;  %v2124_v21 = vld [vmem:[%s2824_s3 + $0xe0] sm:$0xff]  ;;  %v2123_v25 = vld [vmem:[%s2824_s3 + $0xd8] sm:$0xff]  ;;  %v2122_v40 = vld [vmem:[%s2824_s3 + $0xd0] sm:$0xff] }
  0x3f   : > { %884 = vmatpush.bf16.msra.mxu3 %v2126_v13  ;;  %v508_v27 = vld [vmem:[%s2540_s17] sm:$0xf]  ;;  %v509_v28 = vld [vmem:[%s2540_s17 + $0x4] sm:$0x1]  ;;  %v510_v29 = vld [vmem:[%s2540_s17 + $0x8] sm:$0xf] }
  0x40   : > { %630 = vmatpush.bf16.msra.mxu0 %v2108_v14  ;;  %v511_v30 = vld [vmem:[%s2540_s17 + $0xc] sm:$0x1]  ;;  %v532_v31 = vshrl.u32 %v508_v27, 16  ;;  %v535_v32 = vshll.u32 %v508_v27, 16  ;;  %v541_v33 = vshll.u32 %v509_v28, 16  ;;  %v546_v34 = vshrl.u32 %v510_v29, 16  ;;  %vm2557_vm4 = vmor %vm712_vm1, %vm713_vm2 }
  0x41   : > { %794 = vmatpush.bf16.msra.mxu2 %v2116_v15  ;;  %v549_v36 = vshll.u32 %v510_v29, 16  ;;  %v555_v37 = vshll.u32 %v511_v30, 16  ;;  %v1737_v38 = vrot.slane %v508_v27, 9  ;;  %v717_v44 = vrot.slane %v509_v28, 5  ;;  %v2104_v51 = vld [vmem:[%s2824_s3 + $0x48] sm:$0xff]  ;;  %vm2570_vm5 = vmor %vm528_vm0, %vm529_vm3  ;;  %v2103_v63 = vld [vmem:[%s2824_s3 + $0x40] sm:$0xff] }
  0x42   : > { %698 = vmatpush.bf16.msra.mxu1 %v2100_v16  ;;  %v534_v41 = vrot.slane %v532_v31, 4  ;;  %v537_v42 = vrot.slane %v535_v32, 5  ;;  %v548_v43 = vrot.slane %v546_v34, 4  ;;  %v1738_v47 = vrot.slane %v510_v29, 9  ;;  %v2112_v52 = vld [vmem:[%s2824_s3 + $0x88] sm:$0xff]  ;;  %v2111_v0 = vld [vmem:[%s2824_s3 + $0x80] sm:$0xff] }
  0x43   : > { %885 = vmatpush.bf16.msra.mxu3 %v2125_v17  ;;  %v551_v45 = vrot.slane %v549_v36, 5  ;;  %v543_v49 = vrot.slane %v541_v33, 5  ;;  %v721_v50 = vrot.slane %v511_v30, 5  ;;  %v557_v55 = vrot.slane %v555_v37, 5  ;;  %v2096_v56 = vld [vmem:[%s2824_s3 + $0x8] sm:$0xff]  ;;  %v2135_v1 = vld [vmem:[%s2824_s3 + $0x138] sm:$0xff] }
  0x44   : > { %631 = vmatpush.bf16.msra.mxu0 %v2107_v18  ;;  %v538_v48 = vor.u32 %v537_v42, %v534_v41  ;;  %v2121_v57 = vld [vmem:[%s2824_s3 + $0xc8] sm:$0xff]  ;;  %v718_v59 = vsel %vm2557_vm4, %v1737_v38, %v717_v44  ;;  %v2152_v6 = vld [vmem:[%s2824_s3 + $0x1b8] sm:$0xff]  ;;  %v2095_v7 = vld [vmem:[%s2824_s3] sm:$0xff] }
  0x45   : > { %795 = vmatpush.bf16.msra.mxu2 %v2115_v19  ;;  %v552_v54 = vor.u32 %v551_v45, %v548_v43  ;;  %v722_v60 = vsel %vm2557_vm4, %v1738_v47, %v721_v50  ;;  %v740_v4 = vunpack.c.l.b16 %v718_v59  ;;  %v2120_v8 = vld [vmem:[%s2824_s3 + $0xc0] sm:$0xff]  ;;  %v2143_v10 = vld [vmem:[%s2824_s3 + $0x178] sm:$0xff]  ;;  %v2134_v18 = vld [vmem:[%s2824_s3 + $0x130] sm:$0xff] }
  0x46   : > { %699 = vmatpush.bf16.msra.mxu1 %v2099_v20  ;;  %v539_v58 = vrot.slane %v538_v48, 4  ;;  %v741_v5 = vunpack.c.l.b16 %v722_v60  ;;  %v2160_v11 = vld [vmem:[%s2824_s3 + $0x1f8] sm:$0xff]  ;;  %v1703_v12 = vld [vmem:[%s2540_s17] sm:$0xf]  ;;  %v2133_v28 = vld [vmem:[%s2824_s3 + $0x128] sm:$0xff] }
  0x47   : > { %886 = vmatpush.bf16.msra.mxu3 %v2124_v21  ;;  %v553_v61 = vrot.slane %v552_v54, 4  ;;  %v2094_v13 = vld [vmem:[%s2540_s17 + $0x4] sm:$0xf0]  ;;  %v1805_v14 = vld [vmem:[%s2615_s28] sm:$0xf]  ;;  %s1652_s17 = sshll.u32 %s440_s14, 3 }
  0x48   : > { %632 = vmatpush.bf16.msra.mxu0 %v2106_v22  ;;  %v544_v62 = vsel %vm2570_vm5, %v539_v58, %v543_v49  ;;  %v2119_v15 = vld [vmem:[%s2615_s28 + $0x4] sm:$0xf0]  ;;  %v742_v17 = vpack.c.b16 %v741_v5, %v740_v4  ;;  %v2151_v19 = vld [vmem:[%s2824_s3 + $0x1b0] sm:$0xff]  ;;  %v1704_v20 = vor.u32 %v2094_v13, %v1703_v12  ;;  %v2149_v41 = vld [vmem:[%s2824_s3 + $0x1a0] sm:$0xff]  ;;  %s494_s30 = scalar_lea.vmem [#allocation5], %s1652_s17 }
  0x49   : > { %796 = vmatpush.bf16.msra.mxu2 %v2114_v23  ;;  %v558_v2 = vsel %vm2570_vm5, %v553_v61, %v557_v55  ;;  %v576_v3 = vunpack.c.l.b16 %v544_v62  ;;  %v1806_v21 = vor.u32 %v2119_v15, %v1805_v14  ;;  %v2626_v22 = vld [vmem:[%s2615_s28] sm:$0xf]  ;;  %v2629_v23 = vld [vmem:[%s2615_s28 + $0x8] sm:$0xf]  ;;  %v809_v47 = vld [vmem:[%s2615_s28 + $0x4] sm:$0x1] }
  0x4a   : > { %700 = vmatpush.bf16.msra.mxu1 %v2098_v24  ;;  %v577_v9 = vunpack.c.l.b16 %v558_v2  ;;  %v2142_v24 = vld [vmem:[%s2824_s3 + $0x170] sm:$0xff]  ;;  %v2643_v27 = vld [vmem:[%s2637_s8 + $0x8] sm:$0xf]  ;;  %v900_v30 = vshrl.u32 %v2626_v22, 16  ;;  %v903_v31 = vshll.u32 %v2626_v22, 16  ;;  %v914_v32 = vshrl.u32 %v2629_v23, 16 }
  0x4b   : > { %887 = vmatpush.bf16.msra.mxu3 %v2123_v25  ;;  %v2159_v25 = vld [vmem:[%s2824_s3 + $0x1f0] sm:$0xff]  ;;  %v2150_v29 = vld [vmem:[%s2824_s3 + $0x1a8] sm:$0xff]  ;;  %v917_v33 = vshll.u32 %v2629_v23, 16  ;;  %v1213_v38 = vshrl.u32 %v2643_v27, 16  ;;  %v2140_v49 = vld [vmem:[%s2824_s3 + $0x160] sm:$0xff]  ;;  %v909_v61 = vshll.u32 %v809_v47, 16 }
  0x4c   : > { %633 = vmatpush.bf16.msra.mxu0 %v2105_v26  ;;  %v578_v16 = vpack.c.b16 %v577_v9, %v576_v3  ;;  %v2640_v26 = vld [vmem:[%s2637_s8] sm:$0xf]  ;;  %v2141_v34 = vld [vmem:[%s2824_s3 + $0x168] sm:$0xff]  ;;  %v902_v42 = vrot.slane %v900_v30, 4  ;;  %v905_v43 = vrot.slane %v903_v31, 5  ;;  %v916_v44 = vrot.slane %v914_v32, 4 }
  0x4d   : > { %797 = vmatpush.bf16.msra.mxu2 %v2113_v35  ;;  %v2158_v35 = vld [vmem:[%s2824_s3 + $0x1e8] sm:$0xff]  ;;  %v1199_v36 = vshrl.u32 %v2640_v26, 16  ;;  %v1202_v37 = vshll.u32 %v2640_v26, 16  ;;  %v919_v45 = vrot.slane %v917_v33, 5  ;;  %v2157_v50 = vld [vmem:[%s2824_s3 + $0x1e0] sm:$0xff]  ;;  %v1215_v54 = vrot.slane %v1213_v38, 4 }
  0x4e   : > { %701 = vmatpush.bf16.msra.mxu1 %v2097_v39  ;;  %v1216_v39 = vshll.u32 %v2643_v27, 16  ;;  %v811_v48 = vld [vmem:[%s2615_s28 + $0xc] sm:$0x1]  ;;  %v906_v60 = vor.u32 %v905_v43, %v902_v42  ;;  %v911_v9 = vrot.slane %v909_v61, 5  ;;  %v1887_v12 = vrot.slane %v2626_v22, 9 }
  0x4f   : > { %888 = vmatpush.bf16.msra.mxu3 %v2122_v40  ;;  %v2132_v40 = vld [vmem:[%s2824_s3 + $0x120] sm:$0xff]  ;;  %v2131_v58 = vld [vmem:[%s2824_s3 + $0x118] sm:$0xff]  ;;  %v920_v62 = vor.u32 %v919_v45, %v916_v44  ;;  %v1016_v13 = vrot.slane %v809_v47, 5  ;;  %v1888_v14 = vrot.slane %v2629_v23, 9  ;;  %v1020_v15 = vrot.slane %v811_v48, 5  ;;  %v2129_v22 = vld [vmem:[%s2824_s3 + $0x108] sm:$0xff] }
  0x50   : > { %634 = vmatpush.bf16.msra.mxu0 %v2104_v51  ;;  %v1201_v51 = vrot.slane %v1199_v36, 4  ;;  %v1218_v55 = vrot.slane %v1216_v39, 5  ;;  %v2148_v59 = vld [vmem:[%s2824_s3 + $0x198] sm:$0xff]  ;;  %v2146_v23 = vld [vmem:[%s2824_s3 + $0x188] sm:$0xff]  ;;  %v1955_v38 = vld [vmem:[%s2637_s8] sm:$0xf] }
  0x51   : > { %798 = vmatpush.bf16.msra.mxu2 %v2112_v52  ;;  %v1204_v52 = vrot.slane %v1202_v37, 5  ;;  %v2154_v30 = vld [vmem:[%s2824_s3 + $0x1c8] sm:$0xff]  ;;  %v1021_v31 = vsel %vm2557_vm4, %v1888_v14, %v1020_v15  ;;  %v2145_v37 = vld [vmem:[%s2824_s3 + $0x180] sm:$0xff]  ;;  %v2037_v61 = vrot.slane %v2640_v26, 9 }
  0x52   : > { %702 = vmatpush.bf16.msra.mxu1 %v2096_v56  ;;  %v2680_v56 = vld [vmem:[%s2637_s8 + $0x4] sm:$0x1]  ;;  %v1219_v4 = vor.u32 %v1218_v55, %v1215_v54  ;;  %v2144_v39 = vld [vmem:[%s2637_s8 + $0x4] sm:$0xf0] }
  0x53   : > { %889 = vmatpush.bf16.msra.mxu3 %v2121_v57  ;;  %v2683_v57 = vld [vmem:[%s2637_s8 + $0xc] sm:$0x1]  ;;  %v1205_v2 = vor.u32 %v1204_v52, %v1201_v51  ;;  %v1208_v3 = vshll.u32 %v2680_v56, 16  ;;  %v2136_v44 = vld [vmem:[%s2824_s3 + $0x140] sm:$0xff]  ;;  %v2167_v51 = vld [vmem:[%s2824_s3 + $0x230] sm:$0xff] }
  0x54   : > { %635 = vmatpush.bf16.msra.mxu0 %v2103_v63  ;;  %v923_v63 = vshll.u32 %v811_v48, 16  ;;  %v1222_v5 = vshll.u32 %v2683_v57, 16  ;;  %v2153_v45 = vld [vmem:[%s2824_s3 + $0x1c0] sm:$0xff]  ;;  %v1956_v48 = vor.u32 %v2144_v39, %v1955_v38  ;;  %v2166_v52 = vld [vmem:[%s2824_s3 + $0x228] sm:$0xff]  ;;  %v2164_v55 = vld [vmem:[%s2824_s3 + $0x218] sm:$0xff] }
  0x55   : > { %799 = vmatpush.bf16.msra.mxu2 %v2111_v0  ;;  %v2139_v0 = vld [vmem:[%s2824_s3 + $0x158] sm:$0xff]  ;;  %v2165_v54 = vld [vmem:[%s2824_s3 + $0x220] sm:$0xff] }
  0x56   : > { %703 = vmatpush.bf16.msra.mxu1 %v2095_v7  ;;  %v2147_v7 = vld [vmem:[%s2824_s3 + $0x190] sm:$0xff]  ;;  %v2161_v26 = vld [vmem:[%s2824_s3 + $0x200] sm:$0xff] }
  0x57   : > { %890 = vmatpush.bf16.msra.mxu3 %v2120_v8  ;;  %636 = vmatmul.bf16.vlgmr.msra.gmra.mxu0 %v578_v16  ;;  %v907_v8 = vrot.slane %v906_v60, 4  ;;  %v2138_v16 = vld [vmem:[%s2824_s3 + $0x150] sm:$0xff] }
  0x58   : > { %996 = vmatpush.bf16.msrb.mxu0 %v2135_v1  ;;  %800 = vmatmul.bf16.vlgmr.msra.gmra.mxu2 %v742_v17  ;;  %v2156_v1 = vld [vmem:[%s2824_s3 + $0x1d8] sm:$0xff]  ;;  %v2155_v17 = vld [vmem:[%s2824_s3 + $0x1d0] sm:$0xff] }
  0x59   : > { %1182 = vmatpush.bf16.msrb.mxu2 %v2152_v6  ;;  %704 = vmatmul.bf16.vlgmr.msra.gmra.mxu1 %v1704_v20  ;;  %v2130_v6 = vld [vmem:[%s2824_s3 + $0x110] sm:$0xff]  ;;  %v1220_v20 = vrot.slane %v1219_v4, 4 }
  0x5a   : > { %1091 = vmatpush.bf16.msrb.mxu1 %v2143_v10  ;;  %891 = vmatmul.bf16.vlgmr.msra.gmra.mxu3 %v1806_v21  ;;  %v921_v10 = vrot.slane %v920_v62, 4  ;;  %v1224_v21 = vrot.slane %v1222_v5, 5  ;;  %v2163_v60 = vld [vmem:[%s2824_s3 + $0x210] sm:$0xff]  ;;  %v2038_v62 = vrot.slane %v2643_v27, 9 }
  0x5b   : > { %1295 = vmatpush.bf16.msrb.mxu3 %v2160_v11  ;;  %v925_v11 = vrot.slane %v923_v63, 5  ;;  %v2162_v63 = vld [vmem:[%s2824_s3 + $0x208] sm:$0xff] }
  0x5c   : > { %997 = vmatpush.bf16.msrb.mxu0 %v2134_v18  ;;  %v1206_v18 = vrot.slane %v1205_v2, 4  ;;  %v1225_v33 = vsel %vm2570_vm5, %v1220_v20, %v1224_v21 }
  0x5d   : > { %1183 = vmatpush.bf16.msrb.mxu2 %v2151_v19  ;;  %v1210_v19 = vrot.slane %v1208_v3, 5  ;;  %v1244_v43 = vunpack.c.l.b16 %v1225_v33  ;;  %v2246_v33 = vld [vmem:[%s2825_s4] ss:$0 sm:$0xff] }
  0x5e   : > { %1092 = vmatpush.bf16.msrb.mxu1 %v2142_v24  ;;  %v912_v24 = vsel %vm2570_vm5, %v907_v8, %v911_v9 }
  0x5f   : > { %1296 = vmatpush.bf16.msrb.mxu3 %v2159_v25  ;;  %v926_v25 = vsel %vm2570_vm5, %v921_v10, %v925_v11  ;;  %v1211_v32 = vsel %vm2570_vm5, %v1206_v18, %v1210_v19 }
  0x60   : > { %998 = vmatpush.bf16.msrb.mxu0 %v2133_v28  ;;  %v1017_v28 = vsel %vm2557_vm4, %v1887_v12, %v1016_v13  ;;  %v945_v36 = vunpack.c.l.b16 %v926_v25  ;;  %v1243_v42 = vunpack.c.l.b16 %v1211_v32 }
  0x61   : > { %1184 = vmatpush.bf16.msrb.mxu2 %v2150_v29  ;;  %v2137_v29 = vld [vmem:[%s2824_s3 + $0x148] sm:$0xff]  ;;  %v1039_v53 = vunpack.c.l.b16 %v1017_v28 }
  0x62   : > { %1093 = vmatpush.bf16.msrb.mxu1 %v2141_v34  ;;  %v2128_v34 = vld [vmem:[%s2824_s3 + $0x100] sm:$0xff] }
  0x63   : > { %1297 = vmatpush.bf16.msrb.mxu3 %v2158_v35  ;;  %v944_v35 = vunpack.c.l.b16 %v912_v24 }
  0x64   : > { %999 = vmatpush.bf16.msrb.mxu0 %v2132_v40  ;;  %v2168_v40 = vld [vmem:[%s2824_s3 + $0x238] sm:$0xff] }
  0x65   : > { %1185 = vmatpush.bf16.msrb.mxu2 %v2149_v41  ;;  %v1040_v41 = vunpack.c.l.b16 %v1021_v31  ;;  %v946_v47 = vpack.c.b16 %v945_v36, %v944_v35 }
  0x66   : > { %1094 = vmatpush.bf16.msrb.mxu1 %v2140_v49 }
  0x67   : > { %1298 = vmatpush.bf16.msrb.mxu3 %v2157_v50  ;;  %v1041_v49 = vpack.c.b16 %v1040_v41, %v1039_v53  ;;  %v1245_v50 = vpack.c.b16 %v1244_v43, %v1243_v42 }
  0x68   : > { %1000 = vmatpush.bf16.msrb.mxu0 %v2131_v58  ;;  %v1315_v58 = vrot.slane %v2680_v56, 5 }
  0x69   : > { %1186 = vmatpush.bf16.msrb.mxu2 %v2148_v59  ;;  %v1319_v59 = vrot.slane %v2683_v57, 5 }
  0x6a   : > { %1095 = vmatpush.bf16.msrb.mxu1 %v2139_v0  ;;  %v1316_v0 = vsel %vm2557_vm4, %v2037_v61, %v1315_v58 }
  0x6b   : > { %1299 = vmatpush.bf16.msrb.mxu3 %v2156_v1  ;;  %v1320_v56 = vsel %vm2557_vm4, %v2038_v62, %v1319_v59  ;;  %v1338_v57 = vunpack.c.l.b16 %v1316_v0 }
  0x6c   : > { %1001 = vmatpush.bf16.msrb.mxu0 %v2130_v6  ;;  %v1339_v1 = vunpack.c.l.b16 %v1320_v56 }
  0x6d   : > { %1187 = vmatpush.bf16.msrb.mxu2 %v2147_v7 }
  0x6e   : > { %1096 = vmatpush.bf16.msrb.mxu1 %v2138_v16  ;;  %v1340_v2 = vpack.c.b16 %v1339_v1, %v1338_v57 }
  0x6f   : > { %1300 = vmatpush.bf16.msrb.mxu3 %v2155_v17 }
  0x70   : > { %1002 = vmatpush.bf16.msrb.mxu0 %v2129_v22 }
  0x71   : > { %1188 = vmatpush.bf16.msrb.mxu2 %v2146_v23 }
  0x72   : > { %1097 = vmatpush.bf16.msrb.mxu1 %v2137_v29 }
  0x73   : > { %1301 = vmatpush.bf16.msrb.mxu3 %v2154_v30 }
  0x74   : > { %1003 = vmatpush.bf16.msrb.mxu0 %v2128_v34 }
  0x75   : > { %1189 = vmatpush.bf16.msrb.mxu2 %v2145_v37 }
  0x76   : > { %1098 = vmatpush.bf16.msrb.mxu1 %v2136_v44 }
  0x77   : > { %1302 = vmatpush.bf16.msrb.mxu3 %v2153_v45  ;;  %1004 = vmatmul.bf16.vlgmr.msrb.gmra.mxu0 %v946_v47 }
  0x78   : > { %1390 = vmatpush.bf16.msra.mxu0 %v2168_v40  ;;  %1190 = vmatmul.bf16.vlgmr.msrb.gmra.mxu2 %v1956_v48 }
  0x79   : > { %1099 = vmatmul.bf16.vlgmr.msrb.gmra.mxu1 %v1041_v49 }
  0x7a   : > { %1303 = vmatmul.bf16.vlgmr.msrb.gmra.mxu3 %v1245_v50 }
  0x7c   : > { %1391 = vmatpush.bf16.msra.mxu0 %v2167_v51 }
  0x80   : > { %1392 = vmatpush.bf16.msra.mxu0 %v2166_v52 }
  0x84   : > { %1393 = vmatpush.bf16.msra.mxu0 %v2165_v54 }
  0x88   : > { %1394 = vmatpush.bf16.msra.mxu0 %v2164_v55 }
  0x8c   : > { %1395 = vmatpush.bf16.msra.mxu0 %v2163_v60 }
  0x90   : > { %1396 = vmatpush.bf16.msra.mxu0 %v2162_v63 }
  0x94   : > { %1397 = vmatpush.bf16.msra.mxu0 %v2161_v26 }
  0x97   : > { %1398 = vmatmul.bf16.vlgmr.msra.gmra.mxu0 %v1340_v2 }
  0xd4   : > { %v637_v27 = vpop.f32.mrf.mxu0 }
  0xd6   : > { %v705_v3 = vpop.f32.mrf.mxu1 }
  0xd7   : > { %v706_v7 = vadd.f32 %v705_v3, %v637_v27 }
  0xdb   : > { %v801_v4 = vpop.f32.mrf.mxu2 }
  0xdc   : > { %v639_v5 = vpop.f32.mrf.mxu0  ;;  %v806_v46 = vadd.f32 %v801_v4, %v706_v7 }
  0xdd   : > { %v892_v6 = vpop.f32.mrf.mxu3 }
  0xde   : > { %v707_v8 = vpop.f32.mrf.mxu1  ;;  %v897_v12 = vadd.f32 %v892_v6, %v806_v46 }
  0xdf   : > { %v708_v13 = vadd.f32 %v707_v8, %v639_v5 }
  0xe3   : > { %v803_v9 = vpop.f32.mrf.mxu2 }
  0xe4   : > { %v807_v17 = vadd.f32 %v803_v9, %v708_v13 }
  0xe5   : > { %v894_v11 = vpop.f32.mrf.mxu3 }
  0xe6   : > { %v898_v21 = vadd.f32 %v894_v11, %v807_v17 }
  0xf4   : > { %v1005_v10 = vpop.f32.mrf.mxu0 }
  0xf5   : > { %v1010_v15 = vadd.f32 %v1005_v10, %v897_v12 }
  0xf6   : > { %v1100_v14 = vpop.f32.mrf.mxu1 }
  0xf7   : > { %v1105_v19 = vadd.f32 %v1100_v14, %v1010_v15 }
  0xfb   : > { %v1191_v16 = vpop.f32.mrf.mxu2 }
  0xfc   : > { %v1007_v18 = vpop.f32.mrf.mxu0  ;;  %v1196_v22 = vadd.f32 %v1191_v16, %v1105_v19 }
  0xfd   : > { %v1304_v20 = vpop.f32.mrf.mxu3  ;;  %v1011_v23 = vadd.f32 %v1007_v18, %v898_v21 }
  0xfe   : > { %v1102_v24 = vpop.f32.mrf.mxu1  ;;  %v1309_v29 = vadd.f32 %v1304_v20, %v1196_v22 }
  0xff   : > { %v1106_v30 = vadd.f32 %v1102_v24, %v1011_v23 }
 0x103   : > { %v1193_v25 = vpop.f32.mrf.mxu2 }
 0x104   : > { %v1197_v31 = vadd.f32 %v1193_v25, %v1106_v30 }
 0x105   : > { %v1306_v34 = vpop.f32.mrf.mxu3 }
 0x106   : > { %v1310_v35 = vadd.f32 %v1306_v34, %v1197_v31 }
 0x114   : > { %v1399_v28 = vpop.f32.mrf.mxu0 }
 0x115   : > { %v1404_v32 = vadd.f32 %v1399_v28, %v1309_v29 }
 0x117   : > { %v1410_v36 = vadd.f32 %v2246_v33, %v1404_v32 }
 0x119   : > { %v1414_v39 = vmul.f32 0.01, %v1410_v36  ;;  %vm1412_vm6 = vcmp.ge.f32.partialorder %v1410_v36, 0.0 }
 0x11b   : > { %v1416_v41 = vsel %vm1412_vm6, %v1410_v36, %v1414_v39 }
 0x11c   : > { %v1401_v37 = vpop.f32.mrf.mxu0 }
 0x11d   : > { %v1405_v38 = vadd.f32 %v1401_v37, %v1310_v35 }
 0x11f   : > { %v1411_v40 = vadd.f32 %v2246_v33, %v1405_v38 }
 0x121   : > { %vm1413_vm7 = vcmp.ge.f32.partialorder %v1411_v40, 0.0  ;;  %v1415_v53 = vmul.f32 0.01, %v1411_v40 }
 0x122   : > { %1428 = sbr.rel (!%p2446_p12) target bundleno = 304 (0x130), region = 167 }
 0x123   : > { %v1417_v42 = vsel %vm1413_vm7, %v1411_v40, %v1415_v53 }
 0x124   : > { %v2172_v43 = vpack.c.bf16 %v1417_v42, %v1416_v41 }
 0x126   : > { %2173 = vst [vmem:[%s494_s30] sm:$0xff] %v2172_v43  }
 0x12d   : > { %v1451_v44 = vld [vmem:[%s494_s30] sm:$0xf]  ;;  %v1453_v45 = vld [vmem:[%s494_s30 + $0x4] sm:$0xf] }
 0x12e   : > { %1452 = vst [vmem:[%s1434_s9] sm:$0xf] %v1451_v44 }
 0x12f   : > { %1454 = vst [vmem:[%s1434_s9 + $0x20] sm:$0xf] %v1453_v45 }
 0x130 PF: > { %s15_s26 = sadd.s32 1, %s2317_s26   ;;  %s2840_s22 = sld [smem:[#allocation6_spill]] }
 0x131   : > { %p12_p3 = scmp.ge.s32.totalorder %s15_s26, 10   ;;  %s2841_s23 = sld [smem:[#allocation8_spill]] }
 0x132   : > { %s2842_s7 = sld [smem:[#allocation7_spill]]  ;;  %s2843_s18 = smov %s2289_s19 }
 0x133   : > { %s2844_s19 = smov %s2441_s29  ;;  %s2845_s20 = smov %s2297_s21 }
 0x134   : > { %s2846_s21 = smov %s2421_s12  ;;  %s2847_s24 = smov %s2313_s25 }
 0x135   :  { %14 = sbr.rel (!%p12_p3) target bundleno = 5 (0x5), region = 269 }
 0x138   : > { %s2848_s25 = smov %s2842_s7 }

// kernel: clagnosco_encoder.7
= control target key start
LH: loop header
LB: loop body
LE: loop exit
PB: predicated region body
PF: predicated region fallthrough
CT: control target
= control target key end

     0   :  { %s4207_s0 = inlined_call_operand.vmem [shape: bf16[2,18,9,256], index: 0, kind: input, shape index: {}, may-alias: {0,1,2,3}]   ;;  %s4208_s1 = inlined_call_operand.vmem [shape: bf16[2,18,9,256], index: 1, kind: input, shape index: {}, may-alias: {0,1,2,3}]   ;;  %s4209_s2 = inlined_call_operand.vmem [shape: bf16[2,18,9,256], index: 2, kind: input, shape index: {}, may-alias: {0,1,2,3}]   ;;  %s4210_s3 = inlined_call_operand.vmem [shape: bf16[2,18,9,256], index: 3, kind: input, shape index: {}, may-alias: {0,1,2,3}]   ;;  %s4211_s4 = inlined_call_operand.vmem [shape: bf16[4,2,256,128], index: 4, kind: input, shape index: {}]   ;;  %s4212_s5 = inlined_call_operand.vmem [shape: f32[1,128], index: 5, kind: input, shape index: {}]   ;;  %s4213_s6 = inlined_call_operand.vmem [shape: bf16[2,8,8,128], index: 6, kind: output, shape index: {}]  }
   0x1   :  { %4217 = sst [smem:[#allocation13_spill]] %s4212_s5 }
   0x2   :  { %4218 = sst [smem:[#allocation14_spill]] %s4213_s6 }
   0x3   :  { %s3532_s21 = smov 0   ;;  %s3534_s22 = smov 0  }
   0x4   :  { %s3536_s23 = smov 0   ;;  %s3538_s24 = smov 0  }
   0x5   :  { %s3540_s25 = smov 0   ;;  %s3542_s26 = smov 0  }
   0x6   :  { %s3544_s27 = smov 0   ;;  %s3546_s28 = smov 0  }
   0x7   :  { %s3548_s29 = smov 0   ;;  %s3550_s30 = smov 0  }
   0x8   :  { %s3552_s7 = smov 0   ;;  %s3554_s8 = smov 0  }
   0x9   :  { %s3556_s9 = smov 0  }
   0xa LB: > { %4219 = sst [smem:[#allocation7_spill]] %s3471_s27  ;;  %s28_s11 = sadd.s32 1, %s3491_s8  ;;  %s3495_s9 = sphi %s3556_s9, %s16_s9   ;;  %s3491_s8 = sphi %s3554_s8, %s4252_s8   ;;  %s3487_s7 = sphi %s3552_s7, %s4251_s7   ;;  %s3483_s30 = sphi %s3550_s30, %s4240_s30   ;;  %s3479_s29 = sphi %s3548_s29, %s4239_s29   ;;  %s3475_s28 = sphi %s3546_s28, %s4250_s28   ;;  %s3471_s27 = sphi %s3544_s27, %s4249_s27   ;;  %s3467_s26 = sphi %s3542_s26, %s4248_s26   ;;  %s3463_s25 = sphi %s3540_s25, %s4247_s25   ;;  %s3459_s24 = sphi %s3538_s24, %s4246_s24   ;;  %s3455_s23 = sphi %s3536_s23, %s4245_s23   ;;  %s3451_s22 = sphi %s3534_s22, %s4244_s22   ;;  %s3447_s21 = sphi %s3532_s21, %s4243_s21  }
   0xb   : > { %4220 = sst [smem:[#allocation8_spill]] %s3483_s30  ;;  %p29_p0 = scmp.ge.s32.totalorder %s28_s11, 8 }
   0xc   : > { %4221 = sst [smem:[#allocation9_spill]] %s3487_s7  ;;  %s3600_s12 = sshll.u32 %s3491_s8, 1 }
   0xd   : > { %s46_s13 = sadd.s32 1, %s3483_s30  ;;  %p53_p1 = scmp.ne.s32.totalorder %s3483_s30, %s3479_s29 }
   0xe   : > { %s4254_s11 = smov (%p29_p0, %s28_s11), 0  ;;  %p54_p2 = scmp.eq.s32.totalorder %s3495_s9, 0 }
   0xf   : > { %4222 = sst [smem:[#allocation10_spill]] %s4254_s11  ;;  %s70_s14 = sadd.s32 1, %s3600_s12 }
  0x10   : > { %s2322_s15 = sshll.u32 %s4254_s11, 1  ;;  %s78_s16 = sadd.s32 1, %s3475_s28 }
  0x11   : > { %s42_s17 = ssub.s32 %s3600_s12, %s2322_s15  ;;  %p3614_p3 = por %p54_p2, %p53_p1 }
  0x12   : > { %p44_p4 = scmp.eq.s32.totalorder %s42_s17, 0  ;;  %s72_s19 = sadd.s32 1, %s2322_s15 }
  0x13   : > { %s74_s20 = ssub.s32 %s70_s14, %s72_s19  ;;  %p85_p5 = scmp.ne.s32.totalorder %s3475_s28, %s3471_s27 }
  0x14   : > { %s3621_s10 = scalar_select %p44_p4, %s3483_s30, %s46_s13  }
  0x15   : > { %p76_p6 = scmp.eq.s32.totalorder %s74_s20, 0  ;;  %p3625_p7 = por %p85_p5, %p54_p2 }
  0x16   : > { %4224 = sst [smem:[#allocation11_spill]] %s3621_s10  ;;  %s102_s7 = sadd.s32 2, %s3600_s12 }
  0x17   : > { %s104_s17 = sadd.s32 2, %s2322_s15  ;;  %s110_s13 = sadd.s32 1, %s3467_s26 }
  0x18   : > { %s3631_s5 = scalar_select %p76_p6, %s3475_s28, %s78_s16  }
  0x19   : > { %s106_s14 = ssub.s32 %s102_s7, %s104_s17  ;;  %p117_p9 = scmp.ne.s32.totalorder %s3467_s26, %s3463_s25 }
  0x1a   : > { %4226 = sst [smem:[#allocation12_spill]] %s3631_s5  ;;  %p108_p8 = scmp.eq.s32.totalorder %s106_s14, 0 }
  0x1b   : > { %s134_s19 = sadd.s32 3, %s3600_s12  ;;  %s136_s20 = sadd.s32 3, %s2322_s15 }
  0x1c   : > { %s3638_s10 = scalar_select %p108_p8, %s3467_s26, %s110_s13  }
  0x1d   : > { %p3642_p10 = por %p117_p9, %p54_p2  ;;  %s138_s16 = ssub.s32 %s134_s19, %s136_s20 }
  0x1e   : > { %p140_p11 = scmp.eq.s32.totalorder %s138_s16, 0  ;;  %s142_s7 = sadd.s32 1, %s3459_s24 }
  0x1f   : > { %p149_p12 = scmp.ne.s32.totalorder %s3459_s24, %s3455_s23  ;;  %s218_s17 = ssub.s32 %s3491_s8, %s4254_s11 }
  0x20   : > { %s3652_s5 = scalar_select %p140_p11, %s3459_s24, %s142_s7  }
  0x21   : > { %p3656_p13 = por %p149_p12, %p54_p2  ;;  %p222_p0 = scmp.eq.s32.totalorder %s218_s17, 0 }
  0x22   : > { %s224_s12 = sadd.s32 1, %s3451_s22  ;;  %p234_p1 = scmp.ne.s32.totalorder %s3451_s22, %s3447_s21 }
  0x23   : > { %s3664_s15 = scalar_select %p222_p0, %s3451_s22, %s224_s12  }
  0x24   : > { %s4229_s13 = sadd.s32 4294967295, %s3495_s9   ;;  %p2332_p6 = scmp.ge.s32.totalorder %s3495_s9, 8 }
  0x25   : > { %p235_p4 = scmp.eq.s32.totalorder %s4229_s13, 7 }
  0x26   : > { %270 = sbr.rel (%p2332_p6) target bundleno = 75 (0x4b), region = 24 }
  0x27   : > { %p3668_p5 = por %p235_p4, %p234_p1 }
  0x2b   : > { %273 = sbr.rel (!%p3614_p3) target bundleno = 51 (0x33), region = 28  ;;  %s275_s20 = sand.u32 (%p3614_p3), 1, %s3483_s30  }
  0x2c   : > { %s3140_s16 = sshll.u32 (%p3614_p3), %s3491_s8, 5  ;;  %s2333_s7 = sshll.u32 (%p3614_p3), %s275_s20, 5 }
  0x2d   : > { %s284_s11 = scalar_lea.vmem (%p3614_p3), %s4207_s0, %s3140_s16  ;;  %s277_s13 = scalar_lea.vmem (%p3614_p3), [#allocation2], %s2333_s7 }
  0x2e   : > { %v319_v0 = vld [vmem:[%s284_s11] sm:$0xff] (%p3614_p3)  ;;  %v321_v1 = vld [vmem:[%s284_s11 + $0x8] sm:$0xff] (%p3614_p3) }
  0x2f   : > { %v323_v2 = vld [vmem:[%s284_s11 + $0x120] sm:$0xff] (%p3614_p3)  ;;  %320 = vst [vmem:[%s277_s13] sm:$0xff] (%p3614_p3), %v319_v0  ;;  %v325_v3 = vld [vmem:[%s284_s11 + $0x128] sm:$0xff] (%p3614_p3) }
  0x30   : > { %322 = vst [vmem:[%s277_s13 + $0x8] sm:$0xff] %v321_v1 }
  0x31   : > { %324 = vst [vmem:[%s277_s13 + $0x10] sm:$0xff] %v323_v2 }
  0x32   : > { %326 = vst [vmem:[%s277_s13 + $0x18] sm:$0xff] %v325_v3 }
  0x33 PF: > { %332 = sbr.rel (!%p3625_p7) target bundleno = 59 (0x3b), region = 66  ;;  %s334_s18 = sand.u32 (%p3625_p7), 1, %s3475_s28  }
  0x34   : > { %s3142_s20 = sshll.u32 (%p3625_p7), %s3491_s8, 5  ;;  %s2337_s30 = sshll.u32 (%p3625_p7), %s334_s18, 5 }
  0x35   : > { %s2178_s12 = scalar_lea.vmem (%p3625_p7), %s4208_s1, %s3142_s20  ;;  %s336_s11 = scalar_lea.vmem (%p3625_p7), [#allocation3], %s2337_s30 }
  0x36   : > { %v2341_v4 = vld [vmem:[%s2178_s12 + $0x10] sm:$0xff] (%p3625_p7)  ;;  %v2342_v5 = vld [vmem:[%s2178_s12 + $0x18] sm:$0xff] (%p3625_p7) }
  0x37   : > { %v2343_v6 = vld [vmem:[%s2178_s12 + $0x130] sm:$0xff] (%p3625_p7)  ;;  %380 = vst [vmem:[%s336_s11] sm:$0xff] (%p3625_p7), %v2341_v4  ;;  %v2344_v7 = vld [vmem:[%s2178_s12 + $0x138] sm:$0xff] (%p3625_p7) }
  0x38   : > { %382 = vst [vmem:[%s336_s11 + $0x8] sm:$0xff] %v2342_v5 }
  0x39   : > { %384 = vst [vmem:[%s336_s11 + $0x10] sm:$0xff] %v2343_v6 }
  0x3a   : > { %386 = vst [vmem:[%s336_s11 + $0x18] sm:$0xff] %v2344_v7 }
  0x3b PF: > { %392 = sbr.rel (!%p3642_p10) target bundleno = 67 (0x43), region = 104  ;;  %s394_s6 = sand.u32 (%p3642_p10), 1, %s3467_s26  }
  0x3c   : > { %s3144_s7 = sshll.u32 (%p3642_p10), %s3491_s8, 5  ;;  %s2345_s13 = sshll.u32 (%p3642_p10), %s394_s6, 5 }
  0x3d   : > { %s2187_s17 = scalar_lea.vmem (%p3642_p10), %s4209_s2, %s3144_s7  ;;  %s396_s30 = scalar_lea.vmem (%p3642_p10), [#allocation4], %s2345_s13 }
  0x3e   : > { %v2349_v8 = vld [vmem:[%s2187_s17 + $0x20] sm:$0xff] (%p3642_p10)  ;;  %v2350_v9 = vld [vmem:[%s2187_s17 + $0x28] sm:$0xff] (%p3642_p10) }
  0x3f   : > { %v2351_v10 = vld [vmem:[%s2187_s17 + $0x140] sm:$0xff] (%p3642_p10)  ;;  %440 = vst [vmem:[%s396_s30] sm:$0xff] (%p3642_p10), %v2349_v8  ;;  %v2352_v11 = vld [vmem:[%s2187_s17 + $0x148] sm:$0xff] (%p3642_p10) }
  0x40   : > { %442 = vst [vmem:[%s396_s30 + $0x8] sm:$0xff] %v2350_v9 }
  0x41   : > { %444 = vst [vmem:[%s396_s30 + $0x10] sm:$0xff] %v2351_v10 }
  0x42   : > { %446 = vst [vmem:[%s396_s30 + $0x18] sm:$0xff] %v2352_v11 }
  0x43 PF: > { %452 = sbr.rel (!%p3656_p13) target bundleno = 75 (0x4b), region = 142  ;;  %s454_s27 = sand.u32 (%p3656_p13), 1, %s3459_s24  }
  0x44   : > { %s3146_s16 = sshll.u32 (%p3656_p13), %s3491_s8, 5  ;;  %s2353_s12 = sshll.u32 (%p3656_p13), %s454_s27, 5 }
  0x45   : > { %s2196_s7 = scalar_lea.vmem (%p3656_p13), %s4210_s3, %s3146_s16  ;;  %s456_s13 = scalar_lea.vmem (%p3656_p13), [#allocation5], %s2353_s12 }
  0x46   : > { %v2357_v12 = vld [vmem:[%s2196_s7 + $0x30] sm:$0xff] (%p3656_p13)  ;;  %v2358_v13 = vld [vmem:[%s2196_s7 + $0x38] sm:$0xff] (%p3656_p13) }
  0x47   : > { %v2359_v14 = vld [vmem:[%s2196_s7 + $0x150] sm:$0xff] (%p3656_p13)  ;;  %500 = vst [vmem:[%s456_s13] sm:$0xff] (%p3656_p13), %v2357_v12  ;;  %v2360_v15 = vld [vmem:[%s2196_s7 + $0x158] sm:$0xff] (%p3656_p13) }
  0x48   : > { %502 = vst [vmem:[%s456_s13 + $0x8] sm:$0xff] %v2358_v13 }
  0x49   : > { %504 = vst [vmem:[%s456_s13 + $0x10] sm:$0xff] %v2359_v14 }
  0x4a   : > { %506 = vst [vmem:[%s456_s13 + $0x18] sm:$0xff] %v2360_v15 }
  0x4b PF: > { %p2361_p2 = scmp.ge.s32.totalorder %s3495_s9, 1  ;;  %p511_p3 = scmp.lt.s32.totalorder %s3495_s9, 9 }
  0x4d   : > { %p512_p7 = pnand %p2361_p2, %p511_p3 }
  0x4e   : > { %s518_s14 = sand.u32 (!%p512_p7), 1, %s3479_s29   ;;  %s4233_s16 = sld [smem:[#allocation7_spill]] (!%p512_p7) }
  0x4f   : > { %515 = sbr.rel (%p512_p7) target bundleno = 376 (0x178), region = 180  ;;  %s2362_s27 = sshll.u32 (!%p512_p7), %s518_s14, 5 }
  0x50   : > { %s3767_s11 = scalar_lea.vmem (!%p512_p7), [#allocation2], %s2362_s27  ;;  %s532_s14 = sand.u32 (!%p512_p7), 1, %s3463_s25  }
  0x51   : > { %s539_s27 = sand.u32 (!%p512_p7), 1, %s3455_s23  }
  0x52   : > { %s2365_s12 = sshll.u32 (!%p512_p7), %s539_s27, 5  ;;  %s4234_s27 = sld [smem:[#allocation13_spill]] (!%p512_p7) }
  0x53   : > { %s4066_s20 = scalar_lea.vmem (!%p512_p7), [#allocation5], %s2365_s12 }
  0x54   : > { %v3172_v16 = vld [vmem:[%s4211_s4 + $0xb8] sm:$0xff]  ;;  %v3171_v20 = vld [vmem:[%s4211_s4 + $0xb0] sm:$0xff]  ;;  %v3170_v24 = vld [vmem:[%s4211_s4 + $0xa8] sm:$0xff]  ;;  %vm641_vm0 = vsmask.f32 3328  ;;  %s525_s6 = sand.u32 1, %s4233_s16  }
  0x55   : > { %v3180_v17 = vld [vmem:[%s4211_s4 + $0xf8] sm:$0xff]  ;;  %809 = vmatpush.bf16.msra.mxu0 %v3172_v16  ;;  %v3179_v21 = vld [vmem:[%s4211_s4 + $0xf0] sm:$0xff]  ;;  %v3178_v25 = vld [vmem:[%s4211_s4 + $0xe8] sm:$0xff]  ;;  %vm642_vm1 = vsmask.f32 7440  ;;  %s2363_s17 = sshll.u32 %s525_s6, 5 }
  0x56   : > { %v3156_v18 = vld [vmem:[%s4211_s4 + $0x38] sm:$0xff]  ;;  %823 = vmatpush.bf16.msra.mxu1 %v3180_v17  ;;  %v3155_v22 = vld [vmem:[%s4211_s4 + $0x30] sm:$0xff]  ;;  %v3154_v26 = vld [vmem:[%s4211_s4 + $0x28] sm:$0xff]  ;;  %s3844_s18 = scalar_lea.vmem [#allocation3], %s2363_s17 }
  0x57   : > { %v3164_v19 = vld [vmem:[%s4211_s4 + $0x78] sm:$0xff]  ;;  %943 = vmatpush.bf16.msra.mxu2 %v3156_v18  ;;  %v3163_v23 = vld [vmem:[%s4211_s4 + $0x70] sm:$0xff]  ;;  %v3162_v27 = vld [vmem:[%s4211_s4 + $0x68] sm:$0xff] }
  0x58   : > { %957 = vmatpush.bf16.msra.mxu3 %v3164_v19  ;;  %v3169_v28 = vld [vmem:[%s4211_s4 + $0xa0] sm:$0xff]  ;;  %v3168_v32 = vld [vmem:[%s4211_s4 + $0x98] sm:$0xff]  ;;  %v3167_v36 = vld [vmem:[%s4211_s4 + $0x90] sm:$0xff] }
  0x59   : > { %810 = vmatpush.bf16.msra.mxu0 %v3171_v20  ;;  %v3177_v29 = vld [vmem:[%s4211_s4 + $0xe0] sm:$0xff]  ;;  %v3176_v33 = vld [vmem:[%s4211_s4 + $0xd8] sm:$0xff]  ;;  %v606_v38 = vld [vmem:[%s3767_s11 + $0x8] sm:$0x11] }
  0x5a   : > { %824 = vmatpush.bf16.msra.mxu1 %v3179_v21  ;;  %v3153_v30 = vld [vmem:[%s4211_s4 + $0x20] sm:$0xff]  ;;  %v3152_v34 = vld [vmem:[%s4211_s4 + $0x18] sm:$0xff]  ;;  %v607_v39 = vld [vmem:[%s3767_s11 + $0x10] sm:$0xff]  ;;  %v654_v43 = vshll.u32 %v606_v38, 16 }
  0x5b   : > { %944 = vmatpush.bf16.msra.mxu2 %v3155_v22  ;;  %v3161_v31 = vld [vmem:[%s4211_s4 + $0x60] sm:$0xff]  ;;  %v3160_v35 = vld [vmem:[%s4211_s4 + $0x58] sm:$0xff]  ;;  %v659_v44 = vshrl.u32 %v607_v39, 16  ;;  %v3175_v45 = vld [vmem:[%s4211_s4 + $0xd0] sm:$0xff]  ;;  %v662_v47 = vshll.u32 %v607_v39, 16 }
  0x5c   : > { %958 = vmatpush.bf16.msra.mxu3 %v3163_v23  ;;  %v605_v37 = vld [vmem:[%s3767_s11] sm:$0xff]  ;;  %v608_v40 = vld [vmem:[%s3767_s11 + $0x18] sm:$0x11]  ;;  %v3151_v46 = vld [vmem:[%s4211_s4 + $0x10] sm:$0xff]  ;;  %v656_v55 = vrot.slane %v654_v43, 5 }
  0x5d   : > { %811 = vmatpush.bf16.msra.mxu0 %v3170_v24  ;;  %v645_v41 = vshrl.u32 %v605_v37, 16  ;;  %v648_v42 = vshll.u32 %v605_v37, 16  ;;  %v668_v48 = vshll.u32 %v608_v40, 16  ;;  %v3159_v49 = vld [vmem:[%s4211_s4 + $0x50] sm:$0xff]  ;;  %v661_v52 = vrot.slane %v659_v44, 4  ;;  %v3166_v56 = vld [vmem:[%s4211_s4 + $0x88] sm:$0xff]  ;;  %vm3789_vm2 = vmor %vm641_vm0, %vm642_vm1 }
  0x5e   : > { %825 = vmatpush.bf16.msra.mxu1 %v3178_v25  ;;  %v664_v53 = vrot.slane %v662_v47, 5  ;;  %v3174_v57 = vld [vmem:[%s4211_s4 + $0xc8] sm:$0xff]  ;;  %v3165_v1 = vld [vmem:[%s4211_s4 + $0x80] sm:$0xff]  ;;  %v3190_v9 = vld [vmem:[%s4211_s4 + $0x138] sm:$0xff] }
  0x5f   : > { %945 = vmatpush.bf16.msra.mxu2 %v3154_v26  ;;  %v647_v50 = vrot.slane %v645_v41, 4  ;;  %v650_v51 = vrot.slane %v648_v42, 5  ;;  %v670_v60 = vrot.slane %v668_v48, 5  ;;  %v3150_v61 = vld [vmem:[%s4211_s4 + $0x8] sm:$0xff]  ;;  %v3173_v2 = vld [vmem:[%s4211_s4 + $0xc0] sm:$0xff]  ;;  %v3198_v10 = vld [vmem:[%s4211_s4 + $0x178] sm:$0xff] }
  0x60   : > { %959 = vmatpush.bf16.msra.mxu3 %v3162_v27  ;;  %v665_v59 = vor.u32 %v664_v53, %v661_v52  ;;  %v3158_v62 = vld [vmem:[%s4211_s4 + $0x48] sm:$0xff]  ;;  %v3149_v4 = vld [vmem:[%s4211_s4] sm:$0xff]  ;;  %v3148_v14 = vld [vmem:[%s3767_s11 + $0xc] sm:$0xf0] }
  0x61   : > { %812 = vmatpush.bf16.msra.mxu0 %v3169_v28  ;;  %v651_v54 = vor.u32 %v650_v51, %v647_v50  ;;  %v3157_v5 = vld [vmem:[%s4211_s4 + $0x40] sm:$0xff]  ;;  %v2467_v16 = vld [vmem:[%s3767_s11 + $0x10] sm:$0xf0]  ;;  %v3206_v17 = vld [vmem:[%s4211_s4 + $0x1b8] sm:$0xff] }
  0x62   : > { %826 = vmatpush.bf16.msra.mxu1 %v3177_v29  ;;  %v666_v0 = vrot.slane %v665_v59, 4  ;;  %v2465_v13 = vld [vmem:[%s3767_s11] sm:$0xf]  ;;  %v3147_v15 = vld [vmem:[%s3767_s11 + $0x4] sm:$0xf]  ;;  %v3214_v18 = vld [vmem:[%s4211_s4 + $0x1f8] sm:$0xff] }
  0x63   : > { %946 = vmatpush.bf16.msra.mxu2 %v3153_v30  ;;  %v652_v63 = vrot.slane %v651_v54, 4  ;;  %v2466_v21 = vor.u32 %v3148_v14, %v2465_v13  ;;  %v2470_v22 = vor.u32 %v3147_v15, %v2467_v16  ;;  %v3189_v23 = vld [vmem:[%s4211_s4 + $0x130] sm:$0xff]  ;;  %v971_v27 = vld [vmem:[%s3844_s18] sm:$0xff]  ;;  %v3188_v29 = vld [vmem:[%s4211_s4 + $0x128] sm:$0xff]  ;;  %s4236_s11 = sld [smem:[#allocation14_spill]] (%p3668_p5) }
  0x64   : > { %960 = vmatpush.bf16.msra.mxu3 %v3161_v31  ;;  %v671_v6 = vsel %vm3789_vm2, %v666_v0, %v670_v60  ;;  %v3197_v24 = vld [vmem:[%s4211_s4 + $0x170] sm:$0xff]  ;;  %v3196_v30 = vld [vmem:[%s4211_s4 + $0x168] sm:$0xff]  ;;  %v3187_v37 = vld [vmem:[%s4211_s4 + $0x120] sm:$0xff] }
  0x65   : > { %813 = vmatpush.bf16.msra.mxu0 %v3168_v32  ;;  %v657_v3 = vsel %vm3789_vm2, %v652_v63, %v656_v55  ;;  %v707_v11 = vunpack.c.l.b16 %v671_v6  ;;  %v708_v12 = vunpack.c.h.b16 %v671_v6  ;;  %v3205_v25 = vld [vmem:[%s4211_s4 + $0x1b0] sm:$0xff]  ;;  %v3204_v31 = vld [vmem:[%s4211_s4 + $0x1a8] sm:$0xff]  ;;  %v3195_v38 = vld [vmem:[%s4211_s4 + $0x160] sm:$0xff] }
  0x66   : > { %827 = vmatpush.bf16.msra.mxu1 %v3176_v33  ;;  %v705_v7 = vunpack.c.l.b16 %v657_v3  ;;  %v706_v8 = vunpack.c.h.b16 %v657_v3  ;;  %v3213_v26 = vld [vmem:[%s4211_s4 + $0x1f0] sm:$0xff]  ;;  %v3212_v32 = vld [vmem:[%s4211_s4 + $0x1e8] sm:$0xff]  ;;  %v1145_v33 = vshrl.u32 %v971_v27, 16  ;;  %v3203_v39 = vld [vmem:[%s4211_s4 + $0x1a0] sm:$0xff] }
  0x67   : > { %947 = vmatpush.bf16.msra.mxu2 %v3152_v34  ;;  %v973_v28 = vld [vmem:[%s3844_s18 + $0x10] sm:$0xff]  ;;  %v1148_v34 = vshll.u32 %v971_v27, 16  ;;  %v3211_v40 = vld [vmem:[%s4211_s4 + $0x1e0] sm:$0xff]  ;;  %v3186_v47 = vld [vmem:[%s4211_s4 + $0x118] sm:$0xff] }
  0x68   : > { %961 = vmatpush.bf16.msra.mxu3 %v3160_v35  ;;  %v709_v19 = vpack.c.b16 %v707_v11, %v705_v7  ;;  %v710_v20 = vpack.c.b16 %v708_v12, %v706_v8  ;;  %v1159_v35 = vshrl.u32 %v973_v28, 16  ;;  %v1147_v41 = vrot.slane %v1145_v33, 4  ;;  %v3194_v48 = vld [vmem:[%s4211_s4 + $0x158] sm:$0xff]  ;;  %v3185_v55 = vld [vmem:[%s4211_s4 + $0x110] sm:$0xff]  ;;  %v3184_v0 = vld [vmem:[%s4211_s4 + $0x108] sm:$0xff] }
  0x69   : > { %814 = vmatpush.bf16.msra.mxu0 %v3167_v36  ;;  %v1162_v36 = vshll.u32 %v973_v28, 16  ;;  %v1150_v42 = vrot.slane %v1148_v34, 5  ;;  %v3210_v50 = vld [vmem:[%s4211_s4 + $0x1d8] sm:$0xff]  ;;  %v3209_v59 = vld [vmem:[%s4211_s4 + $0x1d0] sm:$0xff]  ;;  %v3208_v3 = vld [vmem:[%s4211_s4 + $0x1c8] sm:$0xff] }
  0x6a   : > { %828 = vmatpush.bf16.msra.mxu1 %v3175_v45  ;;  %v1161_v43 = vrot.slane %v1159_v35, 4  ;;  %v972_v45 = vld [vmem:[%s3844_s18 + $0x8] sm:$0x11]  ;;  %v3183_v6 = vld [vmem:[%s4211_s4 + $0x100] sm:$0xff]  ;;  %v3182_v11 = vld [vmem:[%s3844_s18 + $0xc] sm:$0xf0] }
  0x6b   : > { %948 = vmatpush.bf16.msra.mxu2 %v3151_v46  ;;  %v1164_v44 = vrot.slane %v1162_v36, 5  ;;  %v974_v46 = vld [vmem:[%s3844_s18 + $0x18] sm:$0x11]  ;;  %v1151_v51 = vor.u32 %v1150_v42, %v1147_v41  ;;  %v1154_v52 = vshll.u32 %v972_v45, 16  ;;  %v3191_v7 = vld [vmem:[%s4211_s4 + $0x140] sm:$0xff]  ;;  %v3231_v27 = vld [vmem:[%s4211_s4 + $0x270] sm:$0xff] }
  0x6c   : > { %962 = vmatpush.bf16.msra.mxu3 %v3159_v49  ;;  %v3202_v49 = vld [vmem:[%s4211_s4 + $0x198] sm:$0xff]  ;;  %v1168_v54 = vshll.u32 %v974_v46, 16  ;;  %v3199_v8 = vld [vmem:[%s4211_s4 + $0x180] sm:$0xff]  ;;  %v2571_v13 = vld [vmem:[%s3844_s18 + $0x10] sm:$0xf0] }
  0x6d   : > { %815 = vmatpush.bf16.msra.mxu0 %v3166_v56  ;;  %v1165_v53 = vor.u32 %v1164_v44, %v1161_v43  ;;  %v3193_v56 = vld [vmem:[%s4211_s4 + $0x150] sm:$0xff]  ;;  %v1152_v60 = vrot.slane %v1151_v51, 4  ;;  %v3181_v12 = vld [vmem:[%s3844_s18 + $0x4] sm:$0xf]  ;;  %v3230_v33 = vld [vmem:[%s4211_s4 + $0x268] sm:$0xff] }
  0x6e   : > { %829 = vmatpush.bf16.msra.mxu1 %v3174_v57  ;;  %v3201_v57 = vld [vmem:[%s4211_s4 + $0x190] sm:$0xff]  ;;  %v1170_v63 = vrot.slane %v1168_v54, 5  ;;  %v3238_v34 = vld [vmem:[%s4211_s4 + $0x2a8] sm:$0xff]  ;;  %v3229_v41 = vld [vmem:[%s4211_s4 + $0x260] sm:$0xff] }
  0x6f   : > { %949 = vmatpush.bf16.msra.mxu2 %v3150_v61  ;;  %v1156_v61 = vrot.slane %v1154_v52, 5  ;;  %v3239_v28 = vld [vmem:[%s4211_s4 + $0x2b0] sm:$0xff]  ;;  %v3246_v35 = vld [vmem:[%s4211_s4 + $0x2e8] sm:$0xff]  ;;  %v3237_v42 = vld [vmem:[%s4211_s4 + $0x2a0] sm:$0xff] }
  0x70   : > { %963 = vmatpush.bf16.msra.mxu3 %v3158_v62  ;;  %v1166_v62 = vrot.slane %v1165_v53, 4  ;;  %v3245_v43 = vld [vmem:[%s4211_s4 + $0x2e0] sm:$0xff]  ;;  %v3228_v51 = vld [vmem:[%s4211_s4 + $0x258] sm:$0xff] }
  0x71   : > { %816 = vmatpush.bf16.msra.mxu0 %v3165_v1  ;;  %v3192_v1 = vld [vmem:[%s4211_s4 + $0x148] sm:$0xff]  ;;  %v3236_v52 = vld [vmem:[%s4211_s4 + $0x298] sm:$0xff]  ;;  %v3267_v58 = vld [vmem:[%s4211_s4 + $0x380] sm:$0xff] }
  0x72   : > { %830 = vmatpush.bf16.msra.mxu1 %v3173_v2  ;;  %v3200_v2 = vld [vmem:[%s4211_s4 + $0x188] sm:$0xff]  ;;  %v3244_v53 = vld [vmem:[%s4211_s4 + $0x2d8] sm:$0xff] }
  0x73   : > { %950 = vmatpush.bf16.msra.mxu2 %v3149_v4  ;;  %v1157_v4 = vsel %vm3789_vm2, %v1152_v60, %v1156_v61  ;;  %v3227_v60 = vld [vmem:[%s4211_s4 + $0x250] sm:$0xff] }
  0x74   : > { %964 = vmatpush.bf16.msra.mxu3 %v3157_v5  ;;  %817 = vmatmul.bf16.vlgmr.msra.gmra.mxu0 %v709_v19  ;;  %v1171_v5 = vsel %vm3789_vm2, %v1166_v62, %v1170_v63  ;;  %v1205_v14 = vunpack.c.l.b16 %v1157_v4  ;;  %v1206_v16 = vunpack.c.h.b16 %v1157_v4  ;;  %v3232_v19 = vld [vmem:[%s4211_s4 + $0x278] sm:$0xff]  ;;  %v3235_v61 = vld [vmem:[%s4211_s4 + $0x290] sm:$0xff]  ;;  %v3226_v4 = vld [vmem:[%s4211_s4 + $0x248] sm:$0xff] }
  0x75   : > { %1114 = vmatpush.bf16.msrb.mxu0 %v3190_v9  ;;  %831 = vmatmul.bf16.vlgmr.msra.gmra.mxu1 %v710_v20  ;;  %v3207_v9 = vld [vmem:[%s4211_s4 + $0x1c0] sm:$0xff]  ;;  %v1207_v15 = vunpack.c.l.b16 %v1171_v5  ;;  %v3240_v20 = vld [vmem:[%s4211_s4 + $0x2b8] sm:$0xff]  ;;  %v3243_v62 = vld [vmem:[%s4211_s4 + $0x2d0] sm:$0xff] }
  0x76   : > { %1128 = vmatpush.bf16.msrb.mxu1 %v3198_v10  ;;  %951 = vmatmul.bf16.vlgmr.msra.gmra.mxu2 %v2466_v21  ;;  %v2569_v10 = vld [vmem:[%s3844_s18] sm:$0xf]  ;;  %v3248_v21 = vld [vmem:[%s4211_s4 + $0x2f8] sm:$0xff]  ;;  %s2364_s18 = sshll.u32 %s532_s14, 5  ;;  %s4235_s14 = sld [smem:[#allocation9_spill]] (%p3668_p5) }
  0x77   : > { %1309 = vmatpush.bf16.msrb.mxu2 %v3206_v17  ;;  %965 = vmatmul.bf16.vlgmr.msra.gmra.mxu3 %v2470_v22  ;;  %v1208_v17 = vunpack.c.h.b16 %v1171_v5  ;;  %v2570_v22 = vor.u32 %v3182_v11, %v2569_v10  ;;  %s3955_s30 = scalar_lea.vmem [#allocation4], %s2364_s18  ;;  %v3234_v5 = vld [vmem:[%s4211_s4 + $0x288] sm:$0xff]  ;;  %v3225_v10 = vld [vmem:[%s4211_s4 + $0x240] sm:$0xff]  ;;  %s583_s18 = sand.u32 1, %s3447_s21  }
  0x78   : > { %1323 = vmatpush.bf16.msrb.mxu3 %v3214_v18  ;;  %v3224_v18 = vld [vmem:[%s4211_s4 + $0x238] sm:$0xff]  ;;  %v3233_v11 = vld [vmem:[%s4211_s4 + $0x280] sm:$0xff]  ;;  %s2366_s7 = sshll.u32 %s583_s18, 3 }
  0x79   : > { %1115 = vmatpush.bf16.msrb.mxu0 %v3189_v23  ;;  %v2574_v23 = vor.u32 %v3181_v12, %v2571_v13  ;;  %v3241_v12 = vld [vmem:[%s4211_s4 + $0x2c0] sm:$0xff]  ;;  %s585_s13 = scalar_lea.vmem [#allocation6], %s2366_s7 }
  0x7a   : > { %1129 = vmatpush.bf16.msrb.mxu1 %v3197_v24  ;;  %v1209_v24 = vpack.c.b16 %v1207_v15, %v1205_v14  ;;  %v2769_v13 = vld [vmem:[%s3955_s30] sm:$0xf]  ;;  %v3216_v14 = vld [vmem:[%s3955_s30 + $0xc] sm:$0xf0]  ;;  %v3215_v15 = vld [vmem:[%s3955_s30 + $0x4] sm:$0xf] }
  0x7b   : > { %1310 = vmatpush.bf16.msrb.mxu2 %v3205_v25  ;;  %v1210_v25 = vpack.c.b16 %v1208_v17, %v1206_v16  ;;  %v2771_v16 = vld [vmem:[%s3955_s30 + $0x10] sm:$0xf0] }
  0x7c   : > { %1324 = vmatpush.bf16.msrb.mxu3 %v3213_v26  ;;  %v3223_v26 = vld [vmem:[%s4211_s4 + $0x230] sm:$0xff]  ;;  %s3136_s23 = sshll.u32 (%p3668_p5), %s4235_s14, 2 }
  0x7d   : > { %1116 = vmatpush.bf16.msrb.mxu0 %v3188_v29  ;;  %v3247_v29 = vld [vmem:[%s4211_s4 + $0x2f0] sm:$0xff]  ;;  %s2103_s17 = scalar_lea.vmem (%p3668_p5), %s4236_s11, %s3136_s23 }
  0x7e   : > { %1130 = vmatpush.bf16.msrb.mxu1 %v3196_v30  ;;  %v1339_v30 = vld [vmem:[%s3955_s30] sm:$0xff] }
  0x7f   : > { %1311 = vmatpush.bf16.msrb.mxu2 %v3204_v31  ;;  %v1341_v31 = vld [vmem:[%s3955_s30 + $0x10] sm:$0xff]  ;;  %v1513_v36 = vshrl.u32 %v1339_v30, 16 }
  0x80   : > { %1325 = vmatpush.bf16.msrb.mxu3 %v3212_v32  ;;  %v3222_v32 = vld [vmem:[%s4211_s4 + $0x228] sm:$0xff] }
  0x81   : > { %1117 = vmatpush.bf16.msrb.mxu0 %v3187_v37  ;;  %v1516_v37 = vshll.u32 %v1339_v30, 16  ;;  %v1515_v44 = vrot.slane %v1513_v36, 4  ;;  %v3265_v30 = vld [vmem:[%s4211_s4 + $0x370] sm:$0xff]  ;;  %v3264_v36 = vld [vmem:[%s4211_s4 + $0x368] sm:$0xff] }
  0x82   : > { %1131 = vmatpush.bf16.msrb.mxu1 %v3195_v38  ;;  %v1527_v38 = vshrl.u32 %v1341_v31, 16 }
  0x83   : > { %1312 = vmatpush.bf16.msrb.mxu2 %v3203_v39  ;;  %v1530_v39 = vshll.u32 %v1341_v31, 16  ;;  %v1518_v45 = vrot.slane %v1516_v37, 5  ;;  %v3273_v31 = vld [vmem:[%s4211_s4 + $0x3b0] sm:$0xff]  ;;  %v3272_v37 = vld [vmem:[%s4211_s4 + $0x3a8] sm:$0xff] }
  0x84   : > { %1326 = vmatpush.bf16.msrb.mxu3 %v3211_v40  ;;  %v3221_v40 = vld [vmem:[%s4211_s4 + $0x220] sm:$0xff]  ;;  %v1529_v46 = vrot.slane %v1527_v38, 4  ;;  %v3280_v38 = vld [vmem:[%s4211_s4 + $0x3e8] sm:$0xff] }
  0x85   : > { %1118 = vmatpush.bf16.msrb.mxu0 %v3186_v47  ;;  %v1532_v47 = vrot.slane %v1530_v39, 5  ;;  %v1519_v54 = vor.u32 %v1518_v45, %v1515_v44  ;;  %v3263_v44 = vld [vmem:[%s4211_s4 + $0x360] sm:$0xff] }
  0x86   : > { %1132 = vmatpush.bf16.msrb.mxu1 %v3194_v48  ;;  %v1340_v48 = vld [vmem:[%s3955_s30 + $0x8] sm:$0x11]  ;;  %v3271_v45 = vld [vmem:[%s4211_s4 + $0x3a0] sm:$0xff] }
  0x87   : > { %1313 = vmatpush.bf16.msrb.mxu2 %v3202_v49  ;;  %v1342_v49 = vld [vmem:[%s3955_s30 + $0x18] sm:$0x11]  ;;  %v1520_v63 = vrot.slane %v1519_v54, 4 }
  0x88   : > { %1327 = vmatpush.bf16.msrb.mxu3 %v3210_v50  ;;  %v3220_v50 = vld [vmem:[%s4211_s4 + $0x218] sm:$0xff] }
  0x89   : > { %1119 = vmatpush.bf16.msrb.mxu0 %v3185_v55  ;;  %v1522_v55 = vshll.u32 %v1340_v48, 16  ;;  %v3262_v54 = vld [vmem:[%s4211_s4 + $0x358] sm:$0xff] }
  0x8a   : > { %1133 = vmatpush.bf16.msrb.mxu1 %v3193_v56  ;;  %v1533_v56 = vor.u32 %v1532_v47, %v1529_v46  ;;  %v3279_v46 = vld [vmem:[%s4211_s4 + $0x3e0] sm:$0xff] }
  0x8b   : > { %1314 = vmatpush.bf16.msrb.mxu2 %v3201_v57  ;;  %v1536_v57 = vshll.u32 %v1342_v49, 16 }
  0x8c   : > { %1328 = vmatpush.bf16.msrb.mxu3 %v3209_v59  ;;  %v3219_v59 = vld [vmem:[%s4211_s4 + $0x210] sm:$0xff] }
  0x8d   : > { %1120 = vmatpush.bf16.msrb.mxu0 %v3184_v0  ;;  %v1524_v0 = vrot.slane %v1522_v55, 5  ;;  %v3270_v55 = vld [vmem:[%s4211_s4 + $0x398] sm:$0xff] }
  0x8e   : > { %1134 = vmatpush.bf16.msrb.mxu1 %v3192_v1  ;;  %v1534_v1 = vrot.slane %v1533_v56, 4  ;;  %v3278_v56 = vld [vmem:[%s4211_s4 + $0x3d8] sm:$0xff] }
  0x8f   : > { %1315 = vmatpush.bf16.msrb.mxu2 %v3200_v2  ;;  %v1538_v2 = vrot.slane %v1536_v57, 5 }
  0x90   : > { %1329 = vmatpush.bf16.msrb.mxu3 %v3208_v3  ;;  %v3218_v3 = vld [vmem:[%s4211_s4 + $0x208] sm:$0xff] }
  0x91   : > { %1121 = vmatpush.bf16.msrb.mxu0 %v3183_v6  ;;  %v3242_v6 = vld [vmem:[%s4211_s4 + $0x2c8] sm:$0xff] }
  0x92   : > { %1135 = vmatpush.bf16.msrb.mxu1 %v3191_v7  ;;  %v1525_v7 = vsel %vm3789_vm2, %v1520_v63, %v1524_v0  ;;  %v3261_v63 = vld [vmem:[%s4211_s4 + $0x350] sm:$0xff] }
  0x93   : > { %1316 = vmatpush.bf16.msrb.mxu2 %v3199_v8  ;;  %v1539_v8 = vsel %vm3789_vm2, %v1534_v1, %v1538_v2  ;;  %v1573_v17 = vunpack.c.l.b16 %v1525_v7  ;;  %v3269_v0 = vld [vmem:[%s4211_s4 + $0x390] sm:$0xff] }
  0x94   : > { %1330 = vmatpush.bf16.msrb.mxu3 %v3207_v9  ;;  %1122 = vmatmul.bf16.vlgmr.msrb.gmra.mxu0 %v2570_v22  ;;  %v3217_v9 = vld [vmem:[%s4211_s4 + $0x200] sm:$0xff]  ;;  %v3266_v22 = vld [vmem:[%s4211_s4 + $0x378] sm:$0xff]  ;;  %v3277_v1 = vld [vmem:[%s4211_s4 + $0x3d0] sm:$0xff] }
  0x95   : > { %1482 = vmatpush.bf16.msra.mxu0 %v3224_v18  ;;  %1136 = vmatmul.bf16.vlgmr.msrb.gmra.mxu1 %v2574_v23  ;;  %v1575_v18 = vunpack.c.l.b16 %v1539_v8  ;;  %v3274_v23 = vld [vmem:[%s4211_s4 + $0x3b8] sm:$0xff] }
  0x96   : > { %1496 = vmatpush.bf16.msra.mxu1 %v3232_v19  ;;  %1317 = vmatmul.bf16.vlgmr.msrb.gmra.mxu2 %v1209_v24  ;;  %v1574_v19 = vunpack.c.h.b16 %v1525_v7  ;;  %v3282_v24 = vld [vmem:[%s4211_s4 + $0x3f8] sm:$0xff]  ;;  %v3260_v7 = vld [vmem:[%s4211_s4 + $0x348] sm:$0xff] }
  0x97   : > { %1677 = vmatpush.bf16.msra.mxu2 %v3240_v20  ;;  %1331 = vmatmul.bf16.vlgmr.msrb.gmra.mxu3 %v1210_v25  ;;  %v1576_v20 = vunpack.c.h.b16 %v1539_v8  ;;  %v2770_v25 = vor.u32 %v3216_v14, %v2769_v13  ;;  %v3268_v8 = vld [vmem:[%s4211_s4 + $0x388] sm:$0xff]  ;;  %v3259_v13 = vld [vmem:[%s4211_s4 + $0x340] sm:$0xff] }
  0x98   : > { %1691 = vmatpush.bf16.msra.mxu3 %v3248_v21  ;;  %v3258_v21 = vld [vmem:[%s4211_s4 + $0x338] sm:$0xff]  ;;  %v2969_v14 = vld [vmem:[%s4066_s20] sm:$0xf] }
  0x99   : > { %1483 = vmatpush.bf16.msra.mxu0 %v3223_v26  ;;  %v2774_v26 = vor.u32 %v3215_v15, %v2771_v16  ;;  %v3250_v15 = vld [vmem:[%s4066_s20 + $0xc] sm:$0xf0]  ;;  %v3249_v16 = vld [vmem:[%s4066_s20 + $0x4] sm:$0xf] }
  0x9a   : > { %1497 = vmatpush.bf16.msra.mxu1 %v3231_v27  ;;  %v1577_v27 = vpack.c.b16 %v1575_v18, %v1573_v17  ;;  %v2971_v17 = vld [vmem:[%s4066_s20 + $0x10] sm:$0xf0] }
  0x9b   : > { %1678 = vmatpush.bf16.msra.mxu2 %v3239_v28  ;;  %v1578_v28 = vpack.c.b16 %v1576_v20, %v1574_v19 }
  0x9c   : > { %1692 = vmatpush.bf16.msra.mxu3 %v3247_v29  ;;  %v3257_v29 = vld [vmem:[%s4211_s4 + $0x330] sm:$0xff] }
  0x9d   : > { %1484 = vmatpush.bf16.msra.mxu0 %v3222_v32  ;;  %v3281_v32 = vld [vmem:[%s4211_s4 + $0x3f0] sm:$0xff] }
  0x9e   : > { %1498 = vmatpush.bf16.msra.mxu1 %v3230_v33  ;;  %v1707_v33 = vld [vmem:[%s4066_s20] sm:$0xff] }
  0x9f   : > { %1679 = vmatpush.bf16.msra.mxu2 %v3238_v34  ;;  %v1709_v34 = vld [vmem:[%s4066_s20 + $0x10] sm:$0xff]  ;;  %v1881_v39 = vshrl.u32 %v1707_v33, 16 }
  0xa0   : > { %1693 = vmatpush.bf16.msra.mxu3 %v3246_v35  ;;  %v3256_v35 = vld [vmem:[%s4211_s4 + $0x328] sm:$0xff] }
  0xa1   : > { %1485 = vmatpush.bf16.msra.mxu0 %v3221_v40  ;;  %v1884_v40 = vshll.u32 %v1707_v33, 16  ;;  %v1883_v47 = vrot.slane %v1881_v39, 4 }
  0xa2   : > { %1499 = vmatpush.bf16.msra.mxu1 %v3229_v41  ;;  %v1895_v41 = vshrl.u32 %v1709_v34, 16 }
  0xa3   : > { %1680 = vmatpush.bf16.msra.mxu2 %v3237_v42  ;;  %v1898_v42 = vshll.u32 %v1709_v34, 16  ;;  %v1886_v48 = vrot.slane %v1884_v40, 5 }
  0xa4   : > { %1694 = vmatpush.bf16.msra.mxu3 %v3245_v43  ;;  %v3255_v43 = vld [vmem:[%s4211_s4 + $0x320] sm:$0xff]  ;;  %v1897_v49 = vrot.slane %v1895_v41, 4 }
  0xa5   : > { %1486 = vmatpush.bf16.msra.mxu0 %v3220_v50  ;;  %v1900_v50 = vrot.slane %v1898_v42, 5  ;;  %v1887_v57 = vor.u32 %v1886_v48, %v1883_v47 }
  0xa6   : > { %1500 = vmatpush.bf16.msra.mxu1 %v3228_v51  ;;  %v1708_v51 = vld [vmem:[%s4066_s20 + $0x8] sm:$0x11] }
  0xa7   : > { %1681 = vmatpush.bf16.msra.mxu2 %v3236_v52  ;;  %v1710_v52 = vld [vmem:[%s4066_s20 + $0x18] sm:$0x11]  ;;  %v1888_v2 = vrot.slane %v1887_v57, 4 }
  0xa8   : > { %1695 = vmatpush.bf16.msra.mxu3 %v3244_v53  ;;  %v3254_v53 = vld [vmem:[%s4211_s4 + $0x318] sm:$0xff] }
  0xa9   : > { %1487 = vmatpush.bf16.msra.mxu0 %v3219_v59  ;;  %v1890_v59 = vshll.u32 %v1708_v51, 16 }
  0xaa   : > { %1501 = vmatpush.bf16.msra.mxu1 %v3227_v60  ;;  %v1901_v60 = vor.u32 %v1900_v50, %v1897_v49 }
  0xab   : > { %1682 = vmatpush.bf16.msra.mxu2 %v3235_v61  ;;  %v1904_v61 = vshll.u32 %v1710_v52, 16 }
  0xac   : > { %1696 = vmatpush.bf16.msra.mxu3 %v3243_v62  ;;  %v3253_v62 = vld [vmem:[%s4211_s4 + $0x310] sm:$0xff] }
  0xad   : > { %1488 = vmatpush.bf16.msra.mxu0 %v3218_v3  ;;  %v1892_v3 = vrot.slane %v1890_v59, 5 }
  0xae   : > { %1502 = vmatpush.bf16.msra.mxu1 %v3226_v4  ;;  %v1902_v4 = vrot.slane %v1901_v60, 4 }
  0xaf   : > { %1683 = vmatpush.bf16.msra.mxu2 %v3234_v5  ;;  %v1906_v5 = vrot.slane %v1904_v61, 5 }
  0xb0   : > { %1697 = vmatpush.bf16.msra.mxu3 %v3242_v6  ;;  %v3252_v6 = vld [vmem:[%s4211_s4 + $0x308] sm:$0xff] }
  0xb1   : > { %1489 = vmatpush.bf16.msra.mxu0 %v3217_v9  ;;  %v3276_v9 = vld [vmem:[%s4211_s4 + $0x3c8] sm:$0xff] }
  0xb2   : > { %1503 = vmatpush.bf16.msra.mxu1 %v3225_v10  ;;  %v1893_v10 = vsel %vm3789_vm2, %v1888_v2, %v1892_v3 }
  0xb3   : > { %1684 = vmatpush.bf16.msra.mxu2 %v3233_v11  ;;  %v1907_v11 = vsel %vm3789_vm2, %v1902_v4, %v1906_v5  ;;  %v1941_v18 = vunpack.c.l.b16 %v1893_v10  ;;  %v1942_v20 = vunpack.c.h.b16 %v1893_v10 }
  0xb4   : > { %1698 = vmatpush.bf16.msra.mxu3 %v3241_v12  ;;  %1490 = vmatmul.bf16.vlgmr.msra.gmra.mxu0 %v2770_v25  ;;  %v3251_v12 = vld [vmem:[%s4211_s4 + $0x300] sm:$0xff]  ;;  %v1943_v19 = vunpack.c.l.b16 %v1907_v11 }
  0xb5   : > { %1850 = vmatpush.bf16.msrb.mxu0 %v3258_v21  ;;  %1504 = vmatmul.bf16.vlgmr.msra.gmra.mxu1 %v2774_v26  ;;  %v1944_v21 = vunpack.c.h.b16 %v1907_v11 }
  0xb6   : > { %1864 = vmatpush.bf16.msrb.mxu1 %v3266_v22  ;;  %1685 = vmatmul.bf16.vlgmr.msra.gmra.mxu2 %v1577_v27  ;;  %v3275_v22 = vld [vmem:[%s4211_s4 + $0x3c0] sm:$0xff]  ;;  %v1945_v25 = vpack.c.b16 %v1943_v19, %v1941_v18 }
  0xb7   : > { %2045 = vmatpush.bf16.msrb.mxu2 %v3274_v23  ;;  %1699 = vmatmul.bf16.vlgmr.msra.gmra.mxu3 %v1578_v28  ;;  %v2970_v23 = vor.u32 %v3250_v15, %v2969_v14  ;;  %v1946_v26 = vpack.c.b16 %v1944_v21, %v1942_v20  ;;  %v3392_v19 = vld [vmem:[%s4234_s27] ss:$0 sm:$0xff] }
  0xb8   : > { %2059 = vmatpush.bf16.msrb.mxu3 %v3282_v24  ;;  %v2974_v24 = vor.u32 %v3249_v16, %v2971_v17 }
  0xb9   : > { %1851 = vmatpush.bf16.msrb.mxu0 %v3257_v29 }
  0xba   : > { %1865 = vmatpush.bf16.msrb.mxu1 %v3265_v30 }
  0xbb   : > { %2046 = vmatpush.bf16.msrb.mxu2 %v3273_v31 }
  0xbc   : > { %2060 = vmatpush.bf16.msrb.mxu3 %v3281_v32 }
  0xbd   : > { %1852 = vmatpush.bf16.msrb.mxu0 %v3256_v35 }
  0xbe   : > { %1866 = vmatpush.bf16.msrb.mxu1 %v3264_v36 }
  0xbf   : > { %2047 = vmatpush.bf16.msrb.mxu2 %v3272_v37 }
  0xc0   : > { %2061 = vmatpush.bf16.msrb.mxu3 %v3280_v38 }
  0xc1   : > { %1853 = vmatpush.bf16.msrb.mxu0 %v3255_v43 }
  0xc2   : > { %1867 = vmatpush.bf16.msrb.mxu1 %v3263_v44 }
  0xc3   : > { %2048 = vmatpush.bf16.msrb.mxu2 %v3271_v45 }
  0xc4   : > { %2062 = vmatpush.bf16.msrb.mxu3 %v3279_v46 }
  0xc5   : > { %1854 = vmatpush.bf16.msrb.mxu0 %v3254_v53 }
  0xc6   : > { %1868 = vmatpush.bf16.msrb.mxu1 %v3262_v54 }
  0xc7   : > { %2049 = vmatpush.bf16.msrb.mxu2 %v3270_v55 }
  0xc8   : > { %2063 = vmatpush.bf16.msrb.mxu3 %v3278_v56 }
  0xc9   : > { %1855 = vmatpush.bf16.msrb.mxu0 %v3253_v62 }
  0xca   : > { %1869 = vmatpush.bf16.msrb.mxu1 %v3261_v63 }
  0xcb   : > { %2050 = vmatpush.bf16.msrb.mxu2 %v3269_v0 }
  0xcc   : > { %2064 = vmatpush.bf16.msrb.mxu3 %v3277_v1 }
  0xcd   : > { %1856 = vmatpush.bf16.msrb.mxu0 %v3252_v6 }
  0xce   : > { %1870 = vmatpush.bf16.msrb.mxu1 %v3260_v7 }
  0xcf   : > { %2051 = vmatpush.bf16.msrb.mxu2 %v3268_v8 }
  0xd0   : > { %2065 = vmatpush.bf16.msrb.mxu3 %v3276_v9 }
  0xd1   : > { %1857 = vmatpush.bf16.msrb.mxu0 %v3251_v12 }
  0xd2   : > { %1871 = vmatpush.bf16.msrb.mxu1 %v3259_v13 }
  0xd3   : > { %2052 = vmatpush.bf16.msrb.mxu2 %v3267_v58 }
  0xd4   : > { %2066 = vmatpush.bf16.msrb.mxu3 %v3275_v22  ;;  %1858 = vmatmul.bf16.vlgmr.msrb.gmra.mxu0 %v2970_v23 }
  0xd5   : > { %1872 = vmatmul.bf16.vlgmr.msrb.gmra.mxu1 %v2974_v24 }
  0xd6   : > { %2053 = vmatmul.bf16.vlgmr.msrb.gmra.mxu2 %v1945_v25 }
  0xd7   : > { %2067 = vmatmul.bf16.vlgmr.msrb.gmra.mxu3 %v1946_v26 }
  0xf1   : > { %v818_v27 = vpop.f32.mrf.mxu0 }
  0xf2   : > { %v832_v28 = vpop.f32.mrf.mxu1 }
  0xf3   : > { %v833_v45 = vadd.f32 %v832_v28, %v818_v27 }
  0xf9   : > { %v952_v29 = vpop.f32.mrf.mxu2  ;;  %v820_v31 = vpop.f32.mrf.mxu0 }
  0xfa   : > { %v966_v30 = vpop.f32.mrf.mxu3  ;;  %v834_v32 = vpop.f32.mrf.mxu1  ;;  %v953_v48 = vadd.f32 %v952_v29, %v833_v45 }
  0xfb   : > { %v835_v53 = vadd.f32 %v834_v32, %v820_v31 }
  0xfc   : > { %v967_v51 = vadd.f32 %v966_v30, %v953_v48 }
 0x101   : > { %v954_v33 = vpop.f32.mrf.mxu2 }
 0x102   : > { %v968_v34 = vpop.f32.mrf.mxu3  ;;  %v955_v61 = vadd.f32 %v954_v33, %v835_v53 }
 0x104   : > { %v969_v2 = vadd.f32 %v968_v34, %v955_v61 }
 0x111   : > { %v1123_v35 = vpop.f32.mrf.mxu0 }
 0x112   : > { %v1137_v36 = vpop.f32.mrf.mxu1 }
 0x113   : > { %v1138_v52 = vadd.f32 %v1137_v36, %v1123_v35 }
 0x115   : > { %v1142_v56 = vadd.f32 %v1138_v52, %v967_v51 }
 0x119   : > { %v1318_v37 = vpop.f32.mrf.mxu2  ;;  %v1125_v39 = vpop.f32.mrf.mxu0 }
 0x11a   : > { %v1332_v38 = vpop.f32.mrf.mxu3  ;;  %v1139_v40 = vpop.f32.mrf.mxu1 }
 0x11b   : > { %v1333_v57 = vadd.f32 %v1332_v38, %v1318_v37  ;;  %v1140_v0 = vadd.f32 %v1139_v40, %v1125_v39 }
 0x11d   : > { %v1337_v63 = vadd.f32 %v1333_v57, %v1142_v56  ;;  %v1143_v8 = vadd.f32 %v1140_v0, %v969_v2 }
 0x121   : > { %v1320_v41 = vpop.f32.mrf.mxu2 }
 0x122   : > { %v1334_v42 = vpop.f32.mrf.mxu3 }
 0x123   : > { %v1335_v3 = vadd.f32 %v1334_v42, %v1320_v41 }
 0x125   : > { %v1338_v14 = vadd.f32 %v1335_v3, %v1143_v8 }
 0x131   : > { %v1491_v43 = vpop.f32.mrf.mxu0 }
 0x132   : > { %v1505_v44 = vpop.f32.mrf.mxu1 }
 0x133   : > { %v1506_v62 = vadd.f32 %v1505_v44, %v1491_v43 }
 0x135   : > { %v1510_v4 = vadd.f32 %v1506_v62, %v1337_v63 }
 0x139   : > { %v1686_v46 = vpop.f32.mrf.mxu2  ;;  %v1493_v49 = vpop.f32.mrf.mxu0 }
 0x13a   : > { %v1700_v47 = vpop.f32.mrf.mxu3  ;;  %v1507_v50 = vpop.f32.mrf.mxu1 }
 0x13b   : > { %v1701_v1 = vadd.f32 %v1700_v47, %v1686_v46  ;;  %v1508_v10 = vadd.f32 %v1507_v50, %v1493_v49 }
 0x13d   : > { %v1705_v9 = vadd.f32 %v1701_v1, %v1510_v4  ;;  %v1511_v17 = vadd.f32 %v1508_v10, %v1338_v14 }
 0x141   : > { %v1688_v54 = vpop.f32.mrf.mxu2 }
 0x142   : > { %v1702_v55 = vpop.f32.mrf.mxu3 }
 0x143   : > { %v1703_v15 = vadd.f32 %v1702_v55, %v1688_v54 }
 0x145   : > { %v1706_v21 = vadd.f32 %v1703_v15, %v1511_v17 }
 0x151   : > { %v1859_v59 = vpop.f32.mrf.mxu0 }
 0x152   : > { %v1873_v60 = vpop.f32.mrf.mxu1 }
 0x153   : > { %v1874_v5 = vadd.f32 %v1873_v60, %v1859_v59 }
 0x155   : > { %v1878_v16 = vadd.f32 %v1874_v5, %v1705_v9 }
 0x159   : > { %v2054_v6 = vpop.f32.mrf.mxu2  ;;  %v1861_v12 = vpop.f32.mrf.mxu0 }
 0x15a   : > { %v2068_v7 = vpop.f32.mrf.mxu3  ;;  %v1875_v13 = vpop.f32.mrf.mxu1 }
 0x15b   : > { %v2069_v11 = vadd.f32 %v2068_v7, %v2054_v6  ;;  %v1876_v20 = vadd.f32 %v1875_v13, %v1861_v12 }
 0x15d   : > { %v2073_v18 = vadd.f32 %v2069_v11, %v1878_v16  ;;  %v1879_v24 = vadd.f32 %v1876_v20, %v1706_v21 }
 0x15f   : > { %v2079_v23 = vadd.f32 %v3392_v19, %v2073_v18 }
 0x161   : > { %v2056_v58 = vpop.f32.mrf.mxu2  ;;  %v2083_v27 = vmul.f32 0.01, %v2079_v23  ;;  %vm2081_vm3 = vcmp.ge.f32.partialorder %v2079_v23, 0.0 }
 0x162   : > { %v2070_v22 = vpop.f32.mrf.mxu3 }
 0x163   : > { %v2071_v25 = vadd.f32 %v2070_v22, %v2056_v58  ;;  %v2085_v30 = vsel %vm2081_vm3, %v2079_v23, %v2083_v27 }
 0x165   : > { %v2074_v26 = vadd.f32 %v2071_v25, %v1879_v24 }
 0x167   : > { %v2080_v28 = vadd.f32 %v3392_v19, %v2074_v26 }
 0x169   : > { %vm2082_vm4 = vcmp.ge.f32.partialorder %v2080_v28, 0.0  ;;  %v2084_v29 = vmul.f32 0.01, %v2080_v28 }
 0x16a   : > { %2097 = sbr.rel (!%p3668_p5) target bundleno = 376 (0x178), region = 200 }
 0x16b   : > { %v2086_v31 = vsel %vm2082_vm4, %v2080_v28, %v2084_v29 }
 0x16c   : > { %v3286_v32 = vpack.c.bf16 %v2086_v31, %v2085_v30 }
 0x16e   : > { %3287 = vst [vmem:[%s585_s13] sm:$0xff] %v3286_v32  }
 0x175   : > { %v2120_v33 = vld [vmem:[%s585_s13] sm:$0xf]  ;;  %v2122_v34 = vld [vmem:[%s585_s13 + $0x4] sm:$0xf] }
 0x176   : > { %2121 = vst [vmem:[%s2103_s17] sm:$0xf] %v2120_v33 }
 0x177   : > { %2123 = vst [vmem:[%s2103_s17 + $0x20] sm:$0xf] %v2122_v34 }
 0x178 PF: > { %s16_s9 = sadd.s32 1, %s3495_s9   ;;  %s4238_s19 = sld [smem:[#allocation12_spill]] }
 0x179   : > { %p4163_p8 = scmp.ge.s32.totalorder %s16_s9, 10   ;;  %s4239_s29 = sld [smem:[#allocation8_spill]] }
 0x17a   : > { %s4240_s30 = sld [smem:[#allocation11_spill]]  ;;  %s4243_s21 = smov %s3451_s22 }
 0x17b   : > { %s4241_s12 = sld [smem:[#allocation10_spill]]  ;;  %s4244_s22 = smov %s3664_s15 }
 0x17c   : > { %s4245_s23 = smov %s3459_s24  ;;  %s4246_s24 = smov %s3652_s5 }
 0x17d   : > { %s4247_s25 = smov %s3467_s26  ;;  %s4248_s26 = smov %s3638_s10 }
 0x17e   : > { %s4249_s27 = smov %s3475_s28  ;;  %s4250_s28 = smov %s4238_s19 }
 0x17f   : > { %s4251_s7 = smov %s3491_s8  ;;  %15 = sbr.rel (!%p4163_p8) target bundleno = 10 (0xa), region = 309 }
 0x181   : > { %s4252_s8 = smov %s4241_s12 }

// kernel: clagnosco_encoder.11
= control target key start
LH: loop header
LB: loop body
LE: loop exit
PB: predicated region body
PF: predicated region fallthrough
CT: control target
= control target key end

     0   :  { %s669_s12 = smov 0   ;;  %s671_s13 = smov 0   ;;  %s759_s0 = inlined_call_operand.vmem [shape: bf16[8,128], index: 0, kind: input, shape index: {}]   ;;  %s760_s1 = inlined_call_operand.vmem [shape: bf16[128,256], index: 1, kind: input, shape index: {}]   ;;  %s761_s2 = inlined_call_operand.vmem [shape: f32[1,256], index: 2, kind: input, shape index: {}]   ;;  %s762_s3 = inlined_call_operand.vmem [shape: f32[8,256], index: 3, kind: output, shape index: {}]  }
   0x1   :  { %s673_s14 = smov 0   ;;  %s675_s15 = smov 0  }
   0x2   :  { %s677_s16 = smov 0  }
   0x3 LB: > { %s22_s17 = sadd.s32 1, %s643_s15  ;;  %p65_p1 = scmp.ne.s32.totalorder %s635_s13, %s631_s12  ;;  %s647_s16 = sphi %s677_s16, %s13_s16   ;;  %s643_s15 = sphi %s675_s15, %s766_s15   ;;  %s639_s14 = sphi %s673_s14, %s765_s14   ;;  %s635_s13 = sphi %s671_s13, %s764_s13   ;;  %s631_s12 = sphi %s669_s12, %s763_s12  }
   0x4   : > { %p23_p0 = scmp.ge.s32.totalorder %s22_s17, 2  ;;  %p66_p2 = scmp.eq.s32.totalorder %s647_s16, 0 }
   0x5   : > { %s58_s19 = sadd.s32 1, %s635_s13  ;;  %p520_p5 = scmp.ge.s32.totalorder %s647_s16, 2 }
   0x6   : > { %s768_s17 = smov (%p23_p0, %s22_s17), 0  ;;  %p67_p3 = por %p66_p2, %p65_p1 }
   0x7   : > { %s55_s18 = ssub.s32 %s643_s15, %s768_s17  ;;  %152 = sbr.rel (%p520_p5) target bundleno = 32 (0x20), region = 20 }
   0x8   : > { %p56_p4 = scmp.eq.s32.totalorder %s55_s18, 0 }
   0xa   : > { %s704_s20 = scalar_select %p56_p4, %s635_s13, %s58_s19  }
   0xc   : > { %155 = sbr.rel (!%p67_p3) target bundleno = 32 (0x20), region = 24  ;;  %s157_s21 = sand.u32 (%p67_p3), 1, %s635_s13  }
   0xd   : > { %s522_s22 = sshll.u32 (%p67_p3), %s643_s15, 2  ;;  %s521_s23 = sshll.u32 (%p67_p3), %s157_s21, 6 }
   0xe   : > { %s712_s26 = scalar_lea.vmem (%p67_p3), %s760_s1, %s522_s22  ;;  %s159_s27 = scalar_lea.vmem (%p67_p3), [#allocation2], %s521_s23 }
   0xf   : > { %v178_v0 = vld [vmem:[%s712_s26] sm:$0xf] (%p67_p3)  ;;  %v180_v1 = vld [vmem:[%s712_s26 + $0x8] sm:$0xf] (%p67_p3)  ;;  %v182_v2 = vld [vmem:[%s712_s26 + $0x10] sm:$0xf] (%p67_p3) }
  0x10   : > { %179 = vst [vmem:[%s159_s27] sm:$0xf] (%p67_p3), %v178_v0  ;;  %v184_v3 = vld [vmem:[%s712_s26 + $0x18] sm:$0xf] (%p67_p3)  ;;  %v186_v4 = vld [vmem:[%s712_s26 + $0x20] sm:$0xf] (%p67_p3) }
  0x11   : > { %181 = vst [vmem:[%s159_s27 + $0x4] sm:$0xf] %v180_v1  ;;  %v188_v5 = vld [vmem:[%s712_s26 + $0x28] sm:$0xf]  ;;  %v190_v6 = vld [vmem:[%s712_s26 + $0x30] sm:$0xf] }
  0x12   : > { %183 = vst [vmem:[%s159_s27 + $0x8] sm:$0xf] %v182_v2  ;;  %v192_v7 = vld [vmem:[%s712_s26 + $0x38] sm:$0xf]  ;;  %v194_v8 = vld [vmem:[%s712_s26 + $0x40] sm:$0xf] }
  0x13   : > { %185 = vst [vmem:[%s159_s27 + $0xc] sm:$0xf] %v184_v3  ;;  %v196_v9 = vld [vmem:[%s712_s26 + $0x48] sm:$0xf]  ;;  %v198_v10 = vld [vmem:[%s712_s26 + $0x50] sm:$0xf] }
  0x14   : > { %187 = vst [vmem:[%s159_s27 + $0x10] sm:$0xf] %v186_v4  ;;  %v200_v11 = vld [vmem:[%s712_s26 + $0x58] sm:$0xf]  ;;  %v202_v12 = vld [vmem:[%s712_s26 + $0x60] sm:$0xf] }
  0x15   : > { %189 = vst [vmem:[%s159_s27 + $0x14] sm:$0xf] %v188_v5  ;;  %v204_v13 = vld [vmem:[%s712_s26 + $0x68] sm:$0xf]  ;;  %v206_v14 = vld [vmem:[%s712_s26 + $0x70] sm:$0xf] }
  0x16   : > { %191 = vst [vmem:[%s159_s27 + $0x18] sm:$0xf] %v190_v6  ;;  %v208_v15 = vld [vmem:[%s712_s26 + $0x78] sm:$0xf] }
  0x17   : > { %193 = vst [vmem:[%s159_s27 + $0x1c] sm:$0xf] %v192_v7 }
  0x18   : > { %195 = vst [vmem:[%s159_s27 + $0x20] sm:$0xf] %v194_v8 }
  0x19   : > { %197 = vst [vmem:[%s159_s27 + $0x24] sm:$0xf] %v196_v9 }
  0x1a   : > { %199 = vst [vmem:[%s159_s27 + $0x28] sm:$0xf] %v198_v10 }
  0x1b   : > { %201 = vst [vmem:[%s159_s27 + $0x2c] sm:$0xf] %v200_v11 }
  0x1c   : > { %203 = vst [vmem:[%s159_s27 + $0x30] sm:$0xf] %v202_v12 }
  0x1d   : > { %205 = vst [vmem:[%s159_s27 + $0x34] sm:$0xf] %v204_v13 }
  0x1e   : > { %207 = vst [vmem:[%s159_s27 + $0x38] sm:$0xf] %v206_v14 }
  0x1f   : > { %209 = vst [vmem:[%s159_s27 + $0x3c] sm:$0xf] %v208_v15 }
  0x20 PF: > { %p523_p6 = scmp.ge.s32.totalorder %s647_s16, 1  ;;  %p270_p7 = scmp.lt.s32.totalorder %s647_s16, 3 }
  0x22   : > { %p271_p8 = pnand %p523_p6, %p270_p7 }
  0x23   : > { %s277_s28 = sand.u32 (!%p271_p8), 1, %s631_s12   ;;  %p314_p9 = scmp.lt.s32.totalorder (!%p271_p8), %s639_s14, 1 }
  0x24   : > { %274 = sbr.rel (%p271_p8) target bundleno = 207 (0xcf), region = 69  ;;  %s524_s29 = sshll.u32 (!%p271_p8), %s277_s28, 6 }
  0x25   : > { %s279_s30 = scalar_lea.vmem (!%p271_p8), [#allocation2], %s524_s29 }
  0x29   : > { %v567_v16 = vld [vmem:[%s279_s30 + $0x38] sm:$0xff]  ;;  %s770_s14 = smov (!%p314_p9, %s639_s14), 1  ;;  %v566_v17 = vld [vmem:[%s279_s30 + $0x30] sm:$0xff]  ;;  %v565_v18 = vld [vmem:[%s279_s30 + $0x28] sm:$0xff] }
  0x2a   : > { %394 = vmatpush.bf16.msra.mxu0 %v567_v16  ;;  %s316_s6 = scalar_lea.vmem %s761_s2, %s770_s14  ;;  %v564_v19 = vld [vmem:[%s279_s30 + $0x20] sm:$0xff]  ;;  %v563_v20 = vld [vmem:[%s279_s30 + $0x18] sm:$0xff]  ;;  %v562_v21 = vld [vmem:[%s279_s30 + $0x10] sm:$0xff]  ;;  %s525_s9 = sshll.u32 %s770_s14, 3 }
  0x2b   : > { %v561_v22 = vld [vmem:[%s279_s30 + $0x8] sm:$0xff]  ;;  %v560_v23 = vld [vmem:[%s279_s30] sm:$0xff]  ;;  %s324_s12 = scalar_lea.vmem %s762_s3, %s525_s9 }
  0x2c   : > { %v325_v24 = vld [vmem:[%s759_s0] sm:$0xf] }
  0x2d   : > { %v608_v25 = vld [vmem:[%s316_s6] ss:$0 sm:$0xff] }
  0x2e   : > { %395 = vmatpush.bf16.msra.mxu0 %v566_v17 }
  0x32   : > { %396 = vmatpush.bf16.msra.mxu0 %v565_v18 }
  0x36   : > { %397 = vmatpush.bf16.msra.mxu0 %v564_v19 }
  0x3a   : > { %398 = vmatpush.bf16.msra.mxu0 %v563_v20 }
  0x3e   : > { %399 = vmatpush.bf16.msra.mxu0 %v562_v21 }
  0x42   : > { %400 = vmatpush.bf16.msra.mxu0 %v561_v22 }
  0x46   : > { %401 = vmatpush.bf16.msra.mxu0 %v560_v23 }
  0x49   : > { %402 = vmatmul.bf16.vlgmr.msra.gmra.mxu0 %v325_v24 }
  0xc6   : > { %v403_v26 = vpop.f32.mrf.mxu0 }
  0xc7   : > { %v404_v27 = vadd.f32 %v608_v25, %v403_v26 }
  0xc9   : > { %407 = vst [vmem:[%s324_s12] sm:$0xff] %v404_v27 }
  0xce   : > { %v405_v28 = vpop.f32.mrf.mxu0 }
  0xcf PF: > { %s13_s16 = sadd.s32 1, %s647_s16   ;;  %s763_s12 = smov %s635_s13 }
  0xd0   : > { %p10_p10 = scmp.ge.s32.totalorder %s13_s16, 4   ;;  %s764_s13 = smov %s704_s20 }
  0xd1   : > { %s765_s14 = smov %s643_s15  ;;  %s766_s15 = smov %s768_s17 }
  0xd2   :  { %12 = sbr.rel (!%p10_p10) target bundleno = 3 (0x3), region = 114 }

// kernel: clagnosco_encoder.10
= control target key start
LH: loop header
LB: loop body
LE: loop exit
PB: predicated region body
PF: predicated region fallthrough
CT: control target
= control target key end

     0   :  { %s1443_s12 = smov 0   ;;  %s1445_s13 = smov 0   ;;  %s1561_s0 = inlined_call_operand.vmem [shape: bf16[8,2048], index: 0, kind: input, shape index: {}]   ;;  %s1562_s1 = inlined_call_operand.vmem [shape: bf16[2048,128], index: 1, kind: input, shape index: {}]   ;;  %s1563_s2 = inlined_call_operand.vmem [shape: f32[1,128], index: 2, kind: input, shape index: {}]   ;;  %s1564_s3 = inlined_call_operand.vmem [shape: bf16[8,128], index: 3, kind: output, shape index: {}]  }
   0x1   :  { %s1447_s14 = smov 0  }
   0x2 LB: > { %s25_s15 = sadd.s32 1, %s1417_s13  ;;  %p1043_p0 = scmp.ge.s32.totalorder %s1421_s14, 1  ;;  %s1421_s14 = sphi %s1447_s14, %s13_s14   ;;  %s1417_s13 = sphi %s1445_s13, %s1566_s13   ;;  %s1413_s12 = sphi %s1443_s12, %s1565_s12  }
   0x3   : > { %p26_p1 = scmp.ge.s32.totalorder %s25_s15, 2  ;;  %p189_p2 = scmp.lt.s32.totalorder %s1421_s14, 3 }
   0x5   : > { %s1568_s15 = smov (%p26_p1, %s25_s15), 0  ;;  %p190_p3 = pnand %p1043_p0, %p189_p2 }
   0x6   : > { %s1046_s16 = sshll.u32 (!%p190_p3), %s1413_s12, 7  ;;  %s1044_s21 = sshll.u32 (!%p190_p3), %s1413_s12, 3 }
   0x7   : > { %193 = sbr.rel (%p190_p3) target bundleno = 251 (0xfb), region = 32  ;;  %p241_p4 = scmp.lt.s32.totalorder (!%p190_p3), %s1046_s16, 255 }
   0x8   : > { %p233_p5 = scmp.lt.s32.totalorder (!%p190_p3), %s1044_s21, 15  ;;  %p1304_p6 = scmp.ne.s32.totalorder (!%p190_p3), %s1413_s12, 0 }
   0xc   : > { %s1570_s16 = smov (!%p241_p4, %s1046_s16), 255  ;;  %s1572_s21 = smov (!%p233_p5, %s1044_s21), 15 }
   0xd   : > { %s1047_s17 = sshll.u32 %s1570_s16, 2  ;;  %s1045_s22 = sshll.u32 %s1572_s21, 2 }
   0xe   : > { %s1467_s20 = scalar_lea.vmem %s1562_s1, %s1047_s17  ;;  %s1497_s25 = scalar_lea.vmem %s1561_s0, %s1045_s22 }
   0xf   : > { %v1317_v0 = vld [vmem:[%s1467_s20 + $0x38] sm:$0xff]  ;;  %v1316_v4 = vld [vmem:[%s1467_s20 + $0x30] sm:$0xff]  ;;  %v1315_v8 = vld [vmem:[%s1467_s20 + $0x28] sm:$0xff] }
  0x10   : > { %v1325_v1 = vld [vmem:[%s1467_s20 + $0x78] sm:$0xff]  ;;  %803 = vmatpush.bf16.msra.mxu0 %v1317_v0  ;;  %v1324_v5 = vld [vmem:[%s1467_s20 + $0x70] sm:$0xff]  ;;  %v1323_v9 = vld [vmem:[%s1467_s20 + $0x68] sm:$0xff] }
  0x11   : > { %v1333_v2 = vld [vmem:[%s1467_s20 + $0xb8] sm:$0xff]  ;;  %816 = vmatpush.bf16.msra.mxu1 %v1325_v1  ;;  %v1332_v6 = vld [vmem:[%s1467_s20 + $0xb0] sm:$0xff]  ;;  %v1331_v10 = vld [vmem:[%s1467_s20 + $0xa8] sm:$0xff] }
  0x12   : > { %v1341_v3 = vld [vmem:[%s1467_s20 + $0xf8] sm:$0xff]  ;;  %829 = vmatpush.bf16.msra.mxu2 %v1333_v2  ;;  %v1340_v7 = vld [vmem:[%s1467_s20 + $0xf0] sm:$0xff]  ;;  %v1339_v11 = vld [vmem:[%s1467_s20 + $0xe8] sm:$0xff] }
  0x13   : > { %842 = vmatpush.bf16.msra.mxu3 %v1341_v3  ;;  %v1314_v12 = vld [vmem:[%s1467_s20 + $0x20] sm:$0xff]  ;;  %v1313_v16 = vld [vmem:[%s1467_s20 + $0x18] sm:$0xff]  ;;  %v1312_v20 = vld [vmem:[%s1467_s20 + $0x10] sm:$0xff] }
  0x14   : > { %804 = vmatpush.bf16.msra.mxu0 %v1316_v4  ;;  %v1322_v13 = vld [vmem:[%s1467_s20 + $0x60] sm:$0xff]  ;;  %v1321_v17 = vld [vmem:[%s1467_s20 + $0x58] sm:$0xff]  ;;  %v1320_v21 = vld [vmem:[%s1467_s20 + $0x50] sm:$0xff] }
  0x15   : > { %817 = vmatpush.bf16.msra.mxu1 %v1324_v5  ;;  %v1330_v14 = vld [vmem:[%s1467_s20 + $0xa0] sm:$0xff]  ;;  %v1329_v18 = vld [vmem:[%s1467_s20 + $0x98] sm:$0xff]  ;;  %v1328_v22 = vld [vmem:[%s1467_s20 + $0x90] sm:$0xff] }
  0x16   : > { %830 = vmatpush.bf16.msra.mxu2 %v1332_v6  ;;  %v1338_v15 = vld [vmem:[%s1467_s20 + $0xe0] sm:$0xff]  ;;  %v1337_v19 = vld [vmem:[%s1467_s20 + $0xd8] sm:$0xff]  ;;  %v1336_v23 = vld [vmem:[%s1467_s20 + $0xd0] sm:$0xff] }
  0x17   : > { %843 = vmatpush.bf16.msra.mxu3 %v1340_v7  ;;  %v1311_v24 = vld [vmem:[%s1467_s20 + $0x8] sm:$0xff]  ;;  %v259_v29 = vld [vmem:[%s1497_s25] sm:$0xff]  ;;  %v1349_v38 = vld [vmem:[%s1467_s20 + $0x138] sm:$0xff] }
  0x18   : > { %805 = vmatpush.bf16.msra.mxu0 %v1315_v8  ;;  %v1319_v25 = vld [vmem:[%s1467_s20 + $0x48] sm:$0xff]  ;;  %v1310_v30 = vld [vmem:[%s1467_s20] sm:$0xff]  ;;  %v395_v36 = vunpack.c.l.b16 %v259_v29  ;;  %v396_v37 = vunpack.c.h.b16 %v259_v29  ;;  %v1357_v39 = vld [vmem:[%s1467_s20 + $0x178] sm:$0xff] }
  0x19   : > { %818 = vmatpush.bf16.msra.mxu1 %v1323_v9  ;;  %v1327_v26 = vld [vmem:[%s1467_s20 + $0x88] sm:$0xff]  ;;  %v1318_v31 = vld [vmem:[%s1467_s20 + $0x40] sm:$0xff]  ;;  %v1365_v40 = vld [vmem:[%s1467_s20 + $0x1b8] sm:$0xff] }
  0x1a   : > { %831 = vmatpush.bf16.msra.mxu2 %v1331_v10  ;;  %v1335_v27 = vld [vmem:[%s1467_s20 + $0xc8] sm:$0xff]  ;;  %v1326_v34 = vld [vmem:[%s1467_s20 + $0x80] sm:$0xff]  ;;  %v1373_v41 = vld [vmem:[%s1467_s20 + $0x1f8] sm:$0xff]  ;;  %v403_v44 = vpack.c.b16 %v395_v36, %v395_v36  ;;  %v404_v45 = vpack.c.b16 %v396_v37, %v396_v37 }
  0x1b   : > { %844 = vmatpush.bf16.msra.mxu3 %v1339_v11  ;;  %v260_v28 = vld [vmem:[%s1497_s25 + $0x8] sm:$0xff]  ;;  %v1334_v35 = vld [vmem:[%s1467_s20 + $0xc0] sm:$0xff]  ;;  %v1348_v46 = vld [vmem:[%s1467_s20 + $0x130] sm:$0xff] }
  0x1c   : > { %806 = vmatpush.bf16.msra.mxu0 %v1314_v12  ;;  %v397_v32 = vunpack.c.l.b16 %v260_v28  ;;  %v398_v33 = vunpack.c.h.b16 %v260_v28  ;;  %v1356_v47 = vld [vmem:[%s1467_s20 + $0x170] sm:$0xff]  ;;  %v1347_v50 = vld [vmem:[%s1467_s20 + $0x128] sm:$0xff]  ;;  %v1346_v54 = vld [vmem:[%s1467_s20 + $0x120] sm:$0xff] }
  0x1d   : > { %819 = vmatpush.bf16.msra.mxu1 %v1322_v13  ;;  %v1364_v48 = vld [vmem:[%s1467_s20 + $0x1b0] sm:$0xff]  ;;  %v1355_v51 = vld [vmem:[%s1467_s20 + $0x168] sm:$0xff]  ;;  %v1354_v55 = vld [vmem:[%s1467_s20 + $0x160] sm:$0xff] }
  0x1e   : > { %832 = vmatpush.bf16.msra.mxu2 %v1330_v14  ;;  %v405_v42 = vpack.c.b16 %v397_v32, %v397_v32  ;;  %v406_v43 = vpack.c.b16 %v398_v33, %v398_v33  ;;  %v1372_v49 = vld [vmem:[%s1467_s20 + $0x1f0] sm:$0xff]  ;;  %v1363_v52 = vld [vmem:[%s1467_s20 + $0x1a8] sm:$0xff]  ;;  %v1362_v56 = vld [vmem:[%s1467_s20 + $0x1a0] sm:$0xff] }
  0x1f   : > { %845 = vmatpush.bf16.msra.mxu3 %v1338_v15  ;;  %v1371_v53 = vld [vmem:[%s1467_s20 + $0x1e8] sm:$0xff]  ;;  %v1370_v57 = vld [vmem:[%s1467_s20 + $0x1e0] sm:$0xff]  ;;  %v1345_v58 = vld [vmem:[%s1467_s20 + $0x118] sm:$0xff] }
  0x20   : > { %807 = vmatpush.bf16.msra.mxu0 %v1313_v16  ;;  %v1353_v59 = vld [vmem:[%s1467_s20 + $0x158] sm:$0xff]  ;;  %v1344_v62 = vld [vmem:[%s1467_s20 + $0x110] sm:$0xff]  ;;  %v1343_v2 = vld [vmem:[%s1467_s20 + $0x108] sm:$0xff] }
  0x21   : > { %820 = vmatpush.bf16.msra.mxu1 %v1321_v17  ;;  %v1361_v60 = vld [vmem:[%s1467_s20 + $0x198] sm:$0xff]  ;;  %v1352_v63 = vld [vmem:[%s1467_s20 + $0x150] sm:$0xff]  ;;  %v1351_v3 = vld [vmem:[%s1467_s20 + $0x148] sm:$0xff] }
  0x22   : > { %833 = vmatpush.bf16.msra.mxu2 %v1329_v18  ;;  %v1369_v61 = vld [vmem:[%s1467_s20 + $0x1d8] sm:$0xff]  ;;  %v1360_v0 = vld [vmem:[%s1467_s20 + $0x190] sm:$0xff]  ;;  %v1359_v5 = vld [vmem:[%s1467_s20 + $0x188] sm:$0xff] }
  0x23   : > { %846 = vmatpush.bf16.msra.mxu3 %v1337_v19  ;;  %v1368_v1 = vld [vmem:[%s1467_s20 + $0x1d0] sm:$0xff]  ;;  %v1367_v6 = vld [vmem:[%s1467_s20 + $0x1c8] sm:$0xff]  ;;  %v262_v7 = vld [vmem:[%s1497_s25 + $0x18] sm:$0xff] }
  0x24   : > { %808 = vmatpush.bf16.msra.mxu0 %v1312_v20  ;;  %v261_v4 = vld [vmem:[%s1497_s25 + $0x10] sm:$0xff]  ;;  %v1342_v10 = vld [vmem:[%s1467_s20 + $0x100] sm:$0xff]  ;;  %v401_v12 = vunpack.c.l.b16 %v262_v7  ;;  %v402_v13 = vunpack.c.h.b16 %v262_v7 }
  0x25   : > { %821 = vmatpush.bf16.msra.mxu1 %v1320_v21  ;;  %v399_v8 = vunpack.c.l.b16 %v261_v4  ;;  %v400_v9 = vunpack.c.h.b16 %v261_v4  ;;  %v1350_v11 = vld [vmem:[%s1467_s20 + $0x140] sm:$0xff] }
  0x26   : > { %834 = vmatpush.bf16.msra.mxu2 %v1328_v22  ;;  %v1358_v14 = vld [vmem:[%s1467_s20 + $0x180] sm:$0xff]  ;;  %v409_v18 = vpack.c.b16 %v401_v12, %v401_v12  ;;  %v410_v19 = vpack.c.b16 %v402_v13, %v402_v13 }
  0x27   : > { %847 = vmatpush.bf16.msra.mxu3 %v1336_v23  ;;  %v1366_v15 = vld [vmem:[%s1467_s20 + $0x1c0] sm:$0xff]  ;;  %v407_v16 = vpack.c.b16 %v399_v8, %v399_v8  ;;  %v408_v17 = vpack.c.b16 %v400_v9, %v400_v9 }
  0x28   : > { %809 = vmatpush.bf16.msra.mxu0 %v1311_v24 }
  0x29   : > { %822 = vmatpush.bf16.msra.mxu1 %v1319_v25 }
  0x2a   : > { %835 = vmatpush.bf16.msra.mxu2 %v1327_v26 }
  0x2b   : > { %848 = vmatpush.bf16.msra.mxu3 %v1335_v27 }
  0x2c   : > { %810 = vmatpush.bf16.msra.mxu0 %v1310_v30 }
  0x2d   : > { %823 = vmatpush.bf16.msra.mxu1 %v1318_v31 }
  0x2e   : > { %836 = vmatpush.bf16.msra.mxu2 %v1326_v34 }
  0x2f   : > { %849 = vmatpush.bf16.msra.mxu3 %v1334_v35  ;;  %811 = vmatmul.bf16.vlgmr.msra.gmra.mxu0 %v403_v44 }
  0x30   : > { %855 = vmatpush.bf16.msrb.mxu0 %v1349_v38  ;;  %824 = vmatmul.bf16.vlgmr.msra.gmra.mxu1 %v404_v45 }
  0x31   : > { %868 = vmatpush.bf16.msrb.mxu1 %v1357_v39  ;;  %837 = vmatmul.bf16.vlgmr.msra.gmra.mxu2 %v405_v42 }
  0x32   : > { %881 = vmatpush.bf16.msrb.mxu2 %v1365_v40  ;;  %850 = vmatmul.bf16.vlgmr.msra.gmra.mxu3 %v406_v43 }
  0x33   : > { %894 = vmatpush.bf16.msrb.mxu3 %v1373_v41 }
  0x34   : > { %856 = vmatpush.bf16.msrb.mxu0 %v1348_v46 }
  0x35   : > { %869 = vmatpush.bf16.msrb.mxu1 %v1356_v47 }
  0x36   : > { %882 = vmatpush.bf16.msrb.mxu2 %v1364_v48 }
  0x37   : > { %895 = vmatpush.bf16.msrb.mxu3 %v1372_v49 }
  0x38   : > { %857 = vmatpush.bf16.msrb.mxu0 %v1347_v50 }
  0x39   : > { %870 = vmatpush.bf16.msrb.mxu1 %v1355_v51 }
  0x3a   : > { %883 = vmatpush.bf16.msrb.mxu2 %v1363_v52 }
  0x3b   : > { %896 = vmatpush.bf16.msrb.mxu3 %v1371_v53 }
  0x3c   : > { %858 = vmatpush.bf16.msrb.mxu0 %v1346_v54 }
  0x3d   : > { %871 = vmatpush.bf16.msrb.mxu1 %v1354_v55 }
  0x3e   : > { %884 = vmatpush.bf16.msrb.mxu2 %v1362_v56 }
  0x3f   : > { %897 = vmatpush.bf16.msrb.mxu3 %v1370_v57 }
  0x40   : > { %859 = vmatpush.bf16.msrb.mxu0 %v1345_v58 }
  0x41   : > { %872 = vmatpush.bf16.msrb.mxu1 %v1353_v59 }
  0x42   : > { %885 = vmatpush.bf16.msrb.mxu2 %v1361_v60 }
  0x43   : > { %898 = vmatpush.bf16.msrb.mxu3 %v1369_v61 }
  0x44   : > { %860 = vmatpush.bf16.msrb.mxu0 %v1344_v62 }
  0x45   : > { %873 = vmatpush.bf16.msrb.mxu1 %v1352_v63 }
  0x46   : > { %886 = vmatpush.bf16.msrb.mxu2 %v1360_v0 }
  0x47   : > { %899 = vmatpush.bf16.msrb.mxu3 %v1368_v1 }
  0x48   : > { %861 = vmatpush.bf16.msrb.mxu0 %v1343_v2 }
  0x49   : > { %874 = vmatpush.bf16.msrb.mxu1 %v1351_v3 }
  0x4a   : > { %887 = vmatpush.bf16.msrb.mxu2 %v1359_v5 }
  0x4b   : > { %900 = vmatpush.bf16.msrb.mxu3 %v1367_v6 }
  0x4c   : > { %862 = vmatpush.bf16.msrb.mxu0 %v1342_v10 }
  0x4d   : > { %875 = vmatpush.bf16.msrb.mxu1 %v1350_v11 }
  0x4e   : > { %888 = vmatpush.bf16.msrb.mxu2 %v1358_v14 }
  0x4f   : > { %901 = vmatpush.bf16.msrb.mxu3 %v1366_v15  ;;  %863 = vmatmul.bf16.vlgmr.msrb.gmra.mxu0 %v407_v16 }
  0x50   : > { %876 = vmatmul.bf16.vlgmr.msrb.gmra.mxu1 %v408_v17 }
  0x51   : > { %889 = vmatmul.bf16.vlgmr.msrb.gmra.mxu2 %v409_v18 }
  0x52   : > { %902 = vmatmul.bf16.vlgmr.msrb.gmra.mxu3 %v410_v19 }
  0xac   : > { %v812_v20 = vpop.f32.mrf.mxu0 }
  0xad   : > { %v825_v21 = vpop.f32.mrf.mxu1 }
  0xae   : > { %v826_v28 = vadd.f32 %v825_v21, %v812_v20 }
  0xb4   : > { %v838_v22 = vpop.f32.mrf.mxu2  ;;  %v814_v24 = vpop.f32.mrf.mxu0 }
  0xb5   : > { %v851_v23 = vpop.f32.mrf.mxu3  ;;  %v827_v25 = vpop.f32.mrf.mxu1  ;;  %v839_v29 = vadd.f32 %v838_v22, %v826_v28 }
  0xb7   : > { %v852_v30 = vadd.f32 %v851_v23, %v839_v29 }
  0xbc   : > { %v840_v26 = vpop.f32.mrf.mxu2 }
  0xbd   : > { %v853_v27 = vpop.f32.mrf.mxu3 }
  0xcc   : > { %v864_v31 = vpop.f32.mrf.mxu0 }
  0xcd   : > { %v877_v32 = vpop.f32.mrf.mxu1  ;;  %v865_v33 = vadd.f32 %v864_v31, %v852_v30 }
  0xcf   : > { %v878_v34 = vadd.f32 %v877_v32, %v865_v33 }
  0xd4   : > { %v890_v35 = vpop.f32.mrf.mxu2  ;;  %v866_v38 = vpop.f32.mrf.mxu0 }
  0xd5   : > { %v903_v36 = vpop.f32.mrf.mxu3  ;;  %v891_v37 = vadd.f32 %v890_v35, %v878_v34  ;;  %v879_v39 = vpop.f32.mrf.mxu1 }
  0xd7   : > { %v904_v40 = vadd.f32 %v903_v36, %v891_v37 }
  0xd9   : > { %910 = sbr.rel (%p1304_p6) target bundleno = 223 (0xdf), region = 36 }
  0xdc   : > { %v892_v41 = vpop.f32.mrf.mxu2 }
  0xdd   : > { %v905_v42 = vpop.f32.mrf.mxu3 }
  0xde   : > { %911 = vst [vmem:[#allocation2] sm:$0xff] %v904_v40 }
  0xdf PF: > { %p1305_p7 = scmp.le.s32.totalorder %s1413_s12, 0 }
  0xe1   : > { %915 = sbr.rel (%p1305_p7) target bundleno = 234 (0xea), region = 40 }
  0xe6   : > { %v916_v43 = vld [vmem:[#allocation2] sm:$0xff] }
  0xe7   : > { %v917_v44 = vadd.f32 %v916_v43, %v904_v40 }
  0xe9   : > { %918 = vst [vmem:[#allocation2] sm:$0xff] %v917_v44 }
  0xea PF: > { %p1306_p8 = scmp.ne.s32.totalorder %s1413_s12, 1 }
  0xec   : > { %922 = sbr.rel (%p1306_p8) target bundleno = 251 (0xfb), region = 44 }
  0xf1   : > { %v923_v45 = vld [vmem:[#allocation2] sm:$0xff] }
  0xf2   : > { %v1398_v46 = vld [vmem:[%s1563_s2] ss:$0 sm:$0xff] }
  0xf3   : > { %v928_v47 = vadd.f32 %v1398_v46, %v923_v45 }
  0xf5   : > { %vm929_vm0 = vcmp.ge.f32.partialorder %v928_v47, 0.0  ;;  %v930_v48 = vmul.f32 0.01, %v928_v47 }
  0xf7   : > { %v931_v49 = vsel %vm929_vm0, %v928_v47, %v930_v48 }
  0xf8   : > { %v932_v50 = vpack.c.bf16 %v931_v49, %v931_v49 }
  0xfa   : > { %933 = vst [vmem:[%s1564_s3] sm:$0xf] %v932_v50 }
  0xfb PF: > { %s13_s14 = sadd.s32 1, %s1421_s14   ;;  %s1565_s12 = smov %s1417_s13 }
  0xfc   : > { %p10_p9 = scmp.ge.s32.totalorder %s13_s14, 4   ;;  %s1566_s13 = smov %s1568_s15 }
  0xfe   :  { %12 = sbr.rel (!%p10_p9) target bundleno = 2 (0x2), region = 80 }

</bundles_post_ra>
